<compile_context>
chip_gen: v7x
topology: tpu7x:2x2x1
jax: 0.10.0
libtpu: 0.0.40
codegen_flags: <defaults>
</compile_context>

<pallas_src>
import functools

import jax
import jax.numpy as jnp
import numpy as np
from jax.experimental import pallas as pl
from jax.experimental.pallas import tpu as pltpu


# ----------------------------- Pallas kernel ------------------------------ #
def _decoder_kernel(
    # inputs (all fully VMEM-resident; single kernel invocation)
    init_ref,        # (B, rep_size)
    cond_ref,        # (T, B, cond_size)           time-major
    wz_ref,          # (rep_size, input_size)
    bz_ref,          # (1, input_size)
    w1ic_ref,        # (3, input_size, H)          layer-1 W_ih (cur part), gates (r,z,n)
    w1id_ref,        # (3, cond_size, H)           layer-1 W_ih (cond part)
    w1h_ref,         # (3, H, H)                   layer-1 W_hh
    b1i_ref,         # (3, 1, H)
    b1h_ref,         # (3, 1, H)
    w2i_ref,         # ((L-1)*3, H, H)             stacked layers W_ih
    w2h_ref,         # ((L-1)*3, H, H)             stacked layers W_hh
    b2i_ref,         # ((L-1)*3, 1, H)
    b2h_ref,         # ((L-1)*3, 1, H)
    wout_ref,        # (H, input_size)
    bout_ref,        # (1, input_size)
    # output
    out_ref,         # (T, B, input_size)
    # scratch
    hc_ref,          # (layers, B, H)   hidden states
    cur_ref,         # (B, input_size)  autoregressive input
    *,
    layers: int,
    hidden_size: int,
    seq_len: int,
    batch: int,
):
    H = hidden_size
    B = batch

    def dot(a, b):
        return jnp.dot(a, b, preferred_element_type=jnp.float32)

    # ---- hoist all weight loads / bias broadcasts out of the time loop ----
    w1c = [w1ic_ref[g] for g in range(3)]
    w1d = [w1id_ref[g] for g in range(3)]
    w1h = [w1h_ref[g] for g in range(3)]
    b1_r = jnp.broadcast_to(b1i_ref[0] + b1h_ref[0], (B, H))
    b1_z = jnp.broadcast_to(b1i_ref[1] + b1h_ref[1], (B, H))
    b1_in = jnp.broadcast_to(b1i_ref[2], (B, H))
    b1_hn = jnp.broadcast_to(b1h_ref[2], (B, H))

    w2i = [[w2i_ref[3 * l + g] for g in range(3)] for l in range(layers - 1)]
    w2h = [[w2h_ref[3 * l + g] for g in range(3)] for l in range(layers - 1)]
    b2_r = [jnp.broadcast_to(b2i_ref[3 * l] + b2h_ref[3 * l], (B, H))
            for l in range(layers - 1)]
    b2_z = [jnp.broadcast_to(b2i_ref[3 * l + 1] + b2h_ref[3 * l + 1], (B, H))
            for l in range(layers - 1)]
    b2_in = [jnp.broadcast_to(b2i_ref[3 * l + 2], (B, H)) for l in range(layers - 1)]
    b2_hn = [jnp.broadcast_to(b2h_ref[3 * l + 2], (B, H)) for l in range(layers - 1)]

    wout = wout_ref[...]
    bout = jnp.broadcast_to(bout_ref[...], (B, wout.shape[1]))

    # ---- init: h = 0, cur_input = linear_z(init_hidden) -------------------
    hc_ref[...] = jnp.zeros_like(hc_ref)
    cur_ref[...] = dot(init_ref[...], wz_ref[...]) + bz_ref[...]

    # ---- one time step of the autoregressive GRU decoder ------------------
    def step(t):
        cur = cur_ref[...]                       # (B, input_size)
        cond_t = cond_ref[t]                     # (B, cond_size)

        # layer 1: x = [cur | cond] realized as two dots (no lane concat)
        h = hc_ref[0]
        r = jax.nn.sigmoid(dot(cur, w1c[0]) + dot(cond_t, w1d[0])
                           + dot(h, w1h[0]) + b1_r)
        z = jax.nn.sigmoid(dot(cur, w1c[1]) + dot(cond_t, w1d[1])
                           + dot(h, w1h[1]) + b1_z)
        n = jnp.tanh(dot(cur, w1c[2]) + dot(cond_t, w1d[2]) + b1_in
                     + r * (dot(h, w1h[2]) + b1_hn))
        h = (1.0 - z) * n + z * h
        hc_ref[0] = h

        # stacked GRU layers 2..L
        for l in range(layers - 1):
            hp = hc_ref[l + 1]
            r = jax.nn.sigmoid(dot(h, w2i[l][0]) + dot(hp, w2h[l][0]) + b2_r[l])
            z = jax.nn.sigmoid(dot(h, w2i[l][1]) + dot(hp, w2h[l][1]) + b2_z[l])
            n = jnp.tanh(dot(h, w2i[l][2]) + b2_in[l]
                         + r * (dot(hp, w2h[l][2]) + b2_hn[l]))
            h = (1.0 - z) * n + z * hp
            hc_ref[l + 1] = h

        # cur_input = tanh(linear_out(h_last)); output stays in VMEM until the
        # single end-of-kernel writeback DMA.
        cur_new = jnp.tanh(dot(h, wout) + bout)
        cur_ref[...] = cur_new
        out_ref[t] = cur_new.astype(out_ref.dtype)

    if seq_len <= 16:
        # fully unrolled: static indices, maximum scheduler visibility
        for t in range(seq_len):
            step(t)
    else:
        pl.loop(0, seq_len)(step)


# ------------------------------ wrapper ----------------------------------- #
def _split_gates_w(w_T, H):
    # (in, 3H) -> (3, in, H); gates ordered (r, z, n) as in PyTorch GRUCell
    return jnp.stack([w_T[:, :H], w_T[:, H:2 * H], w_T[:, 2 * H:]], axis=0)


def _split_gates_b(b, H):
    # (1, 3H) -> (3, 1, H)
    return jnp.stack([b[:, :H], b[:, H:2 * H], b[:, 2 * H:]], axis=0)


def decoder_forward(seq_len, init_hidden, cond, params, *, layers, hidden_size):
    B, rep_size = init_hidden.shape
    input_size = params["wz_T"].shape[1]
    cond_size = cond.shape[-1]
    H = hidden_size

    # pad batch to a multiple of 8 sublanes
    B_pad = ((B + 7) // 8) * 8
    pad_b = B_pad - B
    init_p = jnp.pad(init_hidden.astype(jnp.float32), ((0, pad_b), (0, 0)))
    cond_tm = jnp.transpose(cond.astype(jnp.float32), (1, 0, 2))    # (T, B, C)
    cond_p = jnp.pad(cond_tm, ((0, 0), (0, pad_b), (0, 0)))

    # re-pack GRU weights per gate; split layer-1 W_ih into cur / cond parts.
    # (One-time layout plumbing outside the serial kernel.)
    w1 = _split_gates_w(params["wih1_T"], H)          # (3, I+C, H)
    w1_ih_cur = w1[:, :input_size, :]                 # (3, I, H)
    w1_ih_cond = w1[:, input_size:, :]                # (3, C, H)
    w1_hh = _split_gates_w(params["whh1_T"], H)       # (3, H, H)
    b1_ih = _split_gates_b(params["bih1"], H)         # (3, 1, H)
    b1_hh = _split_gates_b(params["bhh1"], H)

    if layers > 1:
        w2_ih = jnp.concatenate([_split_gates_w(params["wih2_T"][l], H)
                                 for l in range(layers - 1)], axis=0)
        w2_hh = jnp.concatenate([_split_gates_w(params["whh2_T"][l], H)
                                 for l in range(layers - 1)], axis=0)
        b2_ih = jnp.concatenate([_split_gates_b(params["bih2"][l], H)
                                 for l in range(layers - 1)], axis=0)
        b2_hh = jnp.concatenate([_split_gates_b(params["bhh2"][l], H)
                                 for l in range(layers - 1)], axis=0)
    else:
        # placeholders; never read when layers == 1
        w2_ih = jnp.zeros((3, H, H), jnp.float32)
        w2_hh = jnp.zeros((3, H, H), jnp.float32)
        b2_ih = jnp.zeros((3, 1, H), jnp.float32)
        b2_hh = jnp.zeros((3, 1, H), jnp.float32)

    kernel = functools.partial(
        _decoder_kernel, layers=layers, hidden_size=H,
        seq_len=seq_len, batch=B_pad)

    vmem = pl.BlockSpec(memory_space=pltpu.MemorySpace.VMEM)

    out_tm = pl.pallas_call(
        kernel,
        out_shape=jax.ShapeDtypeStruct((seq_len, B_pad, input_size), jnp.float32),
        in_specs=[vmem] * 15,
        out_specs=vmem,
        scratch_shapes=[
            pltpu.VMEM((layers, B_pad, H), jnp.float32),    # hidden states
            pltpu.VMEM((B_pad, input_size), jnp.float32),   # autoregressive input
        ],
    )(
        init_p, cond_p,
        params["wz_T"], params["bz"],
        w1_ih_cur, w1_ih_cond, w1_hh, b1_ih, b1_hh,
        w2_ih, w2_hh, b2_ih, b2_hh,
        params["wout_T"], params["bout"],
    )

    # (T, B_pad, I) -> (B, T, I); tiny one-time transpose outside the kernel
    return jnp.transpose(out_tm, (1, 0, 2))[:B]


# ------------------------- pure-JAX reference ------------------------------ #
def decoder_reference(seq_len, init_hidden, cond, params, *, layers, hidden_size):
    H = hidden_size
    B = init_hidden.shape[0]

    def gru_cell(x, h, w_ih_T, w_hh_T, b_ih, b_hh):
        gi = x @ w_ih_T + b_ih
        gh = h @ w_hh_T + b_hh
        r = jax.nn.sigmoid(gi[:, :H] + gh[:, :H])
        z = jax.nn.sigmoid(gi[:, H:2 * H] + gh[:, H:2 * H])
        n = jnp.tanh(gi[:, 2 * H:] + r * gh[:, 2 * H:])
        return (1.0 - z) * n + z * h

    cur = init_hidden @ params["wz_T"] + params["bz"]
    hs = [jnp.zeros((B, H), jnp.float32) for _ in range(layers)]
    outs = []
    for t in range(seq_len):
        x = jnp.concatenate([cur, cond[:, t, :]], axis=1)
        hs[0] = gru_cell(x, hs[0], params["wih1_T"], params["whh1_T"],
                         params["bih1"], params["bhh1"])
        for l in range(1, layers):
            hs[l] = gru_cell(hs[l - 1], hs[l],
                             params["wih2_T"][l - 1], params["whh2_T"][l - 1],
                             params["bih2"][l - 1], params["bhh2"][l - 1])
        cur = jnp.tanh(hs[-1] @ params["wout_T"] + params["bout"])
        outs.append(cur)
    return jnp.stack(outs, 1)


# ------------------------------- main -------------------------------------- #
if __name__ == "__main__":
    # Small, module-consistent config.
    layers = 2
    input_size = 4       # time-series dims
    hidden_size = 32
    cond_size = 8
    rep_size = 16
    seq_len = 8
    B = 4
    H = hidden_size

    key = jax.random.PRNGKey(0)
    ks = jax.random.split(key, 16)

    def u(k, shape, bound):
        return jax.random.uniform(k, shape, jnp.float32, -bound, bound)

    bnd_h = 1.0 / np.sqrt(hidden_size)
    bnd_z = 1.0 / np.sqrt(rep_size)

    params = {
        # linear_z: (rep_size -> input_size), stored transposed
        "wz_T":   u(ks[0], (rep_size, input_size), bnd_z),
        "bz":     u(ks[1], (1, input_size), bnd_z),
        # GRU layer 1: input = input_size + cond_size
        "wih1_T": u(ks[2], (input_size + cond_size, 3 * H), bnd_h),
        "whh1_T": u(ks[3], (H, 3 * H), bnd_h),
        "bih1":   u(ks[4], (1, 3 * H), bnd_h),
        "bhh1":   u(ks[5], (1, 3 * H), bnd_h),
        # GRU layers 2..L (stacked)
        "wih2_T": u(ks[6], (layers - 1, H, 3 * H), bnd_h),
        "whh2_T": u(ks[7], (layers - 1, H, 3 * H), bnd_h),
        "bih2":   u(ks[8], (layers - 1, 1, 3 * H), bnd_h),
        "bhh2":   u(ks[9], (layers - 1, 1, 3 * H), bnd_h),
        # linear_out: (hidden_size -> input_size), stored transposed
        "wout_T": u(ks[10], (H, input_size), bnd_h),
        "bout":   u(ks[11], (1, input_size), bnd_h),
    }

    init_hidden = jax.random.normal(ks[12], (B, rep_size), jnp.float32)
    cond = jax.random.normal(ks[13], (B, seq_len, cond_size), jnp.float32)

    out = decoder_forward(seq_len, init_hidden, cond, params,
                          layers=layers, hidden_size=hidden_size)
    out = jax.block_until_ready(out)

    ref = decoder_reference(seq_len, init_hidden, cond, params,
                            layers=layers, hidden_size=hidden_size)
    ref = jax.block_until_ready(ref)

    assert out.shape == (B, seq_len, input_size)
    np.testing.assert_allclose(np.asarray(out), np.asarray(ref), rtol=1e-5, atol=1e-5)

    print("KERNEL_OK")
</pallas_src>

<mosaic_0001>
module attributes {stable_mosaic.version = 11 : i64} {
  func.func @_decoder_kernel(%arg0: memref<8x16xf32, #tpu.memory_space<vmem>>, %arg1: memref<8x8x8xf32, #tpu.memory_space<vmem>>, %arg2: memref<16x4xf32, #tpu.memory_space<vmem>>, %arg3: memref<1x4xf32, #tpu.memory_space<vmem>>, %arg4: memref<3x4x32xf32, #tpu.memory_space<vmem>>, %arg5: memref<3x8x32xf32, #tpu.memory_space<vmem>>, %arg6: memref<3x32x32xf32, #tpu.memory_space<vmem>>, %arg7: memref<3x1x32xf32, #tpu.memory_space<vmem>>, %arg8: memref<3x1x32xf32, #tpu.memory_space<vmem>>, %arg9: memref<3x32x32xf32, #tpu.memory_space<vmem>>, %arg10: memref<3x32x32xf32, #tpu.memory_space<vmem>>, %arg11: memref<3x1x32xf32, #tpu.memory_space<vmem>>, %arg12: memref<3x1x32xf32, #tpu.memory_space<vmem>>, %arg13: memref<32x4xf32, #tpu.memory_space<vmem>>, %arg14: memref<1x4xf32, #tpu.memory_space<vmem>>, %arg15: memref<8x8x4xf32, #tpu.memory_space<vmem>>, %arg16: memref<2x8x32xf32, #tpu.memory_space<vmem>>, %arg17: memref<8x4xf32, #tpu.memory_space<vmem>>) attributes {dimension_semantics = [], scalar_prefetch = 0 : i64, scratch_operands = 2 : i64, tpu.core_type = #tpu.core_type<tc>} {
    %c0 = arith.constant 0 : index
    %c0_0 = arith.constant 0 : index
    %c0_1 = arith.constant 0 : index
    %0 = vector.load %arg4[%c0, %c0_0, %c0_1] : memref<3x4x32xf32, #tpu.memory_space<vmem>>, vector<1x4x32xf32>
    %1 = vector.shape_cast %0 : vector<1x4x32xf32> to vector<4x32xf32>
    %c1 = arith.constant 1 : index
    %c0_2 = arith.constant 0 : index
    %c0_3 = arith.constant 0 : index
    %2 = vector.load %arg4[%c1, %c0_2, %c0_3] : memref<3x4x32xf32, #tpu.memory_space<vmem>>, vector<1x4x32xf32>
    %3 = vector.shape_cast %2 : vector<1x4x32xf32> to vector<4x32xf32>
    %c2 = arith.constant 2 : index
    %c0_4 = arith.constant 0 : index
    %c0_5 = arith.constant 0 : index
    %4 = vector.load %arg4[%c2, %c0_4, %c0_5] : memref<3x4x32xf32, #tpu.memory_space<vmem>>, vector<1x4x32xf32>
    %5 = vector.shape_cast %4 : vector<1x4x32xf32> to vector<4x32xf32>
    %c0_6 = arith.constant 0 : index
    %c0_7 = arith.constant 0 : index
    %c0_8 = arith.constant 0 : index
    %6 = vector.load %arg5[%c0_6, %c0_7, %c0_8] : memref<3x8x32xf32, #tpu.memory_space<vmem>>, vector<1x8x32xf32>
    %7 = vector.shape_cast %6 : vector<1x8x32xf32> to vector<8x32xf32>
    %c1_9 = arith.constant 1 : index
    %c0_10 = arith.constant 0 : index
    %c0_11 = arith.constant 0 : index
    %8 = vector.load %arg5[%c1_9, %c0_10, %c0_11] : memref<3x8x32xf32, #tpu.memory_space<vmem>>, vector<1x8x32xf32>
    %9 = vector.shape_cast %8 : vector<1x8x32xf32> to vector<8x32xf32>
    %c2_12 = arith.constant 2 : index
    %c0_13 = arith.constant 0 : index
    %c0_14 = arith.constant 0 : index
    %10 = vector.load %arg5[%c2_12, %c0_13, %c0_14] : memref<3x8x32xf32, #tpu.memory_space<vmem>>, vector<1x8x32xf32>
    %11 = vector.shape_cast %10 : vector<1x8x32xf32> to vector<8x32xf32>
    %c0_15 = arith.constant 0 : index
    %c0_16 = arith.constant 0 : index
    %c0_17 = arith.constant 0 : index
    %12 = vector.load %arg6[%c0_15, %c0_16, %c0_17] : memref<3x32x32xf32, #tpu.memory_space<vmem>>, vector<1x32x32xf32>
    %13 = vector.shape_cast %12 : vector<1x32x32xf32> to vector<32x32xf32>
    %c1_18 = arith.constant 1 : index
    %c0_19 = arith.constant 0 : index
    %c0_20 = arith.constant 0 : index
    %14 = vector.load %arg6[%c1_18, %c0_19, %c0_20] : memref<3x32x32xf32, #tpu.memory_space<vmem>>, vector<1x32x32xf32>
    %15 = vector.shape_cast %14 : vector<1x32x32xf32> to vector<32x32xf32>
    %c2_21 = arith.constant 2 : index
    %c0_22 = arith.constant 0 : index
    %c0_23 = arith.constant 0 : index
    %16 = vector.load %arg6[%c2_21, %c0_22, %c0_23] : memref<3x32x32xf32, #tpu.memory_space<vmem>>, vector<1x32x32xf32>
    %17 = vector.shape_cast %16 : vector<1x32x32xf32> to vector<32x32xf32>
    %c0_24 = arith.constant 0 : index
    %c0_25 = arith.constant 0 : index
    %c0_26 = arith.constant 0 : index
    %18 = vector.load %arg7[%c0_24, %c0_25, %c0_26] : memref<3x1x32xf32, #tpu.memory_space<vmem>>, vector<1x1x32xf32>
    %19 = vector.shape_cast %18 : vector<1x1x32xf32> to vector<1x32xf32>
    %c0_27 = arith.constant 0 : index
    %c0_28 = arith.constant 0 : index
    %c0_29 = arith.constant 0 : index
    %20 = vector.load %arg8[%c0_27, %c0_28, %c0_29] : memref<3x1x32xf32, #tpu.memory_space<vmem>>, vector<1x1x32xf32>
    %21 = vector.shape_cast %20 : vector<1x1x32xf32> to vector<1x32xf32>
    %22 = arith.addf %19, %21 : vector<1x32xf32>
    %23 = vector.shape_cast %22 : vector<1x32xf32> to vector<1x32xf32>
    %24 = vector.broadcast %23 : vector<1x32xf32> to vector<8x32xf32>
    %c1_30 = arith.constant 1 : index
    %c0_31 = arith.constant 0 : index
    %c0_32 = arith.constant 0 : index
    %25 = vector.load %arg7[%c1_30, %c0_31, %c0_32] : memref<3x1x32xf32, #tpu.memory_space<vmem>>, vector<1x1x32xf32>
    %26 = vector.shape_cast %25 : vector<1x1x32xf32> to vector<1x32xf32>
    %c1_33 = arith.constant 1 : index
    %c0_34 = arith.constant 0 : index
    %c0_35 = arith.constant 0 : index
    %27 = vector.load %arg8[%c1_33, %c0_34, %c0_35] : memref<3x1x32xf32, #tpu.memory_space<vmem>>, vector<1x1x32xf32>
    %28 = vector.shape_cast %27 : vector<1x1x32xf32> to vector<1x32xf32>
    %29 = arith.addf %26, %28 : vector<1x32xf32>
    %30 = vector.shape_cast %29 : vector<1x32xf32> to vector<1x32xf32>
    %31 = vector.broadcast %30 : vector<1x32xf32> to vector<8x32xf32>
    %c2_36 = arith.constant 2 : index
    %c0_37 = arith.constant 0 : index
    %c0_38 = arith.constant 0 : index
    %32 = vector.load %arg7[%c2_36, %c0_37, %c0_38] : memref<3x1x32xf32, #tpu.memory_space<vmem>>, vector<1x1x32xf32>
    %33 = vector.shape_cast %32 : vector<1x1x32xf32> to vector<1x32xf32>
    %34 = vector.shape_cast %33 : vector<1x32xf32> to vector<1x32xf32>
    %35 = vector.broadcast %34 : vector<1x32xf32> to vector<8x32xf32>
    %c2_39 = arith.constant 2 : index
    %c0_40 = arith.constant 0 : index
    %c0_41 = arith.constant 0 : index
    %36 = vector.load %arg8[%c2_39, %c0_40, %c0_41] : memref<3x1x32xf32, #tpu.memory_space<vmem>>, vector<1x1x32xf32>
    %37 = vector.shape_cast %36 : vector<1x1x32xf32> to vector<1x32xf32>
    %38 = vector.shape_cast %37 : vector<1x32xf32> to vector<1x32xf32>
    %39 = vector.broadcast %38 : vector<1x32xf32> to vector<8x32xf32>
    %c0_42 = arith.constant 0 : index
    %c0_43 = arith.constant 0 : index
    %c0_44 = arith.constant 0 : index
    %40 = vector.load %arg9[%c0_42, %c0_43, %c0_44] : memref<3x32x32xf32, #tpu.memory_space<vmem>>, vector<1x32x32xf32>
    %41 = vector.shape_cast %40 : vector<1x32x32xf32> to vector<32x32xf32>
    %c1_45 = arith.constant 1 : index
    %c0_46 = arith.constant 0 : index
    %c0_47 = arith.constant 0 : index
    %42 = vector.load %arg9[%c1_45, %c0_46, %c0_47] : memref<3x32x32xf32, #tpu.memory_space<vmem>>, vector<1x32x32xf32>
    %43 = vector.shape_cast %42 : vector<1x32x32xf32> to vector<32x32xf32>
    %c2_48 = arith.constant 2 : index
    %c0_49 = arith.constant 0 : index
    %c0_50 = arith.constant 0 : index
    %44 = vector.load %arg9[%c2_48, %c0_49, %c0_50] : memref<3x32x32xf32, #tpu.memory_space<vmem>>, vector<1x32x32xf32>
    %45 = vector.shape_cast %44 : vector<1x32x32xf32> to vector<32x32xf32>
    %c0_51 = arith.constant 0 : index
    %c0_52 = arith.constant 0 : index
    %c0_53 = arith.constant 0 : index
    %46 = vector.load %arg10[%c0_51, %c0_52, %c0_53] : memref<3x32x32xf32, #tpu.memory_space<vmem>>, vector<1x32x32xf32>
    %47 = vector.shape_cast %46 : vector<1x32x32xf32> to vector<32x32xf32>
    %c1_54 = arith.constant 1 : index
    %c0_55 = arith.constant 0 : index
    %c0_56 = arith.constant 0 : index
    %48 = vector.load %arg10[%c1_54, %c0_55, %c0_56] : memref<3x32x32xf32, #tpu.memory_space<vmem>>, vector<1x32x32xf32>
    %49 = vector.shape_cast %48 : vector<1x32x32xf32> to vector<32x32xf32>
    %c2_57 = arith.constant 2 : index
    %c0_58 = arith.constant 0 : index
    %c0_59 = arith.constant 0 : index
    %50 = vector.load %arg10[%c2_57, %c0_58, %c0_59] : memref<3x32x32xf32, #tpu.memory_space<vmem>>, vector<1x32x32xf32>
    %51 = vector.shape_cast %50 : vector<1x32x32xf32> to vector<32x32xf32>
    %c0_60 = arith.constant 0 : index
    %c0_61 = arith.constant 0 : index
    %c0_62 = arith.constant 0 : index
    %52 = vector.load %arg11[%c0_60, %c0_61, %c0_62] : memref<3x1x32xf32, #tpu.memory_space<vmem>>, vector<1x1x32xf32>
    %53 = vector.shape_cast %52 : vector<1x1x32xf32> to vector<1x32xf32>
    %c0_63 = arith.constant 0 : index
    %c0_64 = arith.constant 0 : index
    %c0_65 = arith.constant 0 : index
    %54 = vector.load %arg12[%c0_63, %c0_64, %c0_65] : memref<3x1x32xf32, #tpu.memory_space<vmem>>, vector<1x1x32xf32>
    %55 = vector.shape_cast %54 : vector<1x1x32xf32> to vector<1x32xf32>
    %56 = arith.addf %53, %55 : vector<1x32xf32>
    %57 = vector.shape_cast %56 : vector<1x32xf32> to vector<1x32xf32>
    %58 = vector.broadcast %57 : vector<1x32xf32> to vector<8x32xf32>
    %c1_66 = arith.constant 1 : index
    %c0_67 = arith.constant 0 : index
    %c0_68 = arith.constant 0 : index
    %59 = vector.load %arg11[%c1_66, %c0_67, %c0_68] : memref<3x1x32xf32, #tpu.memory_space<vmem>>, vector<1x1x32xf32>
    %60 = vector.shape_cast %59 : vector<1x1x32xf32> to vector<1x32xf32>
    %c1_69 = arith.constant 1 : index
    %c0_70 = arith.constant 0 : index
    %c0_71 = arith.constant 0 : index
    %61 = vector.load %arg12[%c1_69, %c0_70, %c0_71] : memref<3x1x32xf32, #tpu.memory_space<vmem>>, vector<1x1x32xf32>
    %62 = vector.shape_cast %61 : vector<1x1x32xf32> to vector<1x32xf32>
    %63 = arith.addf %60, %62 : vector<1x32xf32>
    %64 = vector.shape_cast %63 : vector<1x32xf32> to vector<1x32xf32>
    %65 = vector.broadcast %64 : vector<1x32xf32> to vector<8x32xf32>
    %c2_72 = arith.constant 2 : index
    %c0_73 = arith.constant 0 : index
    %c0_74 = arith.constant 0 : index
    %66 = vector.load %arg11[%c2_72, %c0_73, %c0_74] : memref<3x1x32xf32, #tpu.memory_space<vmem>>, vector<1x1x32xf32>
    %67 = vector.shape_cast %66 : vector<1x1x32xf32> to vector<1x32xf32>
    %68 = vector.shape_cast %67 : vector<1x32xf32> to vector<1x32xf32>
    %69 = vector.broadcast %68 : vector<1x32xf32> to vector<8x32xf32>
    %c2_75 = arith.constant 2 : index
    %c0_76 = arith.constant 0 : index
    %c0_77 = arith.constant 0 : index
    %70 = vector.load %arg12[%c2_75, %c0_76, %c0_77] : memref<3x1x32xf32, #tpu.memory_space<vmem>>, vector<1x1x32xf32>
    %71 = vector.shape_cast %70 : vector<1x1x32xf32> to vector<1x32xf32>
    %72 = vector.shape_cast %71 : vector<1x32xf32> to vector<1x32xf32>
    %73 = vector.broadcast %72 : vector<1x32xf32> to vector<8x32xf32>
    %c0_78 = arith.constant 0 : index
    %c0_79 = arith.constant 0 : index
    %74 = vector.load %arg13[%c0_78, %c0_79] : memref<32x4xf32, #tpu.memory_space<vmem>>, vector<32x4xf32>
    %c0_80 = arith.constant 0 : index
    %c0_81 = arith.constant 0 : index
    %75 = vector.load %arg14[%c0_80, %c0_81] : memref<1x4xf32, #tpu.memory_space<vmem>>, vector<1x4xf32>
    %76 = vector.shape_cast %75 : vector<1x4xf32> to vector<1x4xf32>
    %77 = vector.broadcast %76 : vector<1x4xf32> to vector<8x4xf32>
    %cst = arith.constant 0.000000e+00 : f32
    %78 = vector.broadcast %cst : f32 to vector<2x8x32xf32>
    %c0_82 = arith.constant 0 : index
    %c0_83 = arith.constant 0 : index
    %c0_84 = arith.constant 0 : index
    %79 = vector.load %arg16[%c0_82, %c0_83, %c0_84] : memref<2x8x32xf32, #tpu.memory_space<vmem>>, vector<2x8x32xf32>
    tpu.vector_store %arg16[%c0_82, %c0_83, %c0_84], %78 {strides = array<i32>} : memref<2x8x32xf32, #tpu.memory_space<vmem>>, vector<2x8x32xf32>,
    %c0_85 = arith.constant 0 : index
    %c0_86 = arith.constant 0 : index
    %80 = vector.load %arg0[%c0_85, %c0_86] : memref<8x16xf32, #tpu.memory_space<vmem>>, vector<8x16xf32>
    %c0_87 = arith.constant 0 : index
    %c0_88 = arith.constant 0 : index
    %81 = vector.load %arg2[%c0_87, %c0_88] : memref<16x4xf32, #tpu.memory_space<vmem>>, vector<16x4xf32>
    %cst_89 = arith.constant dense<0.000000e+00> : vector<8x4xf32>
    %82 = tpu.matmul %80, %81, %cst_89 {dimension_numbers = #tpu.dot_dimension_numbers<[1], [0], [0], [1], [0, 0, 1, 1], [], []>} : vector<8x16xf32>, vector<16x4xf32>, vector<8x4xf32> -> vector<8x4xf32>
    %c0_90 = arith.constant 0 : index
    %c0_91 = arith.constant 0 : index
    %83 = vector.load %arg3[%c0_90, %c0_91] : memref<1x4xf32, #tpu.memory_space<vmem>>, vector<1x4xf32>
    %84 = vector.broadcast %83 : vector<1x4xf32> to vector<8x4xf32>
    %85 = arith.addf %82, %84 : vector<8x4xf32>
    %c0_92 = arith.constant 0 : index
    %c0_93 = arith.constant 0 : index
    %86 = vector.load %arg17[%c0_92, %c0_93] : memref<8x4xf32, #tpu.memory_space<vmem>>, vector<8x4xf32>
    tpu.vector_store %arg17[%c0_92, %c0_93], %85 {strides = array<i32>} : memref<8x4xf32, #tpu.memory_space<vmem>>, vector<8x4xf32>,
    %c0_94 = arith.constant 0 : index
    %c0_95 = arith.constant 0 : index
    %87 = vector.load %arg17[%c0_94, %c0_95] : memref<8x4xf32, #tpu.memory_space<vmem>>, vector<8x4xf32>
    %c0_96 = arith.constant 0 : index
    %c0_97 = arith.constant 0 : index
    %c0_98 = arith.constant 0 : index
    %88 = vector.load %arg1[%c0_96, %c0_97, %c0_98] : memref<8x8x8xf32, #tpu.memory_space<vmem>>, vector<1x8x8xf32>
    %89 = vector.shape_cast %88 : vector<1x8x8xf32> to vector<8x8xf32>
    %c0_99 = arith.constant 0 : index
    %c0_100 = arith.constant 0 : index
    %c0_101 = arith.constant 0 : index
    %90 = vector.load %arg16[%c0_99, %c0_100, %c0_101] : memref<2x8x32xf32, #tpu.memory_space<vmem>>, vector<1x8x32xf32>
    %91 = vector.shape_cast %90 : vector<1x8x32xf32> to vector<8x32xf32>
    %cst_102 = arith.constant dense<0.000000e+00> : vector<8x32xf32>
    %92 = tpu.matmul %87, %1, %cst_102 {dimension_numbers = #tpu.dot_dimension_numbers<[1], [0], [0], [1], [0, 0, 1, 1], [], []>} : vector<8x4xf32>, vector<4x32xf32>, vector<8x32xf32> -> vector<8x32xf32>
    %cst_103 = arith.constant dense<0.000000e+00> : vector<8x32xf32>
    %93 = tpu.matmul %89, %7, %cst_103 {dimension_numbers = #tpu.dot_dimension_numbers<[1], [0], [0], [1], [0, 0, 1, 1], [], []>} : vector<8x8xf32>, vector<8x32xf32>, vector<8x32xf32> -> vector<8x32xf32>
    %94 = arith.addf %92, %93 : vector<8x32xf32>
    %cst_104 = arith.constant dense<0.000000e+00> : vector<8x32xf32>
    %95 = tpu.matmul %91, %13, %cst_104 {dimension_numbers = #tpu.dot_dimension_numbers<[1], [0], [0], [1], [0, 0, 1, 1], [], []>} : vector<8x32xf32>, vector<32x32xf32>, vector<8x32xf32> -> vector<8x32xf32>
    %96 = arith.addf %94, %95 : vector<8x32xf32>
    %97 = arith.addf %96, %24 : vector<8x32xf32>
    %98 = arith.negf %97 : vector<8x32xf32>
    %99 = math.exp %98 : vector<8x32xf32>
    %cst_105 = arith.constant 1.000000e+00 : f32
    %100 = vector.broadcast %cst_105 : f32 to vector<8x32xf32>
    %101 = arith.addf %100, %99 : vector<8x32xf32>
    %102 = arith.divf %100, %101 : vector<8x32xf32>
    %cst_106 = arith.constant dense<0.000000e+00> : vector<8x32xf32>
    %103 = tpu.matmul %87, %3, %cst_106 {dimension_numbers = #tpu.dot_dimension_numbers<[1], [0], [0], [1], [0, 0, 1, 1], [], []>} : vector<8x4xf32>, vector<4x32xf32>, vector<8x32xf32> -> vector<8x32xf32>
    %cst_107 = arith.constant dense<0.000000e+00> : vector<8x32xf32>
    %104 = tpu.matmul %89, %9, %cst_107 {dimension_numbers = #tpu.dot_dimension_numbers<[1], [0], [0], [1], [0, 0, 1, 1], [], []>} : vector<8x8xf32>, vector<8x32xf32>, vector<8x32xf32> -> vector<8x32xf32>
    %105 = arith.addf %103, %104 : vector<8x32xf32>
    %cst_108 = arith.constant dense<0.000000e+00> : vector<8x32xf32>
    %106 = tpu.matmul %91, %15, %cst_108 {dimension_numbers = #tpu.dot_dimension_numbers<[1], [0], [0], [1], [0, 0, 1, 1], [], []>} : vector<8x32xf32>, vector<32x32xf32>, vector<8x32xf32> -> vector<8x32xf32>
    %107 = arith.addf %105, %106 : vector<8x32xf32>
    %108 = arith.addf %107, %31 : vector<8x32xf32>
    %109 = arith.negf %108 : vector<8x32xf32>
    %110 = math.exp %109 : vector<8x32xf32>
    %cst_109 = arith.constant 1.000000e+00 : f32
    %111 = vector.broadcast %cst_109 : f32 to vector<8x32xf32>
    %112 = arith.addf %111, %110 : vector<8x32xf32>
    %113 = arith.divf %111, %112 : vector<8x32xf32>
    %cst_110 = arith.constant dense<0.000000e+00> : vector<8x32xf32>
    %114 = tpu.matmul %87, %5, %cst_110 {dimension_numbers = #tpu.dot_dimension_numbers<[1], [0], [0], [1], [0, 0, 1, 1], [], []>} : vector<8x4xf32>, vector<4x32xf32>, vector<8x32xf32> -> vector<8x32xf32>
    %cst_111 = arith.constant dense<0.000000e+00> : vector<8x32xf32>
    %115 = tpu.matmul %89, %11, %cst_111 {dimension_numbers = #tpu.dot_dimension_numbers<[1], [0], [0], [1], [0, 0, 1, 1], [], []>} : vector<8x8xf32>, vector<8x32xf32>, vector<8x32xf32> -> vector<8x32xf32>
    %116 = arith.addf %114, %115 : vector<8x32xf32>
    %117 = arith.addf %116, %35 : vector<8x32xf32>
    %cst_112 = arith.constant dense<0.000000e+00> : vector<8x32xf32>
    %118 = tpu.matmul %91, %17, %cst_112 {dimension_numbers = #tpu.dot_dimension_numbers<[1], [0], [0], [1], [0, 0, 1, 1], [], []>} : vector<8x32xf32>, vector<32x32xf32>, vector<8x32xf32> -> vector<8x32xf32>
    %119 = arith.addf %118, %39 : vector<8x32xf32>
    %120 = arith.mulf %102, %119 : vector<8x32xf32>
    %121 = arith.addf %117, %120 : vector<8x32xf32>
    %122 = math.tanh %121 : vector<8x32xf32>
    %cst_113 = arith.constant 1.000000e+00 : f32
    %123 = vector.broadcast %cst_113 : f32 to vector<8x32xf32>
    %124 = arith.subf %123, %113 : vector<8x32xf32>
    %125 = arith.mulf %124, %122 : vector<8x32xf32>
    %126 = arith.mulf %113, %91 : vector<8x32xf32>
    %127 = arith.addf %125, %126 : vector<8x32xf32>
    %c0_114 = arith.constant 0 : index
    %c0_115 = arith.constant 0 : index
    %c0_116 = arith.constant 0 : index
    %128 = vector.load %arg16[%c0_114, %c0_115, %c0_116] : memref<2x8x32xf32, #tpu.memory_space<vmem>>, vector<1x8x32xf32>
    %129 = vector.shape_cast %128 : vector<1x8x32xf32> to vector<8x32xf32>
    %130 = vector.shape_cast %127 : vector<8x32xf32> to vector<1x8x32xf32>
    tpu.vector_store %arg16[%c0_114, %c0_115, %c0_116], %130 {strides = array<i32>} : memref<2x8x32xf32, #tpu.memory_space<vmem>>, vector<1x8x32xf32>,
    %c1_117 = arith.constant 1 : index
    %c0_118 = arith.constant 0 : index
    %c0_119 = arith.constant 0 : index
    %131 = vector.load %arg16[%c1_117, %c0_118, %c0_119] : memref<2x8x32xf32, #tpu.memory_space<vmem>>, vector<1x8x32xf32>
    %132 = vector.shape_cast %131 : vector<1x8x32xf32> to vector<8x32xf32>
    %cst_120 = arith.constant dense<0.000000e+00> : vector<8x32xf32>
    %133 = tpu.matmul %127, %41, %cst_120 {dimension_numbers = #tpu.dot_dimension_numbers<[1], [0], [0], [1], [0, 0, 1, 1], [], []>} : vector<8x32xf32>, vector<32x32xf32>, vector<8x32xf32> -> vector<8x32xf32>
    %cst_121 = arith.constant dense<0.000000e+00> : vector<8x32xf32>
    %134 = tpu.matmul %132, %47, %cst_121 {dimension_numbers = #tpu.dot_dimension_numbers<[1], [0], [0], [1], [0, 0, 1, 1], [], []>} : vector<8x32xf32>, vector<32x32xf32>, vector<8x32xf32> -> vector<8x32xf32>
    %135 = arith.addf %133, %134 : vector<8x32xf32>
    %136 = arith.addf %135, %58 : vector<8x32xf32>
    %137 = arith.negf %136 : vector<8x32xf32>
    %138 = math.exp %137 : vector<8x32xf32>
    %cst_122 = arith.constant 1.000000e+00 : f32
    %139 = vector.broadcast %cst_122 : f32 to vector<8x32xf32>
    %140 = arith.addf %139, %138 : vector<8x32xf32>
    %141 = arith.divf %139, %140 : vector<8x32xf32>
    %cst_123 = arith.constant dense<0.000000e+00> : vector<8x32xf32>
    %142 = tpu.matmul %127, %43, %cst_123 {dimension_numbers = #tpu.dot_dimension_numbers<[1], [0], [0], [1], [0, 0, 1, 1], [], []>} : vector<8x32xf32>, vector<32x32xf32>, vector<8x32xf32> -> vector<8x32xf32>
    %cst_124 = arith.constant dense<0.000000e+00> : vector<8x32xf32>
    %143 = tpu.matmul %132, %49, %cst_124 {dimension_numbers = #tpu.dot_dimension_numbers<[1], [0], [0], [1], [0, 0, 1, 1], [], []>} : vector<8x32xf32>, vector<32x32xf32>, vector<8x32xf32> -> vector<8x32xf32>
    %144 = arith.addf %142, %143 : vector<8x32xf32>
    %145 = arith.addf %144, %65 : vector<8x32xf32>
    %146 = arith.negf %145 : vector<8x32xf32>
    %147 = math.exp %146 : vector<8x32xf32>
    %cst_125 = arith.constant 1.000000e+00 : f32
    %148 = vector.broadcast %cst_125 : f32 to vector<8x32xf32>
    %149 = arith.addf %148, %147 : vector<8x32xf32>
    %150 = arith.divf %148, %149 : vector<8x32xf32>
    %cst_126 = arith.constant dense<0.000000e+00> : vector<8x32xf32>
    %151 = tpu.matmul %127, %45, %cst_126 {dimension_numbers = #tpu.dot_dimension_numbers<[1], [0], [0], [1], [0, 0, 1, 1], [], []>} : vector<8x32xf32>, vector<32x32xf32>, vector<8x32xf32> -> vector<8x32xf32>
    %152 = arith.addf %151, %69 : vector<8x32xf32>
    %cst_127 = arith.constant dense<0.000000e+00> : vector<8x32xf32>
    %153 = tpu.matmul %132, %51, %cst_127 {dimension_numbers = #tpu.dot_dimension_numbers<[1], [0], [0], [1], [0, 0, 1, 1], [], []>} : vector<8x32xf32>, vector<32x32xf32>, vector<8x32xf32> -> vector<8x32xf32>
    %154 = arith.addf %153, %73 : vector<8x32xf32>
    %155 = arith.mulf %141, %154 : vector<8x32xf32>
    %156 = arith.addf %152, %155 : vector<8x32xf32>
    %157 = math.tanh %156 : vector<8x32xf32>
    %cst_128 = arith.constant 1.000000e+00 : f32
    %158 = vector.broadcast %cst_128 : f32 to vector<8x32xf32>
    %159 = arith.subf %158, %150 : vector<8x32xf32>
    %160 = arith.mulf %159, %157 : vector<8x32xf32>
    %161 = arith.mulf %150, %132 : vector<8x32xf32>
    %162 = arith.addf %160, %161 : vector<8x32xf32>
    %c1_129 = arith.constant 1 : index
    %c0_130 = arith.constant 0 : index
    %c0_131 = arith.constant 0 : index
    %163 = vector.load %arg16[%c1_129, %c0_130, %c0_131] : memref<2x8x32xf32, #tpu.memory_space<vmem>>, vector<1x8x32xf32>
    %164 = vector.shape_cast %163 : vector<1x8x32xf32> to vector<8x32xf32>
    %165 = vector.shape_cast %162 : vector<8x32xf32> to vector<1x8x32xf32>
    tpu.vector_store %arg16[%c1_129, %c0_130, %c0_131], %165 {strides = array<i32>} : memref<2x8x32xf32, #tpu.memory_space<vmem>>, vector<1x8x32xf32>,
    %cst_132 = arith.constant dense<0.000000e+00> : vector<8x4xf32>
    %166 = tpu.matmul %162, %74, %cst_132 {dimension_numbers = #tpu.dot_dimension_numbers<[1], [0], [0], [1], [0, 0, 1, 1], [], []>} : vector<8x32xf32>, vector<32x4xf32>, vector<8x4xf32> -> vector<8x4xf32>
    %167 = arith.addf %166, %77 : vector<8x4xf32>
    %168 = math.tanh %167 : vector<8x4xf32>
    %c0_133 = arith.constant 0 : index
    %c0_134 = arith.constant 0 : index
    %169 = vector.load %arg17[%c0_133, %c0_134] : memref<8x4xf32, #tpu.memory_space<vmem>>, vector<8x4xf32>
    tpu.vector_store %arg17[%c0_133, %c0_134], %168 {strides = array<i32>} : memref<8x4xf32, #tpu.memory_space<vmem>>, vector<8x4xf32>,
    %c0_135 = arith.constant 0 : index
    %c0_136 = arith.constant 0 : index
    %c0_137 = arith.constant 0 : index
    %170 = vector.load %arg15[%c0_135, %c0_136, %c0_137] : memref<8x8x4xf32, #tpu.memory_space<vmem>>, vector<1x8x4xf32>
    %171 = vector.shape_cast %170 : vector<1x8x4xf32> to vector<8x4xf32>
    %172 = vector.shape_cast %168 : vector<8x4xf32> to vector<1x8x4xf32>
    tpu.vector_store %arg15[%c0_135, %c0_136, %c0_137], %172 {strides = array<i32>} : memref<8x8x4xf32, #tpu.memory_space<vmem>>, vector<1x8x4xf32>,
    %c0_138 = arith.constant 0 : index
    %c0_139 = arith.constant 0 : index
    %173 = vector.load %arg17[%c0_138, %c0_139] : memref<8x4xf32, #tpu.memory_space<vmem>>, vector<8x4xf32>
    %c1_140 = arith.constant 1 : index
    %c0_141 = arith.constant 0 : index
    %c0_142 = arith.constant 0 : index
    %174 = vector.load %arg1[%c1_140, %c0_141, %c0_142] : memref<8x8x8xf32, #tpu.memory_space<vmem>>, vector<1x8x8xf32>
    %175 = vector.shape_cast %174 : vector<1x8x8xf32> to vector<8x8xf32>
    %c0_143 = arith.constant 0 : index
    %c0_144 = arith.constant 0 : index
    %c0_145 = arith.constant 0 : index
    %176 = vector.load %arg16[%c0_143, %c0_144, %c0_145] : memref<2x8x32xf32, #tpu.memory_space<vmem>>, vector<1x8x32xf32>
    %177 = vector.shape_cast %176 : vector<1x8x32xf32> to vector<8x32xf32>
    %cst_146 = arith.constant dense<0.000000e+00> : vector<8x32xf32>
    %178 = tpu.matmul %173, %1, %cst_146 {dimension_numbers = #tpu.dot_dimension_numbers<[1], [0], [0], [1], [0, 0, 1, 1], [], []>} : vector<8x4xf32>, vector<4x32xf32>, vector<8x32xf32> -> vector<8x32xf32>
    %cst_147 = arith.constant dense<0.000000e+00> : vector<8x32xf32>
    %179 = tpu.matmul %175, %7, %cst_147 {dimension_numbers = #tpu.dot_dimension_numbers<[1], [0], [0], [1], [0, 0, 1, 1], [], []>} : vector<8x8xf32>, vector<8x32xf32>, vector<8x32xf32> -> vector<8x32xf32>
    %180 = arith.addf %178, %179 : vector<8x32xf32>
    %cst_148 = arith.constant dense<0.000000e+00> : vector<8x32xf32>
    %181 = tpu.matmul %177, %13, %cst_148 {dimension_numbers = #tpu.dot_dimension_numbers<[1], [0], [0], [1], [0, 0, 1, 1], [], []>} : vector<8x32xf32>, vector<32x32xf32>, vector<8x32xf32> -> vector<8x32xf32>
    %182 = arith.addf %180, %181 : vector<8x32xf32>
    %183 = arith.addf %182, %24 : vector<8x32xf32>
    %184 = arith.negf %183 : vector<8x32xf32>
    %185 = math.exp %184 : vector<8x32xf32>
    %cst_149 = arith.constant 1.000000e+00 : f32
    %186 = vector.broadcast %cst_149 : f32 to vector<8x32xf32>
    %187 = arith.addf %186, %185 : vector<8x32xf32>
    %188 = arith.divf %186, %187 : vector<8x32xf32>
    %cst_150 = arith.constant dense<0.000000e+00> : vector<8x32xf32>
    %189 = tpu.matmul %173, %3, %cst_150 {dimension_numbers = #tpu.dot_dimension_numbers<[1], [0], [0], [1], [0, 0, 1, 1], [], []>} : vector<8x4xf32>, vector<4x32xf32>, vector<8x32xf32> -> vector<8x32xf32>
    %cst_151 = arith.constant dense<0.000000e+00> : vector<8x32xf32>
    %190 = tpu.matmul %175, %9, %cst_151 {dimension_numbers = #tpu.dot_dimension_numbers<[1], [0], [0], [1], [0, 0, 1, 1], [], []>} : vector<8x8xf32>, vector<8x32xf32>, vector<8x32xf32> -> vector<8x32xf32>
    %191 = arith.addf %189, %190 : vector<8x32xf32>
    %cst_152 = arith.constant dense<0.000000e+00> : vector<8x32xf32>
    %192 = tpu.matmul %177, %15, %cst_152 {dimension_numbers = #tpu.dot_dimension_numbers<[1], [0], [0], [1], [0, 0, 1, 1], [], []>} : vector<8x32xf32>, vector<32x32xf32>, vector<8x32xf32> -> vector<8x32xf32>
    %193 = arith.addf %191, %192 : vector<8x32xf32>
    %194 = arith.addf %193, %31 : vector<8x32xf32>
    %195 = arith.negf %194 : vector<8x32xf32>
    %196 = math.exp %195 : vector<8x32xf32>
    %cst_153 = arith.constant 1.000000e+00 : f32
    %197 = vector.broadcast %cst_153 : f32 to vector<8x32xf32>
    %198 = arith.addf %197, %196 : vector<8x32xf32>
    %199 = arith.divf %197, %198 : vector<8x32xf32>
    %cst_154 = arith.constant dense<0.000000e+00> : vector<8x32xf32>
    %200 = tpu.matmul %173, %5, %cst_154 {dimension_numbers = #tpu.dot_dimension_numbers<[1], [0], [0], [1], [0, 0, 1, 1], [], []>} : vector<8x4xf32>, vector<4x32xf32>, vector<8x32xf32> -> vector<8x32xf32>
    %cst_155 = arith.constant dense<0.000000e+00> : vector<8x32xf32>
    %201 = tpu.matmul %175, %11, %cst_155 {dimension_numbers = #tpu.dot_dimension_numbers<[1], [0], [0], [1], [0, 0, 1, 1], [], []>} : vector<8x8xf32>, vector<8x32xf32>, vector<8x32xf32> -> vector<8x32xf32>
    %202 = arith.addf %200, %201 : vector<8x32xf32>
    %203 = arith.addf %202, %35 : vector<8x32xf32>
    %cst_156 = arith.constant dense<0.000000e+00> : vector<8x32xf32>
    %204 = tpu.matmul %177, %17, %cst_156 {dimension_numbers = #tpu.dot_dimension_numbers<[1], [0], [0], [1], [0, 0, 1, 1], [], []>} : vector<8x32xf32>, vector<32x32xf32>, vector<8x32xf32> -> vector<8x32xf32>
    %205 = arith.addf %204, %39 : vector<8x32xf32>
    %206 = arith.mulf %188, %205 : vector<8x32xf32>
    %207 = arith.addf %203, %206 : vector<8x32xf32>
    %208 = math.tanh %207 : vector<8x32xf32>
    %cst_157 = arith.constant 1.000000e+00 : f32
    %209 = vector.broadcast %cst_157 : f32 to vector<8x32xf32>
    %210 = arith.subf %209, %199 : vector<8x32xf32>
    %211 = arith.mulf %210, %208 : vector<8x32xf32>
    %212 = arith.mulf %199, %177 : vector<8x32xf32>
    %213 = arith.addf %211, %212 : vector<8x32xf32>
    %c0_158 = arith.constant 0 : index
    %c0_159 = arith.constant 0 : index
    %c0_160 = arith.constant 0 : index
    %214 = vector.load %arg16[%c0_158, %c0_159, %c0_160] : memref<2x8x32xf32, #tpu.memory_space<vmem>>, vector<1x8x32xf32>
    %215 = vector.shape_cast %214 : vector<1x8x32xf32> to vector<8x32xf32>
    %216 = vector.shape_cast %213 : vector<8x32xf32> to vector<1x8x32xf32>
    tpu.vector_store %arg16[%c0_158, %c0_159, %c0_160], %216 {strides = array<i32>} : memref<2x8x32xf32, #tpu.memory_space<vmem>>, vector<1x8x32xf32>,
    %c1_161 = arith.constant 1 : index
    %c0_162 = arith.constant 0 : index
    %c0_163 = arith.constant 0 : index
    %217 = vector.load %arg16[%c1_161, %c0_162, %c0_163] : memref<2x8x32xf32, #tpu.memory_space<vmem>>, vector<1x8x32xf32>
    %218 = vector.shape_cast %217 : vector<1x8x32xf32> to vector<8x32xf32>
    %cst_164 = arith.constant dense<0.000000e+00> : vector<8x32xf32>
    %219 = tpu.matmul %213, %41, %cst_164 {dimension_numbers = #tpu.dot_dimension_numbers<[1], [0], [0], [1], [0, 0, 1, 1], [], []>} : vector<8x32xf32>, vector<32x32xf32>, vector<8x32xf32> -> vector<8x32xf32>
    %cst_165 = arith.constant dense<0.000000e+00> : vector<8x32xf32>
    %220 = tpu.matmul %218, %47, %cst_165 {dimension_numbers = #tpu.dot_dimension_numbers<[1], [0], [0], [1], [0, 0, 1, 1], [], []>} : vector<8x32xf32>, vector<32x32xf32>, vector<8x32xf32> -> vector<8x32xf32>
    %221 = arith.addf %219, %220 : vector<8x32xf32>
    %222 = arith.addf %221, %58 : vector<8x32xf32>
    %223 = arith.negf %222 : vector<8x32xf32>
    %224 = math.exp %223 : vector<8x32xf32>
    %cst_166 = arith.constant 1.000000e+00 : f32
    %225 = vector.broadcast %cst_166 : f32 to vector<8x32xf32>
    %226 = arith.addf %225, %224 : vector<8x32xf32>
    %227 = arith.divf %225, %226 : vector<8x32xf32>
    %cst_167 = arith.constant dense<0.000000e+00> : vector<8x32xf32>
    %228 = tpu.matmul %213, %43, %cst_167 {dimension_numbers = #tpu.dot_dimension_numbers<[1], [0], [0], [1], [0, 0, 1, 1], [], []>} : vector<8x32xf32>, vector<32x32xf32>, vector<8x32xf32> -> vector<8x32xf32>
    %cst_168 = arith.constant dense<0.000000e+00> : vector<8x32xf32>
    %229 = tpu.matmul %218, %49, %cst_168 {dimension_numbers = #tpu.dot_dimension_numbers<[1], [0], [0], [1], [0, 0, 1, 1], [], []>} : vector<8x32xf32>, vector<32x32xf32>, vector<8x32xf32> -> vector<8x32xf32>
    %230 = arith.addf %228, %229 : vector<8x32xf32>
    %231 = arith.addf %230, %65 : vector<8x32xf32>
    %232 = arith.negf %231 : vector<8x32xf32>
    %233 = math.exp %232 : vector<8x32xf32>
    %cst_169 = arith.constant 1.000000e+00 : f32
    %234 = vector.broadcast %cst_169 : f32 to vector<8x32xf32>
    %235 = arith.addf %234, %233 : vector<8x32xf32>
    %236 = arith.divf %234, %235 : vector<8x32xf32>
    %cst_170 = arith.constant dense<0.000000e+00> : vector<8x32xf32>
    %237 = tpu.matmul %213, %45, %cst_170 {dimension_numbers = #tpu.dot_dimension_numbers<[1], [0], [0], [1], [0, 0, 1, 1], [], []>} : vector<8x32xf32>, vector<32x32xf32>, vector<8x32xf32> -> vector<8x32xf32>
    %238 = arith.addf %237, %69 : vector<8x32xf32>
    %cst_171 = arith.constant dense<0.000000e+00> : vector<8x32xf32>
    %239 = tpu.matmul %218, %51, %cst_171 {dimension_numbers = #tpu.dot_dimension_numbers<[1], [0], [0], [1], [0, 0, 1, 1], [], []>} : vector<8x32xf32>, vector<32x32xf32>, vector<8x32xf32> -> vector<8x32xf32>
    %240 = arith.addf %239, %73 : vector<8x32xf32>
    %241 = arith.mulf %227, %240 : vector<8x32xf32>
    %242 = arith.addf %238, %241 : vector<8x32xf32>
    %243 = math.tanh %242 : vector<8x32xf32>
    %cst_172 = arith.constant 1.000000e+00 : f32
    %244 = vector.broadcast %cst_172 : f32 to vector<8x32xf32>
    %245 = arith.subf %244, %236 : vector<8x32xf32>
    %246 = arith.mulf %245, %243 : vector<8x32xf32>
    %247 = arith.mulf %236, %218 : vector<8x32xf32>
    %248 = arith.addf %246, %247 : vector<8x32xf32>
    %c1_173 = arith.constant 1 : index
    %c0_174 = arith.constant 0 : index
    %c0_175 = arith.constant 0 : index
    %249 = vector.load %arg16[%c1_173, %c0_174, %c0_175] : memref<2x8x32xf32, #tpu.memory_space<vmem>>, vector<1x8x32xf32>
    %250 = vector.shape_cast %249 : vector<1x8x32xf32> to vector<8x32xf32>
    %251 = vector.shape_cast %248 : vector<8x32xf32> to vector<1x8x32xf32>
    tpu.vector_store %arg16[%c1_173, %c0_174, %c0_175], %251 {strides = array<i32>} : memref<2x8x32xf32, #tpu.memory_space<vmem>>, vector<1x8x32xf32>,
    %cst_176 = arith.constant dense<0.000000e+00> : vector<8x4xf32>
    %252 = tpu.matmul %248, %74, %cst_176 {dimension_numbers = #tpu.dot_dimension_numbers<[1], [0], [0], [1], [0, 0, 1, 1], [], []>} : vector<8x32xf32>, vector<32x4xf32>, vector<8x4xf32> -> vector<8x4xf32>
    %253 = arith.addf %252, %77 : vector<8x4xf32>
    %254 = math.tanh %253 : vector<8x4xf32>
    %c0_177 = arith.constant 0 : index
    %c0_178 = arith.constant 0 : index
    %255 = vector.load %arg17[%c0_177, %c0_178] : memref<8x4xf32, #tpu.memory_space<vmem>>, vector<8x4xf32>
    tpu.vector_store %arg17[%c0_177, %c0_178], %254 {strides = array<i32>} : memref<8x4xf32, #tpu.memory_space<vmem>>, vector<8x4xf32>,
    %c1_179 = arith.constant 1 : index
    %c0_180 = arith.constant 0 : index
    %c0_181 = arith.constant 0 : index
    %256 = vector.load %arg15[%c1_179, %c0_180, %c0_181] : memref<8x8x4xf32, #tpu.memory_space<vmem>>, vector<1x8x4xf32>
    %257 = vector.shape_cast %256 : vector<1x8x4xf32> to vector<8x4xf32>
    %258 = vector.shape_cast %254 : vector<8x4xf32> to vector<1x8x4xf32>
    tpu.vector_store %arg15[%c1_179, %c0_180, %c0_181], %258 {strides = array<i32>} : memref<8x8x4xf32, #tpu.memory_space<vmem>>, vector<1x8x4xf32>,
    %c0_182 = arith.constant 0 : index
    %c0_183 = arith.constant 0 : index
    %259 = vector.load %arg17[%c0_182, %c0_183] : memref<8x4xf32, #tpu.memory_space<vmem>>, vector<8x4xf32>
    %c2_184 = arith.constant 2 : index
    %c0_185 = arith.constant 0 : index
    %c0_186 = arith.constant 0 : index
    %260 = vector.load %arg1[%c2_184, %c0_185, %c0_186] : memref<8x8x8xf32, #tpu.memory_space<vmem>>, vector<1x8x8xf32>
    %261 = vector.shape_cast %260 : vector<1x8x8xf32> to vector<8x8xf32>
    %c0_187 = arith.constant 0 : index
    %c0_188 = arith.constant 0 : index
    %c0_189 = arith.constant 0 : index
    %262 = vector.load %arg16[%c0_187, %c0_188, %c0_189] : memref<2x8x32xf32, #tpu.memory_space<vmem>>, vector<1x8x32xf32>
    %263 = vector.shape_cast %262 : vector<1x8x32xf32> to vector<8x32xf32>
    %cst_190 = arith.constant dense<0.000000e+00> : vector<8x32xf32>
    %264 = tpu.matmul %259, %1, %cst_190 {dimension_numbers = #tpu.dot_dimension_numbers<[1], [0], [0], [1], [0, 0, 1, 1], [], []>} : vector<8x4xf32>, vector<4x32xf32>, vector<8x32xf32> -> vector<8x32xf32>
    %cst_191 = arith.constant dense<0.000000e+00> : vector<8x32xf32>
    %265 = tpu.matmul %261, %7, %cst_191 {dimension_numbers = #tpu.dot_dimension_numbers<[1], [0], [0], [1], [0, 0, 1, 1], [], []>} : vector<8x8xf32>, vector<8x32xf32>, vector<8x32xf32> -> vector<8x32xf32>
    %266 = arith.addf %264, %265 : vector<8x32xf32>
    %cst_192 = arith.constant dense<0.000000e+00> : vector<8x32xf32>
    %267 = tpu.matmul %263, %13, %cst_192 {dimension_numbers = #tpu.dot_dimension_numbers<[1], [0], [0], [1], [0, 0, 1, 1], [], []>} : vector<8x32xf32>, vector<32x32xf32>, vector<8x32xf32> -> vector<8x32xf32>
    %268 = arith.addf %266, %267 : vector<8x32xf32>
    %269 = arith.addf %268, %24 : vector<8x32xf32>
    %270 = arith.negf %269 : vector<8x32xf32>
    %271 = math.exp %270 : vector<8x32xf32>
    %cst_193 = arith.constant 1.000000e+00 : f32
    %272 = vector.broadcast %cst_193 : f32 to vector<8x32xf32>
    %273 = arith.addf %272, %271 : vector<8x32xf32>
    %274 = arith.divf %272, %273 : vector<8x32xf32>
    %cst_194 = arith.constant dense<0.000000e+00> : vector<8x32xf32>
    %275 = tpu.matmul %259, %3, %cst_194 {dimension_numbers = #tpu.dot_dimension_numbers<[1], [0], [0], [1], [0, 0, 1, 1], [], []>} : vector<8x4xf32>, vector<4x32xf32>, vector<8x32xf32> -> vector<8x32xf32>
    %cst_195 = arith.constant dense<0.000000e+00> : vector<8x32xf32>
    %276 = tpu.matmul %261, %9, %cst_195 {dimension_numbers = #tpu.dot_dimension_numbers<[1], [0], [0], [1], [0, 0, 1, 1], [], []>} : vector<8x8xf32>, vector<8x32xf32>, vector<8x32xf32> -> vector<8x32xf32>
    %277 = arith.addf %275, %276 : vector<8x32xf32>
    %cst_196 = arith.constant dense<0.000000e+00> : vector<8x32xf32>
    %278 = tpu.matmul %263, %15, %cst_196 {dimension_numbers = #tpu.dot_dimension_numbers<[1], [0], [0], [1], [0, 0, 1, 1], [], []>} : vector<8x32xf32>, vector<32x32xf32>, vector<8x32xf32> -> vector<8x32xf32>
    %279 = arith.addf %277, %278 : vector<8x32xf32>
    %280 = arith.addf %279, %31 : vector<8x32xf32>
    %281 = arith.negf %280 : vector<8x32xf32>
    %282 = math.exp %281 : vector<8x32xf32>
    %cst_197 = arith.constant 1.000000e+00 : f32
    %283 = vector.broadcast %cst_197 : f32 to vector<8x32xf32>
    %284 = arith.addf %283, %282 : vector<8x32xf32>
    %285 = arith.divf %283, %284 : vector<8x32xf32>
    %cst_198 = arith.constant dense<0.000000e+00> : vector<8x32xf32>
    %286 = tpu.matmul %259, %5, %cst_198 {dimension_numbers = #tpu.dot_dimension_numbers<[1], [0], [0], [1], [0, 0, 1, 1], [], []>} : vector<8x4xf32>, vector<4x32xf32>, vector<8x32xf32> -> vector<8x32xf32>
    %cst_199 = arith.constant dense<0.000000e+00> : vector<8x32xf32>
    %287 = tpu.matmul %261, %11, %cst_199 {dimension_numbers = #tpu.dot_dimension_numbers<[1], [0], [0], [1], [0, 0, 1, 1], [], []>} : vector<8x8xf32>, vector<8x32xf32>, vector<8x32xf32> -> vector<8x32xf32>
    %288 = arith.addf %286, %287 : vector<8x32xf32>
    %289 = arith.addf %288, %35 : vector<8x32xf32>
    %cst_200 = arith.constant dense<0.000000e+00> : vector<8x32xf32>
    %290 = tpu.matmul %263, %17, %cst_200 {dimension_numbers = #tpu.dot_dimension_numbers<[1], [0], [0], [1], [0, 0, 1, 1], [], []>} : vector<8x32xf32>, vector<32x32xf32>, vector<8x32xf32> -> vector<8x32xf32>
    %291 = arith.addf %290, %39 : vector<8x32xf32>
    %292 = arith.mulf %274, %291 : vector<8x32xf32>
    %293 = arith.addf %289, %292 : vector<8x32xf32>
    %294 = math.tanh %293 : vector<8x32xf32>
    %cst_201 = arith.constant 1.000000e+00 : f32
    %295 = vector.broadcast %cst_201 : f32 to vector<8x32xf32>
    %296 = arith.subf %295, %285 : vector<8x32xf32>
    %297 = arith.mulf %296, %294 : vector<8x32xf32>
    %298 = arith.mulf %285, %263 : vector<8x32xf32>
    %299 = arith.addf %297, %298 : vector<8x32xf32>
    %c0_202 = arith.constant 0 : index
    %c0_203 = arith.constant 0 : index
    %c0_204 = arith.constant 0 : index
    %300 = vector.load %arg16[%c0_202, %c0_203, %c0_204] : memref<2x8x32xf32, #tpu.memory_space<vmem>>, vector<1x8x32xf32>
    %301 = vector.shape_cast %300 : vector<1x8x32xf32> to vector<8x32xf32>
    %302 = vector.shape_cast %299 : vector<8x32xf32> to vector<1x8x32xf32>
    tpu.vector_store %arg16[%c0_202, %c0_203, %c0_204], %302 {strides = array<i32>} : memref<2x8x32xf32, #tpu.memory_space<vmem>>, vector<1x8x32xf32>,
    %c1_205 = arith.constant 1 : index
    %c0_206 = arith.constant 0 : index
    %c0_207 = arith.constant 0 : index
    %303 = vector.load %arg16[%c1_205, %c0_206, %c0_207] : memref<2x8x32xf32, #tpu.memory_space<vmem>>, vector<1x8x32xf32>
    %304 = vector.shape_cast %303 : vector<1x8x32xf32> to vector<8x32xf32>
    %cst_208 = arith.constant dense<0.000000e+00> : vector<8x32xf32>
    %305 = tpu.matmul %299, %41, %cst_208 {dimension_numbers = #tpu.dot_dimension_numbers<[1], [0], [0], [1], [0, 0, 1, 1], [], []>} : vector<8x32xf32>, vector<32x32xf32>, vector<8x32xf32> -> vector<8x32xf32>
    %cst_209 = arith.constant dense<0.000000e+00> : vector<8x32xf32>
    %306 = tpu.matmul %304, %47, %cst_209 {dimension_numbers = #tpu.dot_dimension_numbers<[1], [0], [0], [1], [0, 0, 1, 1], [], []>} : vector<8x32xf32>, vector<32x32xf32>, vector<8x32xf32> -> vector<8x32xf32>
    %307 = arith.addf %305, %306 : vector<8x32xf32>
    %308 = arith.addf %307, %58 : vector<8x32xf32>
    %309 = arith.negf %308 : vector<8x32xf32>
    %310 = math.exp %309 : vector<8x32xf32>
    %cst_210 = arith.constant 1.000000e+00 : f32
    %311 = vector.broadcast %cst_210 : f32 to vector<8x32xf32>
    %312 = arith.addf %311, %310 : vector<8x32xf32>
    %313 = arith.divf %311, %312 : vector<8x32xf32>
    %cst_211 = arith.constant dense<0.000000e+00> : vector<8x32xf32>
    %314 = tpu.matmul %299, %43, %cst_211 {dimension_numbers = #tpu.dot_dimension_numbers<[1], [0], [0], [1], [0, 0, 1, 1], [], []>} : vector<8x32xf32>, vector<32x32xf32>, vector<8x32xf32> -> vector<8x32xf32>
    %cst_212 = arith.constant dense<0.000000e+00> : vector<8x32xf32>
    %315 = tpu.matmul %304, %49, %cst_212 {dimension_numbers = #tpu.dot_dimension_numbers<[1], [0], [0], [1], [0, 0, 1, 1], [], []>} : vector<8x32xf32>, vector<32x32xf32>, vector<8x32xf32> -> vector<8x32xf32>
    %316 = arith.addf %314, %315 : vector<8x32xf32>
    %317 = arith.addf %316, %65 : vector<8x32xf32>
    %318 = arith.negf %317 : vector<8x32xf32>
    %319 = math.exp %318 : vector<8x32xf32>
    %cst_213 = arith.constant 1.000000e+00 : f32
    %320 = vector.broadcast %cst_213 : f32 to vector<8x32xf32>
    %321 = arith.addf %320, %319 : vector<8x32xf32>
    %322 = arith.divf %320, %321 : vector<8x32xf32>
    %cst_214 = arith.constant dense<0.000000e+00> : vector<8x32xf32>
    %323 = tpu.matmul %299, %45, %cst_214 {dimension_numbers = #tpu.dot_dimension_numbers<[1], [0], [0], [1], [0, 0, 1, 1], [], []>} : vector<8x32xf32>, vector<32x32xf32>, vector<8x32xf32> -> vector<8x32xf32>
    %324 = arith.addf %323, %69 : vector<8x32xf32>
    %cst_215 = arith.constant dense<0.000000e+00> : vector<8x32xf32>
    %325 = tpu.matmul %304, %51, %cst_215 {dimension_numbers = #tpu.dot_dimension_numbers<[1], [0], [0], [1], [0, 0, 1, 1], [], []>} : vector<8x32xf32>, vector<32x32xf32>, vector<8x32xf32> -> vector<8x32xf32>
    %326 = arith.addf %325, %73 : vector<8x32xf32>
    %327 = arith.mulf %313, %326 : vector<8x32xf32>
    %328 = arith.addf %324, %327 : vector<8x32xf32>
    %329 = math.tanh %328 : vector<8x32xf32>
    %cst_216 = arith.constant 1.000000e+00 : f32
    %330 = vector.broadcast %cst_216 : f32 to vector<8x32xf32>
    %331 = arith.subf %330, %322 : vector<8x32xf32>
    %332 = arith.mulf %331, %329 : vector<8x32xf32>
    %333 = arith.mulf %322, %304 : vector<8x32xf32>
    %334 = arith.addf %332, %333 : vector<8x32xf32>
    %c1_217 = arith.constant 1 : index
    %c0_218 = arith.constant 0 : index
    %c0_219 = arith.constant 0 : index
    %335 = vector.load %arg16[%c1_217, %c0_218, %c0_219] : memref<2x8x32xf32, #tpu.memory_space<vmem>>, vector<1x8x32xf32>
    %336 = vector.shape_cast %335 : vector<1x8x32xf32> to vector<8x32xf32>
    %337 = vector.shape_cast %334 : vector<8x32xf32> to vector<1x8x32xf32>
    tpu.vector_store %arg16[%c1_217, %c0_218, %c0_219], %337 {strides = array<i32>} : memref<2x8x32xf32, #tpu.memory_space<vmem>>, vector<1x8x32xf32>,
    %cst_220 = arith.constant dense<0.000000e+00> : vector<8x4xf32>
    %338 = tpu.matmul %334, %74, %cst_220 {dimension_numbers = #tpu.dot_dimension_numbers<[1], [0], [0], [1], [0, 0, 1, 1], [], []>} : vector<8x32xf32>, vector<32x4xf32>, vector<8x4xf32> -> vector<8x4xf32>
    %339 = arith.addf %338, %77 : vector<8x4xf32>
    %340 = math.tanh %339 : vector<8x4xf32>
    %c0_221 = arith.constant 0 : index
    %c0_222 = arith.constant 0 : index
    %341 = vector.load %arg17[%c0_221, %c0_222] : memref<8x4xf32, #tpu.memory_space<vmem>>, vector<8x4xf32>
    tpu.vector_store %arg17[%c0_221, %c0_222], %340 {strides = array<i32>} : memref<8x4xf32, #tpu.memory_space<vmem>>, vector<8x4xf32>,
    %c2_223 = arith.constant 2 : index
    %c0_224 = arith.constant 0 : index
    %c0_225 = arith.constant 0 : index
    %342 = vector.load %arg15[%c2_223, %c0_224, %c0_225] : memref<8x8x4xf32, #tpu.memory_space<vmem>>, vector<1x8x4xf32>
    %343 = vector.shape_cast %342 : vector<1x8x4xf32> to vector<8x4xf32>
    %344 = vector.shape_cast %340 : vector<8x4xf32> to vector<1x8x4xf32>
    tpu.vector_store %arg15[%c2_223, %c0_224, %c0_225], %344 {strides = array<i32>} : memref<8x8x4xf32, #tpu.memory_space<vmem>>, vector<1x8x4xf32>,
    %c0_226 = arith.constant 0 : index
    %c0_227 = arith.constant 0 : index
    %345 = vector.load %arg17[%c0_226, %c0_227] : memref<8x4xf32, #tpu.memory_space<vmem>>, vector<8x4xf32>
    %c3 = arith.constant 3 : index
    %c0_228 = arith.constant 0 : index
    %c0_229 = arith.constant 0 : index
    %346 = vector.load %arg1[%c3, %c0_228, %c0_229] : memref<8x8x8xf32, #tpu.memory_space<vmem>>, vector<1x8x8xf32>
    %347 = vector.shape_cast %346 : vector<1x8x8xf32> to vector<8x8xf32>
    %c0_230 = arith.constant 0 : index
    %c0_231 = arith.constant 0 : index
    %c0_232 = arith.constant 0 : index
    %348 = vector.load %arg16[%c0_230, %c0_231, %c0_232] : memref<2x8x32xf32, #tpu.memory_space<vmem>>, vector<1x8x32xf32>
    %349 = vector.shape_cast %348 : vector<1x8x32xf32> to vector<8x32xf32>
    %cst_233 = arith.constant dense<0.000000e+00> : vector<8x32xf32>
    %350 = tpu.matmul %345, %1, %cst_233 {dimension_numbers = #tpu.dot_dimension_numbers<[1], [0], [0], [1], [0, 0, 1, 1], [], []>} : vector<8x4xf32>, vector<4x32xf32>, vector<8x32xf32> -> vector<8x32xf32>
    %cst_234 = arith.constant dense<0.000000e+00> : vector<8x32xf32>
    %351 = tpu.matmul %347, %7, %cst_234 {dimension_numbers = #tpu.dot_dimension_numbers<[1], [0], [0], [1], [0, 0, 1, 1], [], []>} : vector<8x8xf32>, vector<8x32xf32>, vector<8x32xf32> -> vector<8x32xf32>
    %352 = arith.addf %350, %351 : vector<8x32xf32>
    %cst_235 = arith.constant dense<0.000000e+00> : vector<8x32xf32>
    %353 = tpu.matmul %349, %13, %cst_235 {dimension_numbers = #tpu.dot_dimension_numbers<[1], [0], [0], [1], [0, 0, 1, 1], [], []>} : vector<8x32xf32>, vector<32x32xf32>, vector<8x32xf32> -> vector<8x32xf32>
    %354 = arith.addf %352, %353 : vector<8x32xf32>
    %355 = arith.addf %354, %24 : vector<8x32xf32>
    %356 = arith.negf %355 : vector<8x32xf32>
    %357 = math.exp %356 : vector<8x32xf32>
    %cst_236 = arith.constant 1.000000e+00 : f32
    %358 = vector.broadcast %cst_236 : f32 to vector<8x32xf32>
    %359 = arith.addf %358, %357 : vector<8x32xf32>
    %360 = arith.divf %358, %359 : vector<8x32xf32>
    %cst_237 = arith.constant dense<0.000000e+00> : vector<8x32xf32>
    %361 = tpu.matmul %345, %3, %cst_237 {dimension_numbers = #tpu.dot_dimension_numbers<[1], [0], [0], [1], [0, 0, 1, 1], [], []>} : vector<8x4xf32>, vector<4x32xf32>, vector<8x32xf32> -> vector<8x32xf32>
    %cst_238 = arith.constant dense<0.000000e+00> : vector<8x32xf32>
    %362 = tpu.matmul %347, %9, %cst_238 {dimension_numbers = #tpu.dot_dimension_numbers<[1], [0], [0], [1], [0, 0, 1, 1], [], []>} : vector<8x8xf32>, vector<8x32xf32>, vector<8x32xf32> -> vector<8x32xf32>
    %363 = arith.addf %361, %362 : vector<8x32xf32>
    %cst_239 = arith.constant dense<0.000000e+00> : vector<8x32xf32>
    %364 = tpu.matmul %349, %15, %cst_239 {dimension_numbers = #tpu.dot_dimension_numbers<[1], [0], [0], [1], [0, 0, 1, 1], [], []>} : vector<8x32xf32>, vector<32x32xf32>, vector<8x32xf32> -> vector<8x32xf32>
    %365 = arith.addf %363, %364 : vector<8x32xf32>
    %366 = arith.addf %365, %31 : vector<8x32xf32>
    %367 = arith.negf %366 : vector<8x32xf32>
    %368 = math.exp %367 : vector<8x32xf32>
    %cst_240 = arith.constant 1.000000e+00 : f32
    %369 = vector.broadcast %cst_240 : f32 to vector<8x32xf32>
    %370 = arith.addf %369, %368 : vector<8x32xf32>
    %371 = arith.divf %369, %370 : vector<8x32xf32>
    %cst_241 = arith.constant dense<0.000000e+00> : vector<8x32xf32>
    %372 = tpu.matmul %345, %5, %cst_241 {dimension_numbers = #tpu.dot_dimension_numbers<[1], [0], [0], [1], [0, 0, 1, 1], [], []>} : vector<8x4xf32>, vector<4x32xf32>, vector<8x32xf32> -> vector<8x32xf32>
    %cst_242 = arith.constant dense<0.000000e+00> : vector<8x32xf32>
    %373 = tpu.matmul %347, %11, %cst_242 {dimension_numbers = #tpu.dot_dimension_numbers<[1], [0], [0], [1], [0, 0, 1, 1], [], []>} : vector<8x8xf32>, vector<8x32xf32>, vector<8x32xf32> -> vector<8x32xf32>
    %374 = arith.addf %372, %373 : vector<8x32xf32>
    %375 = arith.addf %374, %35 : vector<8x32xf32>
    %cst_243 = arith.constant dense<0.000000e+00> : vector<8x32xf32>
    %376 = tpu.matmul %349, %17, %cst_243 {dimension_numbers = #tpu.dot_dimension_numbers<[1], [0], [0], [1], [0, 0, 1, 1], [], []>} : vector<8x32xf32>, vector<32x32xf32>, vector<8x32xf32> -> vector<8x32xf32>
    %377 = arith.addf %376, %39 : vector<8x32xf32>
    %378 = arith.mulf %360, %377 : vector<8x32xf32>
    %379 = arith.addf %375, %378 : vector<8x32xf32>
    %380 = math.tanh %379 : vector<8x32xf32>
    %cst_244 = arith.constant 1.000000e+00 : f32
    %381 = vector.broadcast %cst_244 : f32 to vector<8x32xf32>
    %382 = arith.subf %381, %371 : vector<8x32xf32>
    %383 = arith.mulf %382, %380 : vector<8x32xf32>
    %384 = arith.mulf %371, %349 : vector<8x32xf32>
    %385 = arith.addf %383, %384 : vector<8x32xf32>
    %c0_245 = arith.constant 0 : index
    %c0_246 = arith.constant 0 : index
    %c0_247 = arith.constant 0 : index
    %386 = vector.load %arg16[%c0_245, %c0_246, %c0_247] : memref<2x8x32xf32, #tpu.memory_space<vmem>>, vector<1x8x32xf32>
    %387 = vector.shape_cast %386 : vector<1x8x32xf32> to vector<8x32xf32>
    %388 = vector.shape_cast %385 : vector<8x32xf32> to vector<1x8x32xf32>
    tpu.vector_store %arg16[%c0_245, %c0_246, %c0_247], %388 {strides = array<i32>} : memref<2x8x32xf32, #tpu.memory_space<vmem>>, vector<1x8x32xf32>,
    %c1_248 = arith.constant 1 : index
    %c0_249 = arith.constant 0 : index
    %c0_250 = arith.constant 0 : index
    %389 = vector.load %arg16[%c1_248, %c0_249, %c0_250] : memref<2x8x32xf32, #tpu.memory_space<vmem>>, vector<1x8x32xf32>
    %390 = vector.shape_cast %389 : vector<1x8x32xf32> to vector<8x32xf32>
    %cst_251 = arith.constant dense<0.000000e+00> : vector<8x32xf32>
    %391 = tpu.matmul %385, %41, %cst_251 {dimension_numbers = #tpu.dot_dimension_numbers<[1], [0], [0], [1], [0, 0, 1, 1], [], []>} : vector<8x32xf32>, vector<32x32xf32>, vector<8x32xf32> -> vector<8x32xf32>
    %cst_252 = arith.constant dense<0.000000e+00> : vector<8x32xf32>
    %392 = tpu.matmul %390, %47, %cst_252 {dimension_numbers = #tpu.dot_dimension_numbers<[1], [0], [0], [1], [0, 0, 1, 1], [], []>} : vector<8x32xf32>, vector<32x32xf32>, vector<8x32xf32> -> vector<8x32xf32>
    %393 = arith.addf %391, %392 : vector<8x32xf32>
    %394 = arith.addf %393, %58 : vector<8x32xf32>
    %395 = arith.negf %394 : vector<8x32xf32>
    %396 = math.exp %395 : vector<8x32xf32>
    %cst_253 = arith.constant 1.000000e+00 : f32
    %397 = vector.broadcast %cst_253 : f32 to vector<8x32xf32>
    %398 = arith.addf %397, %396 : vector<8x32xf32>
    %399 = arith.divf %397, %398 : vector<8x32xf32>
    %cst_254 = arith.constant dense<0.000000e+00> : vector<8x32xf32>
    %400 = tpu.matmul %385, %43, %cst_254 {dimension_numbers = #tpu.dot_dimension_numbers<[1], [0], [0], [1], [0, 0, 1, 1], [], []>} : vector<8x32xf32>, vector<32x32xf32>, vector<8x32xf32> -> vector<8x32xf32>
    %cst_255 = arith.constant dense<0.000000e+00> : vector<8x32xf32>
    %401 = tpu.matmul %390, %49, %cst_255 {dimension_numbers = #tpu.dot_dimension_numbers<[1], [0], [0], [1], [0, 0, 1, 1], [], []>} : vector<8x32xf32>, vector<32x32xf32>, vector<8x32xf32> -> vector<8x32xf32>
    %402 = arith.addf %400, %401 : vector<8x32xf32>
    %403 = arith.addf %402, %65 : vector<8x32xf32>
    %404 = arith.negf %403 : vector<8x32xf32>
    %405 = math.exp %404 : vector<8x32xf32>
    %cst_256 = arith.constant 1.000000e+00 : f32
    %406 = vector.broadcast %cst_256 : f32 to vector<8x32xf32>
    %407 = arith.addf %406, %405 : vector<8x32xf32>
    %408 = arith.divf %406, %407 : vector<8x32xf32>
    %cst_257 = arith.constant dense<0.000000e+00> : vector<8x32xf32>
    %409 = tpu.matmul %385, %45, %cst_257 {dimension_numbers = #tpu.dot_dimension_numbers<[1], [0], [0], [1], [0, 0, 1, 1], [], []>} : vector<8x32xf32>, vector<32x32xf32>, vector<8x32xf32> -> vector<8x32xf32>
    %410 = arith.addf %409, %69 : vector<8x32xf32>
    %cst_258 = arith.constant dense<0.000000e+00> : vector<8x32xf32>
    %411 = tpu.matmul %390, %51, %cst_258 {dimension_numbers = #tpu.dot_dimension_numbers<[1], [0], [0], [1], [0, 0, 1, 1], [], []>} : vector<8x32xf32>, vector<32x32xf32>, vector<8x32xf32> -> vector<8x32xf32>
    %412 = arith.addf %411, %73 : vector<8x32xf32>
    %413 = arith.mulf %399, %412 : vector<8x32xf32>
    %414 = arith.addf %410, %413 : vector<8x32xf32>
    %415 = math.tanh %414 : vector<8x32xf32>
    %cst_259 = arith.constant 1.000000e+00 : f32
    %416 = vector.broadcast %cst_259 : f32 to vector<8x32xf32>
    %417 = arith.subf %416, %408 : vector<8x32xf32>
    %418 = arith.mulf %417, %415 : vector<8x32xf32>
    %419 = arith.mulf %408, %390 : vector<8x32xf32>
    %420 = arith.addf %418, %419 : vector<8x32xf32>
    %c1_260 = arith.constant 1 : index
    %c0_261 = arith.constant 0 : index
    %c0_262 = arith.constant 0 : index
    %421 = vector.load %arg16[%c1_260, %c0_261, %c0_262] : memref<2x8x32xf32, #tpu.memory_space<vmem>>, vector<1x8x32xf32>
    %422 = vector.shape_cast %421 : vector<1x8x32xf32> to vector<8x32xf32>
    %423 = vector.shape_cast %420 : vector<8x32xf32> to vector<1x8x32xf32>
    tpu.vector_store %arg16[%c1_260, %c0_261, %c0_262], %423 {strides = array<i32>} : memref<2x8x32xf32, #tpu.memory_space<vmem>>, vector<1x8x32xf32>,
    %cst_263 = arith.constant dense<0.000000e+00> : vector<8x4xf32>
    %424 = tpu.matmul %420, %74, %cst_263 {dimension_numbers = #tpu.dot_dimension_numbers<[1], [0], [0], [1], [0, 0, 1, 1], [], []>} : vector<8x32xf32>, vector<32x4xf32>, vector<8x4xf32> -> vector<8x4xf32>
    %425 = arith.addf %424, %77 : vector<8x4xf32>
    %426 = math.tanh %425 : vector<8x4xf32>
    %c0_264 = arith.constant 0 : index
    %c0_265 = arith.constant 0 : index
    %427 = vector.load %arg17[%c0_264, %c0_265] : memref<8x4xf32, #tpu.memory_space<vmem>>, vector<8x4xf32>
    tpu.vector_store %arg17[%c0_264, %c0_265], %426 {strides = array<i32>} : memref<8x4xf32, #tpu.memory_space<vmem>>, vector<8x4xf32>,
    %c3_266 = arith.constant 3 : index
    %c0_267 = arith.constant 0 : index
    %c0_268 = arith.constant 0 : index
    %428 = vector.load %arg15[%c3_266, %c0_267, %c0_268] : memref<8x8x4xf32, #tpu.memory_space<vmem>>, vector<1x8x4xf32>
    %429 = vector.shape_cast %428 : vector<1x8x4xf32> to vector<8x4xf32>
    %430 = vector.shape_cast %426 : vector<8x4xf32> to vector<1x8x4xf32>
    tpu.vector_store %arg15[%c3_266, %c0_267, %c0_268], %430 {strides = array<i32>} : memref<8x8x4xf32, #tpu.memory_space<vmem>>, vector<1x8x4xf32>,
    %c0_269 = arith.constant 0 : index
    %c0_270 = arith.constant 0 : index
    %431 = vector.load %arg17[%c0_269, %c0_270] : memref<8x4xf32, #tpu.memory_space<vmem>>, vector<8x4xf32>
    %c4 = arith.constant 4 : index
    %c0_271 = arith.constant 0 : index
    %c0_272 = arith.constant 0 : index
    %432 = vector.load %arg1[%c4, %c0_271, %c0_272] : memref<8x8x8xf32, #tpu.memory_space<vmem>>, vector<1x8x8xf32>
    %433 = vector.shape_cast %432 : vector<1x8x8xf32> to vector<8x8xf32>
    %c0_273 = arith.constant 0 : index
    %c0_274 = arith.constant 0 : index
    %c0_275 = arith.constant 0 : index
    %434 = vector.load %arg16[%c0_273, %c0_274, %c0_275] : memref<2x8x32xf32, #tpu.memory_space<vmem>>, vector<1x8x32xf32>
    %435 = vector.shape_cast %434 : vector<1x8x32xf32> to vector<8x32xf32>
    %cst_276 = arith.constant dense<0.000000e+00> : vector<8x32xf32>
    %436 = tpu.matmul %431, %1, %cst_276 {dimension_numbers = #tpu.dot_dimension_numbers<[1], [0], [0], [1], [0, 0, 1, 1], [], []>} : vector<8x4xf32>, vector<4x32xf32>, vector<8x32xf32> -> vector<8x32xf32>
    %cst_277 = arith.constant dense<0.000000e+00> : vector<8x32xf32>
    %437 = tpu.matmul %433, %7, %cst_277 {dimension_numbers = #tpu.dot_dimension_numbers<[1], [0], [0], [1], [0, 0, 1, 1], [], []>} : vector<8x8xf32>, vector<8x32xf32>, vector<8x32xf32> -> vector<8x32xf32>
    %438 = arith.addf %436, %437 : vector<8x32xf32>
    %cst_278 = arith.constant dense<0.000000e+00> : vector<8x32xf32>
    %439 = tpu.matmul %435, %13, %cst_278 {dimension_numbers = #tpu.dot_dimension_numbers<[1], [0], [0], [1], [0, 0, 1, 1], [], []>} : vector<8x32xf32>, vector<32x32xf32>, vector<8x32xf32> -> vector<8x32xf32>
    %440 = arith.addf %438, %439 : vector<8x32xf32>
    %441 = arith.addf %440, %24 : vector<8x32xf32>
    %442 = arith.negf %441 : vector<8x32xf32>
    %443 = math.exp %442 : vector<8x32xf32>
    %cst_279 = arith.constant 1.000000e+00 : f32
    %444 = vector.broadcast %cst_279 : f32 to vector<8x32xf32>
    %445 = arith.addf %444, %443 : vector<8x32xf32>
    %446 = arith.divf %444, %445 : vector<8x32xf32>
    %cst_280 = arith.constant dense<0.000000e+00> : vector<8x32xf32>
    %447 = tpu.matmul %431, %3, %cst_280 {dimension_numbers = #tpu.dot_dimension_numbers<[1], [0], [0], [1], [0, 0, 1, 1], [], []>} : vector<8x4xf32>, vector<4x32xf32>, vector<8x32xf32> -> vector<8x32xf32>
    %cst_281 = arith.constant dense<0.000000e+00> : vector<8x32xf32>
    %448 = tpu.matmul %433, %9, %cst_281 {dimension_numbers = #tpu.dot_dimension_numbers<[1], [0], [0], [1], [0, 0, 1, 1], [], []>} : vector<8x8xf32>, vector<8x32xf32>, vector<8x32xf32> -> vector<8x32xf32>
    %449 = arith.addf %447, %448 : vector<8x32xf32>
    %cst_282 = arith.constant dense<0.000000e+00> : vector<8x32xf32>
    %450 = tpu.matmul %435, %15, %cst_282 {dimension_numbers = #tpu.dot_dimension_numbers<[1], [0], [0], [1], [0, 0, 1, 1], [], []>} : vector<8x32xf32>, vector<32x32xf32>, vector<8x32xf32> -> vector<8x32xf32>
    %451 = arith.addf %449, %450 : vector<8x32xf32>
    %452 = arith.addf %451, %31 : vector<8x32xf32>
    %453 = arith.negf %452 : vector<8x32xf32>
    %454 = math.exp %453 : vector<8x32xf32>
    %cst_283 = arith.constant 1.000000e+00 : f32
    %455 = vector.broadcast %cst_283 : f32 to vector<8x32xf32>
    %456 = arith.addf %455, %454 : vector<8x32xf32>
    %457 = arith.divf %455, %456 : vector<8x32xf32>
    %cst_284 = arith.constant dense<0.000000e+00> : vector<8x32xf32>
    %458 = tpu.matmul %431, %5, %cst_284 {dimension_numbers = #tpu.dot_dimension_numbers<[1], [0], [0], [1], [0, 0, 1, 1], [], []>} : vector<8x4xf32>, vector<4x32xf32>, vector<8x32xf32> -> vector<8x32xf32>
    %cst_285 = arith.constant dense<0.000000e+00> : vector<8x32xf32>
    %459 = tpu.matmul %433, %11, %cst_285 {dimension_numbers = #tpu.dot_dimension_numbers<[1], [0], [0], [1], [0, 0, 1, 1], [], []>} : vector<8x8xf32>, vector<8x32xf32>, vector<8x32xf32> -> vector<8x32xf32>
    %460 = arith.addf %458, %459 : vector<8x32xf32>
    %461 = arith.addf %460, %35 : vector<8x32xf32>
    %cst_286 = arith.constant dense<0.000000e+00> : vector<8x32xf32>
    %462 = tpu.matmul %435, %17, %cst_286 {dimension_numbers = #tpu.dot_dimension_numbers<[1], [0], [0], [1], [0, 0, 1, 1], [], []>} : vector<8x32xf32>, vector<32x32xf32>, vector<8x32xf32> -> vector<8x32xf32>
    %463 = arith.addf %462, %39 : vector<8x32xf32>
    %464 = arith.mulf %446, %463 : vector<8x32xf32>
    %465 = arith.addf %461, %464 : vector<8x32xf32>
    %466 = math.tanh %465 : vector<8x32xf32>
    %cst_287 = arith.constant 1.000000e+00 : f32
    %467 = vector.broadcast %cst_287 : f32 to vector<8x32xf32>
    %468 = arith.subf %467, %457 : vector<8x32xf32>
    %469 = arith.mulf %468, %466 : vector<8x32xf32>
    %470 = arith.mulf %457, %435 : vector<8x32xf32>
    %471 = arith.addf %469, %470 : vector<8x32xf32>
    %c0_288 = arith.constant 0 : index
    %c0_289 = arith.constant 0 : index
    %c0_290 = arith.constant 0 : index
    %472 = vector.load %arg16[%c0_288, %c0_289, %c0_290] : memref<2x8x32xf32, #tpu.memory_space<vmem>>, vector<1x8x32xf32>
    %473 = vector.shape_cast %472 : vector<1x8x32xf32> to vector<8x32xf32>
    %474 = vector.shape_cast %471 : vector<8x32xf32> to vector<1x8x32xf32>
    tpu.vector_store %arg16[%c0_288, %c0_289, %c0_290], %474 {strides = array<i32>} : memref<2x8x32xf32, #tpu.memory_space<vmem>>, vector<1x8x32xf32>,
    %c1_291 = arith.constant 1 : index
    %c0_292 = arith.constant 0 : index
    %c0_293 = arith.constant 0 : index
    %475 = vector.load %arg16[%c1_291, %c0_292, %c0_293] : memref<2x8x32xf32, #tpu.memory_space<vmem>>, vector<1x8x32xf32>
    %476 = vector.shape_cast %475 : vector<1x8x32xf32> to vector<8x32xf32>
    %cst_294 = arith.constant dense<0.000000e+00> : vector<8x32xf32>
    %477 = tpu.matmul %471, %41, %cst_294 {dimension_numbers = #tpu.dot_dimension_numbers<[1], [0], [0], [1], [0, 0, 1, 1], [], []>} : vector<8x32xf32>, vector<32x32xf32>, vector<8x32xf32> -> vector<8x32xf32>
    %cst_295 = arith.constant dense<0.000000e+00> : vector<8x32xf32>
    %478 = tpu.matmul %476, %47, %cst_295 {dimension_numbers = #tpu.dot_dimension_numbers<[1], [0], [0], [1], [0, 0, 1, 1], [], []>} : vector<8x32xf32>, vector<32x32xf32>, vector<8x32xf32> -> vector<8x32xf32>
    %479 = arith.addf %477, %478 : vector<8x32xf32>
    %480 = arith.addf %479, %58 : vector<8x32xf32>
    %481 = arith.negf %480 : vector<8x32xf32>
    %482 = math.exp %481 : vector<8x32xf32>
    %cst_296 = arith.constant 1.000000e+00 : f32
    %483 = vector.broadcast %cst_296 : f32 to vector<8x32xf32>
    %484 = arith.addf %483, %482 : vector<8x32xf32>
    %485 = arith.divf %483, %484 : vector<8x32xf32>
    %cst_297 = arith.constant dense<0.000000e+00> : vector<8x32xf32>
    %486 = tpu.matmul %471, %43, %cst_297 {dimension_numbers = #tpu.dot_dimension_numbers<[1], [0], [0], [1], [0, 0, 1, 1], [], []>} : vector<8x32xf32>, vector<32x32xf32>, vector<8x32xf32> -> vector<8x32xf32>
    %cst_298 = arith.constant dense<0.000000e+00> : vector<8x32xf32>
    %487 = tpu.matmul %476, %49, %cst_298 {dimension_numbers = #tpu.dot_dimension_numbers<[1], [0], [0], [1], [0, 0, 1, 1], [], []>} : vector<8x32xf32>, vector<32x32xf32>, vector<8x32xf32> -> vector<8x32xf32>
    %488 = arith.addf %486, %487 : vector<8x32xf32>
    %489 = arith.addf %488, %65 : vector<8x32xf32>
    %490 = arith.negf %489 : vector<8x32xf32>
    %491 = math.exp %490 : vector<8x32xf32>
    %cst_299 = arith.constant 1.000000e+00 : f32
    %492 = vector.broadcast %cst_299 : f32 to vector<8x32xf32>
    %493 = arith.addf %492, %491 : vector<8x32xf32>
    %494 = arith.divf %492, %493 : vector<8x32xf32>
    %cst_300 = arith.constant dense<0.000000e+00> : vector<8x32xf32>
    %495 = tpu.matmul %471, %45, %cst_300 {dimension_numbers = #tpu.dot_dimension_numbers<[1], [0], [0], [1], [0, 0, 1, 1], [], []>} : vector<8x32xf32>, vector<32x32xf32>, vector<8x32xf32> -> vector<8x32xf32>
    %496 = arith.addf %495, %69 : vector<8x32xf32>
    %cst_301 = arith.constant dense<0.000000e+00> : vector<8x32xf32>
    %497 = tpu.matmul %476, %51, %cst_301 {dimension_numbers = #tpu.dot_dimension_numbers<[1], [0], [0], [1], [0, 0, 1, 1], [], []>} : vector<8x32xf32>, vector<32x32xf32>, vector<8x32xf32> -> vector<8x32xf32>
    %498 = arith.addf %497, %73 : vector<8x32xf32>
    %499 = arith.mulf %485, %498 : vector<8x32xf32>
    %500 = arith.addf %496, %499 : vector<8x32xf32>
    %501 = math.tanh %500 : vector<8x32xf32>
    %cst_302 = arith.constant 1.000000e+00 : f32
    %502 = vector.broadcast %cst_302 : f32 to vector<8x32xf32>
    %503 = arith.subf %502, %494 : vector<8x32xf32>
    %504 = arith.mulf %503, %501 : vector<8x32xf32>
    %505 = arith.mulf %494, %476 : vector<8x32xf32>
    %506 = arith.addf %504, %505 : vector<8x32xf32>
    %c1_303 = arith.constant 1 : index
    %c0_304 = arith.constant 0 : index
    %c0_305 = arith.constant 0 : index
    %507 = vector.load %arg16[%c1_303, %c0_304, %c0_305] : memref<2x8x32xf32, #tpu.memory_space<vmem>>, vector<1x8x32xf32>
    %508 = vector.shape_cast %507 : vector<1x8x32xf32> to vector<8x32xf32>
    %509 = vector.shape_cast %506 : vector<8x32xf32> to vector<1x8x32xf32>
    tpu.vector_store %arg16[%c1_303, %c0_304, %c0_305], %509 {strides = array<i32>} : memref<2x8x32xf32, #tpu.memory_space<vmem>>, vector<1x8x32xf32>,
    %cst_306 = arith.constant dense<0.000000e+00> : vector<8x4xf32>
    %510 = tpu.matmul %506, %74, %cst_306 {dimension_numbers = #tpu.dot_dimension_numbers<[1], [0], [0], [1], [0, 0, 1, 1], [], []>} : vector<8x32xf32>, vector<32x4xf32>, vector<8x4xf32> -> vector<8x4xf32>
    %511 = arith.addf %510, %77 : vector<8x4xf32>
    %512 = math.tanh %511 : vector<8x4xf32>
    %c0_307 = arith.constant 0 : index
    %c0_308 = arith.constant 0 : index
    %513 = vector.load %arg17[%c0_307, %c0_308] : memref<8x4xf32, #tpu.memory_space<vmem>>, vector<8x4xf32>
    tpu.vector_store %arg17[%c0_307, %c0_308], %512 {strides = array<i32>} : memref<8x4xf32, #tpu.memory_space<vmem>>, vector<8x4xf32>,
    %c4_309 = arith.constant 4 : index
    %c0_310 = arith.constant 0 : index
    %c0_311 = arith.constant 0 : index
    %514 = vector.load %arg15[%c4_309, %c0_310, %c0_311] : memref<8x8x4xf32, #tpu.memory_space<vmem>>, vector<1x8x4xf32>
    %515 = vector.shape_cast %514 : vector<1x8x4xf32> to vector<8x4xf32>
    %516 = vector.shape_cast %512 : vector<8x4xf32> to vector<1x8x4xf32>
    tpu.vector_store %arg15[%c4_309, %c0_310, %c0_311], %516 {strides = array<i32>} : memref<8x8x4xf32, #tpu.memory_space<vmem>>, vector<1x8x4xf32>,
    %c0_312 = arith.constant 0 : index
    %c0_313 = arith.constant 0 : index
    %517 = vector.load %arg17[%c0_312, %c0_313] : memref<8x4xf32, #tpu.memory_space<vmem>>, vector<8x4xf32>
    %c5 = arith.constant 5 : index
    %c0_314 = arith.constant 0 : index
    %c0_315 = arith.constant 0 : index
    %518 = vector.load %arg1[%c5, %c0_314, %c0_315] : memref<8x8x8xf32, #tpu.memory_space<vmem>>, vector<1x8x8xf32>
    %519 = vector.shape_cast %518 : vector<1x8x8xf32> to vector<8x8xf32>
    %c0_316 = arith.constant 0 : index
    %c0_317 = arith.constant 0 : index
    %c0_318 = arith.constant 0 : index
    %520 = vector.load %arg16[%c0_316, %c0_317, %c0_318] : memref<2x8x32xf32, #tpu.memory_space<vmem>>, vector<1x8x32xf32>
    %521 = vector.shape_cast %520 : vector<1x8x32xf32> to vector<8x32xf32>
    %cst_319 = arith.constant dense<0.000000e+00> : vector<8x32xf32>
    %522 = tpu.matmul %517, %1, %cst_319 {dimension_numbers = #tpu.dot_dimension_numbers<[1], [0], [0], [1], [0, 0, 1, 1], [], []>} : vector<8x4xf32>, vector<4x32xf32>, vector<8x32xf32> -> vector<8x32xf32>
    %cst_320 = arith.constant dense<0.000000e+00> : vector<8x32xf32>
    %523 = tpu.matmul %519, %7, %cst_320 {dimension_numbers = #tpu.dot_dimension_numbers<[1], [0], [0], [1], [0, 0, 1, 1], [], []>} : vector<8x8xf32>, vector<8x32xf32>, vector<8x32xf32> -> vector<8x32xf32>
    %524 = arith.addf %522, %523 : vector<8x32xf32>
    %cst_321 = arith.constant dense<0.000000e+00> : vector<8x32xf32>
    %525 = tpu.matmul %521, %13, %cst_321 {dimension_numbers = #tpu.dot_dimension_numbers<[1], [0], [0], [1], [0, 0, 1, 1], [], []>} : vector<8x32xf32>, vector<32x32xf32>, vector<8x32xf32> -> vector<8x32xf32>
    %526 = arith.addf %524, %525 : vector<8x32xf32>
    %527 = arith.addf %526, %24 : vector<8x32xf32>
    %528 = arith.negf %527 : vector<8x32xf32>
    %529 = math.exp %528 : vector<8x32xf32>
    %cst_322 = arith.constant 1.000000e+00 : f32
    %530 = vector.broadcast %cst_322 : f32 to vector<8x32xf32>
    %531 = arith.addf %530, %529 : vector<8x32xf32>
    %532 = arith.divf %530, %531 : vector<8x32xf32>
    %cst_323 = arith.constant dense<0.000000e+00> : vector<8x32xf32>
    %533 = tpu.matmul %517, %3, %cst_323 {dimension_numbers = #tpu.dot_dimension_numbers<[1], [0], [0], [1], [0, 0, 1, 1], [], []>} : vector<8x4xf32>, vector<4x32xf32>, vector<8x32xf32> -> vector<8x32xf32>
    %cst_324 = arith.constant dense<0.000000e+00> : vector<8x32xf32>
    %534 = tpu.matmul %519, %9, %cst_324 {dimension_numbers = #tpu.dot_dimension_numbers<[1], [0], [0], [1], [0, 0, 1, 1], [], []>} : vector<8x8xf32>, vector<8x32xf32>, vector<8x32xf32> -> vector<8x32xf32>
    %535 = arith.addf %533, %534 : vector<8x32xf32>
    %cst_325 = arith.constant dense<0.000000e+00> : vector<8x32xf32>
    %536 = tpu.matmul %521, %15, %cst_325 {dimension_numbers = #tpu.dot_dimension_numbers<[1], [0], [0], [1], [0, 0, 1, 1], [], []>} : vector<8x32xf32>, vector<32x32xf32>, vector<8x32xf32> -> vector<8x32xf32>
    %537 = arith.addf %535, %536 : vector<8x32xf32>
    %538 = arith.addf %537, %31 : vector<8x32xf32>
    %539 = arith.negf %538 : vector<8x32xf32>
    %540 = math.exp %539 : vector<8x32xf32>
    %cst_326 = arith.constant 1.000000e+00 : f32
    %541 = vector.broadcast %cst_326 : f32 to vector<8x32xf32>
    %542 = arith.addf %541, %540 : vector<8x32xf32>
    %543 = arith.divf %541, %542 : vector<8x32xf32>
    %cst_327 = arith.constant dense<0.000000e+00> : vector<8x32xf32>
    %544 = tpu.matmul %517, %5, %cst_327 {dimension_numbers = #tpu.dot_dimension_numbers<[1], [0], [0], [1], [0, 0, 1, 1], [], []>} : vector<8x4xf32>, vector<4x32xf32>, vector<8x32xf32> -> vector<8x32xf32>
    %cst_328 = arith.constant dense<0.000000e+00> : vector<8x32xf32>
    %545 = tpu.matmul %519, %11, %cst_328 {dimension_numbers = #tpu.dot_dimension_numbers<[1], [0], [0], [1], [0, 0, 1, 1], [], []>} : vector<8x8xf32>, vector<8x32xf32>, vector<8x32xf32> -> vector<8x32xf32>
    %546 = arith.addf %544, %545 : vector<8x32xf32>
    %547 = arith.addf %546, %35 : vector<8x32xf32>
    %cst_329 = arith.constant dense<0.000000e+00> : vector<8x32xf32>
    %548 = tpu.matmul %521, %17, %cst_329 {dimension_numbers = #tpu.dot_dimension_numbers<[1], [0], [0], [1], [0, 0, 1, 1], [], []>} : vector<8x32xf32>, vector<32x32xf32>, vector<8x32xf32> -> vector<8x32xf32>
    %549 = arith.addf %548, %39 : vector<8x32xf32>
    %550 = arith.mulf %532, %549 : vector<8x32xf32>
    %551 = arith.addf %547, %550 : vector<8x32xf32>
    %552 = math.tanh %551 : vector<8x32xf32>
    %cst_330 = arith.constant 1.000000e+00 : f32
    %553 = vector.broadcast %cst_330 : f32 to vector<8x32xf32>
    %554 = arith.subf %553, %543 : vector<8x32xf32>
    %555 = arith.mulf %554, %552 : vector<8x32xf32>
    %556 = arith.mulf %543, %521 : vector<8x32xf32>
    %557 = arith.addf %555, %556 : vector<8x32xf32>
    %c0_331 = arith.constant 0 : index
    %c0_332 = arith.constant 0 : index
    %c0_333 = arith.constant 0 : index
    %558 = vector.load %arg16[%c0_331, %c0_332, %c0_333] : memref<2x8x32xf32, #tpu.memory_space<vmem>>, vector<1x8x32xf32>
    %559 = vector.shape_cast %558 : vector<1x8x32xf32> to vector<8x32xf32>
    %560 = vector.shape_cast %557 : vector<8x32xf32> to vector<1x8x32xf32>
    tpu.vector_store %arg16[%c0_331, %c0_332, %c0_333], %560 {strides = array<i32>} : memref<2x8x32xf32, #tpu.memory_space<vmem>>, vector<1x8x32xf32>,
    %c1_334 = arith.constant 1 : index
    %c0_335 = arith.constant 0 : index
    %c0_336 = arith.constant 0 : index
    %561 = vector.load %arg16[%c1_334, %c0_335, %c0_336] : memref<2x8x32xf32, #tpu.memory_space<vmem>>, vector<1x8x32xf32>
    %562 = vector.shape_cast %561 : vector<1x8x32xf32> to vector<8x32xf32>
    %cst_337 = arith.constant dense<0.000000e+00> : vector<8x32xf32>
    %563 = tpu.matmul %557, %41, %cst_337 {dimension_numbers = #tpu.dot_dimension_numbers<[1], [0], [0], [1], [0, 0, 1, 1], [], []>} : vector<8x32xf32>, vector<32x32xf32>, vector<8x32xf32> -> vector<8x32xf32>
    %cst_338 = arith.constant dense<0.000000e+00> : vector<8x32xf32>
    %564 = tpu.matmul %562, %47, %cst_338 {dimension_numbers = #tpu.dot_dimension_numbers<[1], [0], [0], [1], [0, 0, 1, 1], [], []>} : vector<8x32xf32>, vector<32x32xf32>, vector<8x32xf32> -> vector<8x32xf32>
    %565 = arith.addf %563, %564 : vector<8x32xf32>
    %566 = arith.addf %565, %58 : vector<8x32xf32>
    %567 = arith.negf %566 : vector<8x32xf32>
    %568 = math.exp %567 : vector<8x32xf32>
    %cst_339 = arith.constant 1.000000e+00 : f32
    %569 = vector.broadcast %cst_339 : f32 to vector<8x32xf32>
    %570 = arith.addf %569, %568 : vector<8x32xf32>
    %571 = arith.divf %569, %570 : vector<8x32xf32>
    %cst_340 = arith.constant dense<0.000000e+00> : vector<8x32xf32>
    %572 = tpu.matmul %557, %43, %cst_340 {dimension_numbers = #tpu.dot_dimension_numbers<[1], [0], [0], [1], [0, 0, 1, 1], [], []>} : vector<8x32xf32>, vector<32x32xf32>, vector<8x32xf32> -> vector<8x32xf32>
    %cst_341 = arith.constant dense<0.000000e+00> : vector<8x32xf32>
    %573 = tpu.matmul %562, %49, %cst_341 {dimension_numbers = #tpu.dot_dimension_numbers<[1], [0], [0], [1], [0, 0, 1, 1], [], []>} : vector<8x32xf32>, vector<32x32xf32>, vector<8x32xf32> -> vector<8x32xf32>
    %574 = arith.addf %572, %573 : vector<8x32xf32>
    %575 = arith.addf %574, %65 : vector<8x32xf32>
    %576 = arith.negf %575 : vector<8x32xf32>
    %577 = math.exp %576 : vector<8x32xf32>
    %cst_342 = arith.constant 1.000000e+00 : f32
    %578 = vector.broadcast %cst_342 : f32 to vector<8x32xf32>
    %579 = arith.addf %578, %577 : vector<8x32xf32>
    %580 = arith.divf %578, %579 : vector<8x32xf32>
    %cst_343 = arith.constant dense<0.000000e+00> : vector<8x32xf32>
    %581 = tpu.matmul %557, %45, %cst_343 {dimension_numbers = #tpu.dot_dimension_numbers<[1], [0], [0], [1], [0, 0, 1, 1], [], []>} : vector<8x32xf32>, vector<32x32xf32>, vector<8x32xf32> -> vector<8x32xf32>
    %582 = arith.addf %581, %69 : vector<8x32xf32>
    %cst_344 = arith.constant dense<0.000000e+00> : vector<8x32xf32>
    %583 = tpu.matmul %562, %51, %cst_344 {dimension_numbers = #tpu.dot_dimension_numbers<[1], [0], [0], [1], [0, 0, 1, 1], [], []>} : vector<8x32xf32>, vector<32x32xf32>, vector<8x32xf32> -> vector<8x32xf32>
    %584 = arith.addf %583, %73 : vector<8x32xf32>
    %585 = arith.mulf %571, %584 : vector<8x32xf32>
    %586 = arith.addf %582, %585 : vector<8x32xf32>
    %587 = math.tanh %586 : vector<8x32xf32>
    %cst_345 = arith.constant 1.000000e+00 : f32
    %588 = vector.broadcast %cst_345 : f32 to vector<8x32xf32>
    %589 = arith.subf %588, %580 : vector<8x32xf32>
    %590 = arith.mulf %589, %587 : vector<8x32xf32>
    %591 = arith.mulf %580, %562 : vector<8x32xf32>
    %592 = arith.addf %590, %591 : vector<8x32xf32>
    %c1_346 = arith.constant 1 : index
    %c0_347 = arith.constant 0 : index
    %c0_348 = arith.constant 0 : index
    %593 = vector.load %arg16[%c1_346, %c0_347, %c0_348] : memref<2x8x32xf32, #tpu.memory_space<vmem>>, vector<1x8x32xf32>
    %594 = vector.shape_cast %593 : vector<1x8x32xf32> to vector<8x32xf32>
    %595 = vector.shape_cast %592 : vector<8x32xf32> to vector<1x8x32xf32>
    tpu.vector_store %arg16[%c1_346, %c0_347, %c0_348], %595 {strides = array<i32>} : memref<2x8x32xf32, #tpu.memory_space<vmem>>, vector<1x8x32xf32>,
    %cst_349 = arith.constant dense<0.000000e+00> : vector<8x4xf32>
    %596 = tpu.matmul %592, %74, %cst_349 {dimension_numbers = #tpu.dot_dimension_numbers<[1], [0], [0], [1], [0, 0, 1, 1], [], []>} : vector<8x32xf32>, vector<32x4xf32>, vector<8x4xf32> -> vector<8x4xf32>
    %597 = arith.addf %596, %77 : vector<8x4xf32>
    %598 = math.tanh %597 : vector<8x4xf32>
    %c0_350 = arith.constant 0 : index
    %c0_351 = arith.constant 0 : index
    %599 = vector.load %arg17[%c0_350, %c0_351] : memref<8x4xf32, #tpu.memory_space<vmem>>, vector<8x4xf32>
    tpu.vector_store %arg17[%c0_350, %c0_351], %598 {strides = array<i32>} : memref<8x4xf32, #tpu.memory_space<vmem>>, vector<8x4xf32>,
    %c5_352 = arith.constant 5 : index
    %c0_353 = arith.constant 0 : index
    %c0_354 = arith.constant 0 : index
    %600 = vector.load %arg15[%c5_352, %c0_353, %c0_354] : memref<8x8x4xf32, #tpu.memory_space<vmem>>, vector<1x8x4xf32>
    %601 = vector.shape_cast %600 : vector<1x8x4xf32> to vector<8x4xf32>
    %602 = vector.shape_cast %598 : vector<8x4xf32> to vector<1x8x4xf32>
    tpu.vector_store %arg15[%c5_352, %c0_353, %c0_354], %602 {strides = array<i32>} : memref<8x8x4xf32, #tpu.memory_space<vmem>>, vector<1x8x4xf32>,
    %c0_355 = arith.constant 0 : index
    %c0_356 = arith.constant 0 : index
    %603 = vector.load %arg17[%c0_355, %c0_356] : memref<8x4xf32, #tpu.memory_space<vmem>>, vector<8x4xf32>
    %c6 = arith.constant 6 : index
    %c0_357 = arith.constant 0 : index
    %c0_358 = arith.constant 0 : index
    %604 = vector.load %arg1[%c6, %c0_357, %c0_358] : memref<8x8x8xf32, #tpu.memory_space<vmem>>, vector<1x8x8xf32>
    %605 = vector.shape_cast %604 : vector<1x8x8xf32> to vector<8x8xf32>
    %c0_359 = arith.constant 0 : index
    %c0_360 = arith.constant 0 : index
    %c0_361 = arith.constant 0 : index
    %606 = vector.load %arg16[%c0_359, %c0_360, %c0_361] : memref<2x8x32xf32, #tpu.memory_space<vmem>>, vector<1x8x32xf32>
    %607 = vector.shape_cast %606 : vector<1x8x32xf32> to vector<8x32xf32>
    %cst_362 = arith.constant dense<0.000000e+00> : vector<8x32xf32>
    %608 = tpu.matmul %603, %1, %cst_362 {dimension_numbers = #tpu.dot_dimension_numbers<[1], [0], [0], [1], [0, 0, 1, 1], [], []>} : vector<8x4xf32>, vector<4x32xf32>, vector<8x32xf32> -> vector<8x32xf32>
    %cst_363 = arith.constant dense<0.000000e+00> : vector<8x32xf32>
    %609 = tpu.matmul %605, %7, %cst_363 {dimension_numbers = #tpu.dot_dimension_numbers<[1], [0], [0], [1], [0, 0, 1, 1], [], []>} : vector<8x8xf32>, vector<8x32xf32>, vector<8x32xf32> -> vector<8x32xf32>
    %610 = arith.addf %608, %609 : vector<8x32xf32>
    %cst_364 = arith.constant dense<0.000000e+00> : vector<8x32xf32>
    %611 = tpu.matmul %607, %13, %cst_364 {dimension_numbers = #tpu.dot_dimension_numbers<[1], [0], [0], [1], [0, 0, 1, 1], [], []>} : vector<8x32xf32>, vector<32x32xf32>, vector<8x32xf32> -> vector<8x32xf32>
    %612 = arith.addf %610, %611 : vector<8x32xf32>
    %613 = arith.addf %612, %24 : vector<8x32xf32>
    %614 = arith.negf %613 : vector<8x32xf32>
    %615 = math.exp %614 : vector<8x32xf32>
    %cst_365 = arith.constant 1.000000e+00 : f32
    %616 = vector.broadcast %cst_365 : f32 to vector<8x32xf32>
    %617 = arith.addf %616, %615 : vector<8x32xf32>
    %618 = arith.divf %616, %617 : vector<8x32xf32>
    %cst_366 = arith.constant dense<0.000000e+00> : vector<8x32xf32>
    %619 = tpu.matmul %603, %3, %cst_366 {dimension_numbers = #tpu.dot_dimension_numbers<[1], [0], [0], [1], [0, 0, 1, 1], [], []>} : vector<8x4xf32>, vector<4x32xf32>, vector<8x32xf32> -> vector<8x32xf32>
    %cst_367 = arith.constant dense<0.000000e+00> : vector<8x32xf32>
    %620 = tpu.matmul %605, %9, %cst_367 {dimension_numbers = #tpu.dot_dimension_numbers<[1], [0], [0], [1], [0, 0, 1, 1], [], []>} : vector<8x8xf32>, vector<8x32xf32>, vector<8x32xf32> -> vector<8x32xf32>
    %621 = arith.addf %619, %620 : vector<8x32xf32>
    %cst_368 = arith.constant dense<0.000000e+00> : vector<8x32xf32>
    %622 = tpu.matmul %607, %15, %cst_368 {dimension_numbers = #tpu.dot_dimension_numbers<[1], [0], [0], [1], [0, 0, 1, 1], [], []>} : vector<8x32xf32>, vector<32x32xf32>, vector<8x32xf32> -> vector<8x32xf32>
    %623 = arith.addf %621, %622 : vector<8x32xf32>
    %624 = arith.addf %623, %31 : vector<8x32xf32>
    %625 = arith.negf %624 : vector<8x32xf32>
    %626 = math.exp %625 : vector<8x32xf32>
    %cst_369 = arith.constant 1.000000e+00 : f32
    %627 = vector.broadcast %cst_369 : f32 to vector<8x32xf32>
    %628 = arith.addf %627, %626 : vector<8x32xf32>
    %629 = arith.divf %627, %628 : vector<8x32xf32>
    %cst_370 = arith.constant dense<0.000000e+00> : vector<8x32xf32>
    %630 = tpu.matmul %603, %5, %cst_370 {dimension_numbers = #tpu.dot_dimension_numbers<[1], [0], [0], [1], [0, 0, 1, 1], [], []>} : vector<8x4xf32>, vector<4x32xf32>, vector<8x32xf32> -> vector<8x32xf32>
    %cst_371 = arith.constant dense<0.000000e+00> : vector<8x32xf32>
    %631 = tpu.matmul %605, %11, %cst_371 {dimension_numbers = #tpu.dot_dimension_numbers<[1], [0], [0], [1], [0, 0, 1, 1], [], []>} : vector<8x8xf32>, vector<8x32xf32>, vector<8x32xf32> -> vector<8x32xf32>
    %632 = arith.addf %630, %631 : vector<8x32xf32>
    %633 = arith.addf %632, %35 : vector<8x32xf32>
    %cst_372 = arith.constant dense<0.000000e+00> : vector<8x32xf32>
    %634 = tpu.matmul %607, %17, %cst_372 {dimension_numbers = #tpu.dot_dimension_numbers<[1], [0], [0], [1], [0, 0, 1, 1], [], []>} : vector<8x32xf32>, vector<32x32xf32>, vector<8x32xf32> -> vector<8x32xf32>
    %635 = arith.addf %634, %39 : vector<8x32xf32>
    %636 = arith.mulf %618, %635 : vector<8x32xf32>
    %637 = arith.addf %633, %636 : vector<8x32xf32>
    %638 = math.tanh %637 : vector<8x32xf32>
    %cst_373 = arith.constant 1.000000e+00 : f32
    %639 = vector.broadcast %cst_373 : f32 to vector<8x32xf32>
    %640 = arith.subf %639, %629 : vector<8x32xf32>
    %641 = arith.mulf %640, %638 : vector<8x32xf32>
    %642 = arith.mulf %629, %607 : vector<8x32xf32>
    %643 = arith.addf %641, %642 : vector<8x32xf32>
    %c0_374 = arith.constant 0 : index
    %c0_375 = arith.constant 0 : index
    %c0_376 = arith.constant 0 : index
    %644 = vector.load %arg16[%c0_374, %c0_375, %c0_376] : memref<2x8x32xf32, #tpu.memory_space<vmem>>, vector<1x8x32xf32>
    %645 = vector.shape_cast %644 : vector<1x8x32xf32> to vector<8x32xf32>
    %646 = vector.shape_cast %643 : vector<8x32xf32> to vector<1x8x32xf32>
    tpu.vector_store %arg16[%c0_374, %c0_375, %c0_376], %646 {strides = array<i32>} : memref<2x8x32xf32, #tpu.memory_space<vmem>>, vector<1x8x32xf32>,
    %c1_377 = arith.constant 1 : index
    %c0_378 = arith.constant 0 : index
    %c0_379 = arith.constant 0 : index
    %647 = vector.load %arg16[%c1_377, %c0_378, %c0_379] : memref<2x8x32xf32, #tpu.memory_space<vmem>>, vector<1x8x32xf32>
    %648 = vector.shape_cast %647 : vector<1x8x32xf32> to vector<8x32xf32>
    %cst_380 = arith.constant dense<0.000000e+00> : vector<8x32xf32>
    %649 = tpu.matmul %643, %41, %cst_380 {dimension_numbers = #tpu.dot_dimension_numbers<[1], [0], [0], [1], [0, 0, 1, 1], [], []>} : vector<8x32xf32>, vector<32x32xf32>, vector<8x32xf32> -> vector<8x32xf32>
    %cst_381 = arith.constant dense<0.000000e+00> : vector<8x32xf32>
    %650 = tpu.matmul %648, %47, %cst_381 {dimension_numbers = #tpu.dot_dimension_numbers<[1], [0], [0], [1], [0, 0, 1, 1], [], []>} : vector<8x32xf32>, vector<32x32xf32>, vector<8x32xf32> -> vector<8x32xf32>
    %651 = arith.addf %649, %650 : vector<8x32xf32>
    %652 = arith.addf %651, %58 : vector<8x32xf32>
    %653 = arith.negf %652 : vector<8x32xf32>
    %654 = math.exp %653 : vector<8x32xf32>
    %cst_382 = arith.constant 1.000000e+00 : f32
    %655 = vector.broadcast %cst_382 : f32 to vector<8x32xf32>
    %656 = arith.addf %655, %654 : vector<8x32xf32>
    %657 = arith.divf %655, %656 : vector<8x32xf32>
    %cst_383 = arith.constant dense<0.000000e+00> : vector<8x32xf32>
    %658 = tpu.matmul %643, %43, %cst_383 {dimension_numbers = #tpu.dot_dimension_numbers<[1], [0], [0], [1], [0, 0, 1, 1], [], []>} : vector<8x32xf32>, vector<32x32xf32>, vector<8x32xf32> -> vector<8x32xf32>
    %cst_384 = arith.constant dense<0.000000e+00> : vector<8x32xf32>
    %659 = tpu.matmul %648, %49, %cst_384 {dimension_numbers = #tpu.dot_dimension_numbers<[1], [0], [0], [1], [0, 0, 1, 1], [], []>} : vector<8x32xf32>, vector<32x32xf32>, vector<8x32xf32> -> vector<8x32xf32>
    %660 = arith.addf %658, %659 : vector<8x32xf32>
    %661 = arith.addf %660, %65 : vector<8x32xf32>
    %662 = arith.negf %661 : vector<8x32xf32>
    %663 = math.exp %662 : vector<8x32xf32>
    %cst_385 = arith.constant 1.000000e+00 : f32
    %664 = vector.broadcast %cst_385 : f32 to vector<8x32xf32>
    %665 = arith.addf %664, %663 : vector<8x32xf32>
    %666 = arith.divf %664, %665 : vector<8x32xf32>
    %cst_386 = arith.constant dense<0.000000e+00> : vector<8x32xf32>
    %667 = tpu.matmul %643, %45, %cst_386 {dimension_numbers = #tpu.dot_dimension_numbers<[1], [0], [0], [1], [0, 0, 1, 1], [], []>} : vector<8x32xf32>, vector<32x32xf32>, vector<8x32xf32> -> vector<8x32xf32>
    %668 = arith.addf %667, %69 : vector<8x32xf32>
    %cst_387 = arith.constant dense<0.000000e+00> : vector<8x32xf32>
    %669 = tpu.matmul %648, %51, %cst_387 {dimension_numbers = #tpu.dot_dimension_numbers<[1], [0], [0], [1], [0, 0, 1, 1], [], []>} : vector<8x32xf32>, vector<32x32xf32>, vector<8x32xf32> -> vector<8x32xf32>
    %670 = arith.addf %669, %73 : vector<8x32xf32>
    %671 = arith.mulf %657, %670 : vector<8x32xf32>
    %672 = arith.addf %668, %671 : vector<8x32xf32>
    %673 = math.tanh %672 : vector<8x32xf32>
    %cst_388 = arith.constant 1.000000e+00 : f32
    %674 = vector.broadcast %cst_388 : f32 to vector<8x32xf32>
    %675 = arith.subf %674, %666 : vector<8x32xf32>
    %676 = arith.mulf %675, %673 : vector<8x32xf32>
    %677 = arith.mulf %666, %648 : vector<8x32xf32>
    %678 = arith.addf %676, %677 : vector<8x32xf32>
    %c1_389 = arith.constant 1 : index
    %c0_390 = arith.constant 0 : index
    %c0_391 = arith.constant 0 : index
    %679 = vector.load %arg16[%c1_389, %c0_390, %c0_391] : memref<2x8x32xf32, #tpu.memory_space<vmem>>, vector<1x8x32xf32>
    %680 = vector.shape_cast %679 : vector<1x8x32xf32> to vector<8x32xf32>
    %681 = vector.shape_cast %678 : vector<8x32xf32> to vector<1x8x32xf32>
    tpu.vector_store %arg16[%c1_389, %c0_390, %c0_391], %681 {strides = array<i32>} : memref<2x8x32xf32, #tpu.memory_space<vmem>>, vector<1x8x32xf32>,
    %cst_392 = arith.constant dense<0.000000e+00> : vector<8x4xf32>
    %682 = tpu.matmul %678, %74, %cst_392 {dimension_numbers = #tpu.dot_dimension_numbers<[1], [0], [0], [1], [0, 0, 1, 1], [], []>} : vector<8x32xf32>, vector<32x4xf32>, vector<8x4xf32> -> vector<8x4xf32>
    %683 = arith.addf %682, %77 : vector<8x4xf32>
    %684 = math.tanh %683 : vector<8x4xf32>
    %c0_393 = arith.constant 0 : index
    %c0_394 = arith.constant 0 : index
    %685 = vector.load %arg17[%c0_393, %c0_394] : memref<8x4xf32, #tpu.memory_space<vmem>>, vector<8x4xf32>
    tpu.vector_store %arg17[%c0_393, %c0_394], %684 {strides = array<i32>} : memref<8x4xf32, #tpu.memory_space<vmem>>, vector<8x4xf32>,
    %c6_395 = arith.constant 6 : index
    %c0_396 = arith.constant 0 : index
    %c0_397 = arith.constant 0 : index
    %686 = vector.load %arg15[%c6_395, %c0_396, %c0_397] : memref<8x8x4xf32, #tpu.memory_space<vmem>>, vector<1x8x4xf32>
    %687 = vector.shape_cast %686 : vector<1x8x4xf32> to vector<8x4xf32>
    %688 = vector.shape_cast %684 : vector<8x4xf32> to vector<1x8x4xf32>
    tpu.vector_store %arg15[%c6_395, %c0_396, %c0_397], %688 {strides = array<i32>} : memref<8x8x4xf32, #tpu.memory_space<vmem>>, vector<1x8x4xf32>,
    %c0_398 = arith.constant 0 : index
    %c0_399 = arith.constant 0 : index
    %689 = vector.load %arg17[%c0_398, %c0_399] : memref<8x4xf32, #tpu.memory_space<vmem>>, vector<8x4xf32>
    %c7 = arith.constant 7 : index
    %c0_400 = arith.constant 0 : index
    %c0_401 = arith.constant 0 : index
    %690 = vector.load %arg1[%c7, %c0_400, %c0_401] : memref<8x8x8xf32, #tpu.memory_space<vmem>>, vector<1x8x8xf32>
    %691 = vector.shape_cast %690 : vector<1x8x8xf32> to vector<8x8xf32>
    %c0_402 = arith.constant 0 : index
    %c0_403 = arith.constant 0 : index
    %c0_404 = arith.constant 0 : index
    %692 = vector.load %arg16[%c0_402, %c0_403, %c0_404] : memref<2x8x32xf32, #tpu.memory_space<vmem>>, vector<1x8x32xf32>
    %693 = vector.shape_cast %692 : vector<1x8x32xf32> to vector<8x32xf32>
    %cst_405 = arith.constant dense<0.000000e+00> : vector<8x32xf32>
    %694 = tpu.matmul %689, %1, %cst_405 {dimension_numbers = #tpu.dot_dimension_numbers<[1], [0], [0], [1], [0, 0, 1, 1], [], []>} : vector<8x4xf32>, vector<4x32xf32>, vector<8x32xf32> -> vector<8x32xf32>
    %cst_406 = arith.constant dense<0.000000e+00> : vector<8x32xf32>
    %695 = tpu.matmul %691, %7, %cst_406 {dimension_numbers = #tpu.dot_dimension_numbers<[1], [0], [0], [1], [0, 0, 1, 1], [], []>} : vector<8x8xf32>, vector<8x32xf32>, vector<8x32xf32> -> vector<8x32xf32>
    %696 = arith.addf %694, %695 : vector<8x32xf32>
    %cst_407 = arith.constant dense<0.000000e+00> : vector<8x32xf32>
    %697 = tpu.matmul %693, %13, %cst_407 {dimension_numbers = #tpu.dot_dimension_numbers<[1], [0], [0], [1], [0, 0, 1, 1], [], []>} : vector<8x32xf32>, vector<32x32xf32>, vector<8x32xf32> -> vector<8x32xf32>
    %698 = arith.addf %696, %697 : vector<8x32xf32>
    %699 = arith.addf %698, %24 : vector<8x32xf32>
    %700 = arith.negf %699 : vector<8x32xf32>
    %701 = math.exp %700 : vector<8x32xf32>
    %cst_408 = arith.constant 1.000000e+00 : f32
    %702 = vector.broadcast %cst_408 : f32 to vector<8x32xf32>
    %703 = arith.addf %702, %701 : vector<8x32xf32>
    %704 = arith.divf %702, %703 : vector<8x32xf32>
    %cst_409 = arith.constant dense<0.000000e+00> : vector<8x32xf32>
    %705 = tpu.matmul %689, %3, %cst_409 {dimension_numbers = #tpu.dot_dimension_numbers<[1], [0], [0], [1], [0, 0, 1, 1], [], []>} : vector<8x4xf32>, vector<4x32xf32>, vector<8x32xf32> -> vector<8x32xf32>
    %cst_410 = arith.constant dense<0.000000e+00> : vector<8x32xf32>
    %706 = tpu.matmul %691, %9, %cst_410 {dimension_numbers = #tpu.dot_dimension_numbers<[1], [0], [0], [1], [0, 0, 1, 1], [], []>} : vector<8x8xf32>, vector<8x32xf32>, vector<8x32xf32> -> vector<8x32xf32>
    %707 = arith.addf %705, %706 : vector<8x32xf32>
    %cst_411 = arith.constant dense<0.000000e+00> : vector<8x32xf32>
    %708 = tpu.matmul %693, %15, %cst_411 {dimension_numbers = #tpu.dot_dimension_numbers<[1], [0], [0], [1], [0, 0, 1, 1], [], []>} : vector<8x32xf32>, vector<32x32xf32>, vector<8x32xf32> -> vector<8x32xf32>
    %709 = arith.addf %707, %708 : vector<8x32xf32>
    %710 = arith.addf %709, %31 : vector<8x32xf32>
    %711 = arith.negf %710 : vector<8x32xf32>
    %712 = math.exp %711 : vector<8x32xf32>
    %cst_412 = arith.constant 1.000000e+00 : f32
    %713 = vector.broadcast %cst_412 : f32 to vector<8x32xf32>
    %714 = arith.addf %713, %712 : vector<8x32xf32>
    %715 = arith.divf %713, %714 : vector<8x32xf32>
    %cst_413 = arith.constant dense<0.000000e+00> : vector<8x32xf32>
    %716 = tpu.matmul %689, %5, %cst_413 {dimension_numbers = #tpu.dot_dimension_numbers<[1], [0], [0], [1], [0, 0, 1, 1], [], []>} : vector<8x4xf32>, vector<4x32xf32>, vector<8x32xf32> -> vector<8x32xf32>
    %cst_414 = arith.constant dense<0.000000e+00> : vector<8x32xf32>
    %717 = tpu.matmul %691, %11, %cst_414 {dimension_numbers = #tpu.dot_dimension_numbers<[1], [0], [0], [1], [0, 0, 1, 1], [], []>} : vector<8x8xf32>, vector<8x32xf32>, vector<8x32xf32> -> vector<8x32xf32>
    %718 = arith.addf %716, %717 : vector<8x32xf32>
    %719 = arith.addf %718, %35 : vector<8x32xf32>
    %cst_415 = arith.constant dense<0.000000e+00> : vector<8x32xf32>
    %720 = tpu.matmul %693, %17, %cst_415 {dimension_numbers = #tpu.dot_dimension_numbers<[1], [0], [0], [1], [0, 0, 1, 1], [], []>} : vector<8x32xf32>, vector<32x32xf32>, vector<8x32xf32> -> vector<8x32xf32>
    %721 = arith.addf %720, %39 : vector<8x32xf32>
    %722 = arith.mulf %704, %721 : vector<8x32xf32>
    %723 = arith.addf %719, %722 : vector<8x32xf32>
    %724 = math.tanh %723 : vector<8x32xf32>
    %cst_416 = arith.constant 1.000000e+00 : f32
    %725 = vector.broadcast %cst_416 : f32 to vector<8x32xf32>
    %726 = arith.subf %725, %715 : vector<8x32xf32>
    %727 = arith.mulf %726, %724 : vector<8x32xf32>
    %728 = arith.mulf %715, %693 : vector<8x32xf32>
    %729 = arith.addf %727, %728 : vector<8x32xf32>
    %c0_417 = arith.constant 0 : index
    %c0_418 = arith.constant 0 : index
    %c0_419 = arith.constant 0 : index
    %730 = vector.load %arg16[%c0_417, %c0_418, %c0_419] : memref<2x8x32xf32, #tpu.memory_space<vmem>>, vector<1x8x32xf32>
    %731 = vector.shape_cast %730 : vector<1x8x32xf32> to vector<8x32xf32>
    %732 = vector.shape_cast %729 : vector<8x32xf32> to vector<1x8x32xf32>
    tpu.vector_store %arg16[%c0_417, %c0_418, %c0_419], %732 {strides = array<i32>} : memref<2x8x32xf32, #tpu.memory_space<vmem>>, vector<1x8x32xf32>,
    %c1_420 = arith.constant 1 : index
    %c0_421 = arith.constant 0 : index
    %c0_422 = arith.constant 0 : index
    %733 = vector.load %arg16[%c1_420, %c0_421, %c0_422] : memref<2x8x32xf32, #tpu.memory_space<vmem>>, vector<1x8x32xf32>
    %734 = vector.shape_cast %733 : vector<1x8x32xf32> to vector<8x32xf32>
    %cst_423 = arith.constant dense<0.000000e+00> : vector<8x32xf32>
    %735 = tpu.matmul %729, %41, %cst_423 {dimension_numbers = #tpu.dot_dimension_numbers<[1], [0], [0], [1], [0, 0, 1, 1], [], []>} : vector<8x32xf32>, vector<32x32xf32>, vector<8x32xf32> -> vector<8x32xf32>
    %cst_424 = arith.constant dense<0.000000e+00> : vector<8x32xf32>
    %736 = tpu.matmul %734, %47, %cst_424 {dimension_numbers = #tpu.dot_dimension_numbers<[1], [0], [0], [1], [0, 0, 1, 1], [], []>} : vector<8x32xf32>, vector<32x32xf32>, vector<8x32xf32> -> vector<8x32xf32>
    %737 = arith.addf %735, %736 : vector<8x32xf32>
    %738 = arith.addf %737, %58 : vector<8x32xf32>
    %739 = arith.negf %738 : vector<8x32xf32>
    %740 = math.exp %739 : vector<8x32xf32>
    %cst_425 = arith.constant 1.000000e+00 : f32
    %741 = vector.broadcast %cst_425 : f32 to vector<8x32xf32>
    %742 = arith.addf %741, %740 : vector<8x32xf32>
    %743 = arith.divf %741, %742 : vector<8x32xf32>
    %cst_426 = arith.constant dense<0.000000e+00> : vector<8x32xf32>
    %744 = tpu.matmul %729, %43, %cst_426 {dimension_numbers = #tpu.dot_dimension_numbers<[1], [0], [0], [1], [0, 0, 1, 1], [], []>} : vector<8x32xf32>, vector<32x32xf32>, vector<8x32xf32> -> vector<8x32xf32>
    %cst_427 = arith.constant dense<0.000000e+00> : vector<8x32xf32>
    %745 = tpu.matmul %734, %49, %cst_427 {dimension_numbers = #tpu.dot_dimension_numbers<[1], [0], [0], [1], [0, 0, 1, 1], [], []>} : vector<8x32xf32>, vector<32x32xf32>, vector<8x32xf32> -> vector<8x32xf32>
    %746 = arith.addf %744, %745 : vector<8x32xf32>
    %747 = arith.addf %746, %65 : vector<8x32xf32>
    %748 = arith.negf %747 : vector<8x32xf32>
    %749 = math.exp %748 : vector<8x32xf32>
    %cst_428 = arith.constant 1.000000e+00 : f32
    %750 = vector.broadcast %cst_428 : f32 to vector<8x32xf32>
    %751 = arith.addf %750, %749 : vector<8x32xf32>
    %752 = arith.divf %750, %751 : vector<8x32xf32>
    %cst_429 = arith.constant dense<0.000000e+00> : vector<8x32xf32>
    %753 = tpu.matmul %729, %45, %cst_429 {dimension_numbers = #tpu.dot_dimension_numbers<[1], [0], [0], [1], [0, 0, 1, 1], [], []>} : vector<8x32xf32>, vector<32x32xf32>, vector<8x32xf32> -> vector<8x32xf32>
    %754 = arith.addf %753, %69 : vector<8x32xf32>
    %cst_430 = arith.constant dense<0.000000e+00> : vector<8x32xf32>
    %755 = tpu.matmul %734, %51, %cst_430 {dimension_numbers = #tpu.dot_dimension_numbers<[1], [0], [0], [1], [0, 0, 1, 1], [], []>} : vector<8x32xf32>, vector<32x32xf32>, vector<8x32xf32> -> vector<8x32xf32>
    %756 = arith.addf %755, %73 : vector<8x32xf32>
    %757 = arith.mulf %743, %756 : vector<8x32xf32>
    %758 = arith.addf %754, %757 : vector<8x32xf32>
    %759 = math.tanh %758 : vector<8x32xf32>
    %cst_431 = arith.constant 1.000000e+00 : f32
    %760 = vector.broadcast %cst_431 : f32 to vector<8x32xf32>
    %761 = arith.subf %760, %752 : vector<8x32xf32>
    %762 = arith.mulf %761, %759 : vector<8x32xf32>
    %763 = arith.mulf %752, %734 : vector<8x32xf32>
    %764 = arith.addf %762, %763 : vector<8x32xf32>
    %c1_432 = arith.constant 1 : index
    %c0_433 = arith.constant 0 : index
    %c0_434 = arith.constant 0 : index
    %765 = vector.load %arg16[%c1_432, %c0_433, %c0_434] : memref<2x8x32xf32, #tpu.memory_space<vmem>>, vector<1x8x32xf32>
    %766 = vector.shape_cast %765 : vector<1x8x32xf32> to vector<8x32xf32>
    %767 = vector.shape_cast %764 : vector<8x32xf32> to vector<1x8x32xf32>
    tpu.vector_store %arg16[%c1_432, %c0_433, %c0_434], %767 {strides = array<i32>} : memref<2x8x32xf32, #tpu.memory_space<vmem>>, vector<1x8x32xf32>,
    %cst_435 = arith.constant dense<0.000000e+00> : vector<8x4xf32>
    %768 = tpu.matmul %764, %74, %cst_435 {dimension_numbers = #tpu.dot_dimension_numbers<[1], [0], [0], [1], [0, 0, 1, 1], [], []>} : vector<8x32xf32>, vector<32x4xf32>, vector<8x4xf32> -> vector<8x4xf32>
    %769 = arith.addf %768, %77 : vector<8x4xf32>
    %770 = math.tanh %769 : vector<8x4xf32>
    %c0_436 = arith.constant 0 : index
    %c0_437 = arith.constant 0 : index
    %771 = vector.load %arg17[%c0_436, %c0_437] : memref<8x4xf32, #tpu.memory_space<vmem>>, vector<8x4xf32>
    tpu.vector_store %arg17[%c0_436, %c0_437], %770 {strides = array<i32>} : memref<8x4xf32, #tpu.memory_space<vmem>>, vector<8x4xf32>,
    %c7_438 = arith.constant 7 : index
    %c0_439 = arith.constant 0 : index
    %c0_440 = arith.constant 0 : index
    %772 = vector.load %arg15[%c7_438, %c0_439, %c0_440] : memref<8x8x4xf32, #tpu.memory_space<vmem>>, vector<1x8x4xf32>
    %773 = vector.shape_cast %772 : vector<1x8x4xf32> to vector<8x4xf32>
    %774 = vector.shape_cast %770 : vector<8x4xf32> to vector<1x8x4xf32>
    tpu.vector_store %arg15[%c7_438, %c0_439, %c0_440], %774 {strides = array<i32>} : memref<8x8x4xf32, #tpu.memory_space<vmem>>, vector<1x8x4xf32>,
    return
  }
}

</mosaic_0001>

<bundles_post_ra>
// kernel: tpu_custom_call.1
= control target key start
LH: loop header
LB: loop body
LE: loop exit
PB: predicated region body
PF: predicated region fallthrough
CT: control target
= control target key end

     0   :  { %20 = vsyncpa [#allocation5], 0  ;;  %s14173_s0 = inlined_call_operand.vmem [shape: f32[8,16], index: 0, kind: input, shape index: {}]   ;;  %s14174_s1 = inlined_call_operand.hbm [shape: f32[8,8,8], index: 1, kind: input, shape index: {}]   ;;  %s14175_s2 = inlined_call_operand.vmem [shape: f32[16,4], index: 2, kind: input, shape index: {}]   ;;  %s14176_s3 = inlined_call_operand.vmem [shape: f32[1,4], index: 3, kind: input, shape index: {}]   ;;  %s14177_s4 = inlined_call_operand.vmem [shape: f32[3,4,32], index: 4, kind: input, shape index: {}]   ;;  %s14178_s5 = inlined_call_operand.vmem [shape: f32[3,8,32], index: 5, kind: input, shape index: {}]   ;;  %s14179_s6 = inlined_call_operand.hbm [shape: f32[3,32,32], index: 6, kind: input, shape index: {}]   ;;  %s14180_s7 = inlined_call_operand.vmem [shape: f32[3,1,32], index: 7, kind: input, shape index: {}]   ;;  %s14181_s8 = inlined_call_operand.vmem [shape: f32[3,1,32], index: 8, kind: input, shape index: {}]   ;;  %s14182_s9 = inlined_call_operand.hbm [shape: f32[3,32,32], index: 9, kind: input, shape index: {}]   ;;  %s14183_s10 = inlined_call_operand.hbm [shape: f32[3,32,32], index: 10, kind: input, shape index: {}]   ;;  %s14184_s11 = inlined_call_operand.vmem [shape: f32[3,1,32], index: 11, kind: input, shape index: {}]   ;;  %s14185_s12 = inlined_call_operand.vmem [shape: f32[3,1,32], index: 12, kind: input, shape index: {}]   ;;  %s14186_s13 = inlined_call_operand.vmem [shape: f32[32,4], index: 13, kind: input, shape index: {}]   ;;  %s14187_s14 = inlined_call_operand.vmem [shape: f32[1,4], index: 14, kind: input, shape index: {}]   ;;  %s14188_s15 = inlined_call_operand.vmem [shape: f32[8,8,4], index: 15, kind: output, shape index: {}]  }
   0x1   :  { %21 = vsyncpa [#allocation7], 0 }
   0x2   :  { %22 = vsyncpa [#allocation10], 0  ;;  %s12518_s18 = smov [#allocation6]   ;;  %s12519_s20 = smov [#allocation4]  }
   0x3   :  { %s50_s19 = sshll.u32 %s12518_s18, 4  ;;  %s30_s21 = sshll.u32 %s12519_s20, 4  ;;  %s51_s19 = int_to_ptr.vmem [resolvable:$true] %s50_s19  ;;  %s12607_s21 = int_to_ptr.vmem [resolvable:$true] %s30_s21 }
   0x4   :  { %s12424_s24 = scalar_lea.hbm %s14179_s6, 1536 }
   0x5   :  { %p12425_p0 = scmp.ne.s32.totalorder %s14179_s6, %s12424_s24  ;;  %p12428_p1 = scmp.lt.u32.totalorder %s12424_s24, %s14179_s6 }
   0x7   :  { %p12430_p2 = pnand %p12428_p1, %p12425_p0 }
   0x9   :  { %12433 = shalt.err (!%p12430_p2)
}
   0xa   :  { %s12434_s29 = scalar_lea.vmem %s51_s19, 1536  ;;  %p12439_p4 = scmp.lt.s32.totalorder %s51_s19, %s51_s19 }
   0xb   :  { %p12435_p3 = scmp.ne.s32.totalorder %s51_s19, %s12434_s29  ;;  %p12440_p5 = scmp.lt.s32.totalorder %s12434_s29, %s12434_s29 }
   0xd   :  { %p12441_p6 = por %p12440_p5, %p12439_p4 }
   0xf   :  { %p12442_p7 = pnand %p12441_p6, %p12435_p3 }
  0x11   :  { %12445 = shalt.err (!%p12442_p7)
}
  0x12   :  { %s12520_s30 = smov 128   ;;  %s12521_s16 = smov 8  }
  0x13   :  { %56 = dma.hbm_to_vmem [thread:$0]  %s14179_s6, 1536, %s51_s19, [#allocation7], %s12520_s30, %s12520_s30, %s12521_s16  }
  0x14   :  { %s12446_s23 = scalar_lea.hbm %s14174_s1, 1024 }
  0x15   :  { %p12447_p8 = scmp.ne.s32.totalorder %s14174_s1, %s12446_s23  ;;  %p12450_p9 = scmp.lt.u32.totalorder %s12446_s23, %s14174_s1 }
  0x17   :  { %p12452_p10 = pnand %p12450_p9, %p12447_p8 }
  0x19   :  { %12455 = shalt.err (!%p12452_p10)
}
  0x1a   :  { %s12456_s28 = scalar_lea.vmem %s12607_s21, 1024  ;;  %p12461_p12 = scmp.lt.s32.totalorder %s12607_s21, %s12607_s21 }
  0x1b   :  { %p12457_p11 = scmp.ne.s32.totalorder %s12607_s21, %s12456_s28  ;;  %p12462_p13 = scmp.lt.s32.totalorder %s12456_s28, %s12456_s28 }
  0x1d   :  { %p12463_p0 = por %p12462_p13, %p12461_p12 }
  0x1f   :  { %p12464_p1 = pnand %p12463_p0, %p12457_p11 }
  0x21   :  { %12467 = shalt.err (!%p12464_p1)
}
  0x22   :  { %36 = dma.hbm_to_vmem [thread:$0]  %s14174_s1, 1024, %s12607_s21, [#allocation5], %s12520_s30, %s12520_s30, %s12521_s16  }
  0x23   :  { %s12522_s29 = smov [#allocation8]   ;;  %s12523_s18 = smov [#allocation9]  }
  0x24   :  { %s66_s17 = sshll.u32 %s12522_s29, 4  ;;  %s78_s20 = sshll.u32 %s12523_s18, 4  ;;  %s67_s17 = int_to_ptr.vmem [resolvable:$true] %s66_s17  ;;  %s12644_s20 = int_to_ptr.vmem [resolvable:$true] %s78_s20 }
  0x25   :  { %s12468_s24 = scalar_lea.hbm %s14182_s9, 1536 }
  0x26   :  { %p12469_p2 = scmp.ne.s32.totalorder %s14182_s9, %s12468_s24  ;;  %p12472_p3 = scmp.lt.u32.totalorder %s12468_s24, %s14182_s9 }
  0x28   :  { %p12474_p4 = pnand %p12472_p3, %p12469_p2 }
  0x2a   :  { %12477 = shalt.err (!%p12474_p4)
}
  0x2b   :  { %s12478_s1 = scalar_lea.vmem %s67_s17, 1536  ;;  %p12483_p6 = scmp.lt.s32.totalorder %s67_s17, %s67_s17 }
  0x2c   :  { %p12479_p5 = scmp.ne.s32.totalorder %s67_s17, %s12478_s1  ;;  %p12484_p7 = scmp.lt.s32.totalorder %s12478_s1, %s12478_s1 }
  0x2e   :  { %p12485_p8 = por %p12484_p7, %p12483_p6 }
  0x30   :  { %p12486_p9 = pnand %p12485_p8, %p12479_p5 }
  0x32   :  { %12489 = shalt.err (!%p12486_p9)
}
  0x33   :  { %72 = dma.hbm_to_vmem [thread:$0]  %s14182_s9, 1536, %s67_s17, [#allocation7], %s12520_s30, %s12520_s30, %s12521_s16  }
  0x34   :  { %s12490_s18 = scalar_lea.hbm %s14183_s10, 1536 }
  0x35   :  { %p12491_p10 = scmp.ne.s32.totalorder %s14183_s10, %s12490_s18  ;;  %p12494_p11 = scmp.lt.u32.totalorder %s12490_s18, %s14183_s10 }
  0x37   :  { %p12496_p12 = pnand %p12494_p11, %p12491_p10 }
  0x39   :  { %12499 = shalt.err (!%p12496_p12)
}
  0x3a   :  { %s12500_s26 = scalar_lea.vmem %s12644_s20, 1536  ;;  %p12505_p0 = scmp.lt.s32.totalorder %s12644_s20, %s12644_s20 }
  0x3b   :  { %p12501_p13 = scmp.ne.s32.totalorder %s12644_s20, %s12500_s26  ;;  %p12506_p1 = scmp.lt.s32.totalorder %s12500_s26, %s12500_s26 }
  0x3d   :  { %p12507_p2 = por %p12506_p1, %p12505_p0 }
  0x3f   :  { %p12508_p3 = pnand %p12507_p2, %p12501_p13 }
  0x41   :  { %12511 = shalt.err (!%p12508_p3)
}
  0x42   :  { %84 = dma.hbm_to_vmem [thread:$0]  %s14183_s10, 1536, %s12644_s20, [#allocation10], %s12520_s30, %s12520_s30, %s12521_s16  }
  0x43   :  { %12512 = dma.done.wait [#allocation5], 1024  }
  0x44   :  { %12513 = vsyncadd [#allocation5], 4294966272 }
  0x45   :  { %12514 = dma.done.wait [#allocation7], 3072  }
  0x46   :  { %12515 = vsyncadd [#allocation7], 4294964224 }
  0x47   :  { %12516 = dma.done.wait [#allocation10], 1536  }
  0x48   :  { %12517 = vsyncadd [#allocation10], 4294965760  ;;  %v12524_v0 = vmov 0.0|0.0   ;;  %vm12525_vm0 = vmmov 0   ;;  %v12526_v1 = vmov 0.0   ;;  %v244_v2 = vld [vmem:[%s14175_s2] sm:$0xff] }
  0x49   :  { %11734 = vmatprep.subr.bf16.mxu0 %v12524_v0  ;;  %10611 = vmatprep.mubr.msk.f32.mxu0 %vm12525_vm0, %v12526_v1  ;;  %v245_v3 = vld [vmem:[%s14175_s2 + $0x8] sm:$0xff]  ;;  %v243_v5 = vld [vmem:[%s14173_s0] sm:$0xff]  ;;  %vm253_vm1 = vcmask 130048   ;;  %v115_v6 = vld [vmem:[#allocation6] sm:$0xff]  ;;  %vm332_vm2 = vcmask 64512   ;;  %vm409_vm3 = vcmask 1043456  }
  0x4a   :  { %10614 = vmatprep.subr.mxu1 %v12526_v1  ;;  %10616 = vmatprep.mubr.msk.f32.mxu1 %vm12525_vm0, %v12526_v1  ;;  %v11735_v4 = vpack.c.bf16 %v245_v3, %v244_v2  ;;  %v116_v7 = vld [vmem:[#allocation6 + $0x8] sm:$0xff]  ;;  %v12706_v10 = vld [vmem:[#allocation4] sm:$0xff]  ;;  %v117_v12 = vld [vmem:[#allocation6 + $0x10] sm:$0xff]  ;;  %vm240_vm4 = vcmask 261120   ;;  %vm327_vm5 = vcmask 31744  }
  0x4b   :  { %v12702_v8 = vld [vmem:[%s14178_s5] sm:$0xff]  ;;  %v12704_v9 = vpack.c.bf16 %v116_v7, %v115_v6  ;;  %v118_v13 = vld [vmem:[#allocation6 + $0x18] sm:$0xff]  ;;  %241 = vst.msk [vmem:[#allocation2] sm:$0xff] %vm240_vm4, %v12526_v1  ;;  %242 = vst.msk [vmem:[#allocation2 + $0x8] sm:$0xff] %vm240_vm4, %v12526_v1 }
  0x4c   :  { %11736 = vmatpush3.bf16.msra.mxu0 %v11735_v4  ;;  %10615 = vmatpush3.msra.mxu1 %v12702_v8  ;;  %v12712_v11 = vld [vmem:[%s14177_s4] sm:$0xf]  ;;  %v12717_v14 = vpack.c.bf16 %v118_v13, %v117_v12  ;;  %v120_v15 = vld [vmem:[#allocation6 + $0x20] sm:$0xff]  ;;  %v122_v19 = vld [vmem:[#allocation6 + $0x30] sm:$0xff] }
  0x4d   :  { %11737 = vmatprep.subr.bf16.mxu0 %v12524_v0  ;;  %10617 = vmatmul.mubr.msk.f32.vlgmr.msra.gmra.mrb[0].mxu1 %vm332_vm2, %v12706_v10  ;;  %v121_v16 = vld [vmem:[#allocation6 + $0x28] sm:$0xff]  ;;  %v123_v20 = vld [vmem:[#allocation6 + $0x38] sm:$0xff]  ;;  %v125_v22 = vld [vmem:[#allocation6 + $0x40] sm:$0xff] }
  0x4e   :  { %10619 = vmatprep.subr.mxu1 %v12526_v1  ;;  %10621 = vmatprep.mubr.msk.f32.mxu1 %vm12525_vm0, %v12526_v1  ;;  %v12734_v18 = vpack.c.bf16 %v121_v16, %v120_v15  ;;  %v12742_v21 = vpack.c.bf16 %v123_v20, %v122_v19  ;;  %v126_v23 = vld [vmem:[#allocation6 + $0x48] sm:$0xff]  ;;  %v127_v24 = vld [vmem:[#allocation6 + $0x50] sm:$0xff]  ;;  %v128_v26 = vld [vmem:[#allocation6 + $0x58] sm:$0xff] }
  0x4f   :  { %10612 = vmatmul.mubr.msk.f32.vlgmr.msra.gmra.mrb[0].mxu0 %vm253_vm1, %v243_v5  ;;  %10620 = vmatpush3.msk.msra.mxu1 %vm409_vm3, %v12712_v11  ;;  %v12750_v25 = vpack.c.bf16 %v126_v23, %v125_v22  ;;  %v12753_v27 = vpack.c.bf16 %v128_v26, %v127_v24  ;;  %v9915_v28 = vld [vmem:[%s14176_s3] ss:$0 sm:$0xff]  ;;  %v12769_v32 = vld [vmem:[%s14178_s5 + $0x8] sm:$0xff]  ;;  %v12779_v34 = vld [vmem:[%s14177_s4 + $0x4] sm:$0xf] }
  0x50   :  { %10632 = vmatprep.mubr.msk.f32.mxu0 %vm12525_vm0, %v12526_v1  ;;  %11739 = vmatpush3.bf16.msra.mxu0 %v12704_v9  ;;  %v12791_v35 = vld [vmem:[%s14178_s5 + $0x10] sm:$0xff]  ;;  %v12801_v36 = vld [vmem:[%s14177_s4 + $0x8] sm:$0xf]  ;;  %v179_v43 = vld [vmem:[#allocation9] sm:$0xff] }
  0x51   :  { %11740 = vmatprep.subr.bf16.mxu0 %v12524_v0  ;;  %10635 = vmatprep.subr.mxu1 %v12526_v1  ;;  %v180_v44 = vld [vmem:[#allocation9 + $0x8] sm:$0xff]  ;;  %v181_v48 = vld [vmem:[#allocation9 + $0x10] sm:$0xff]  ;;  %v182_v49 = vld [vmem:[#allocation9 + $0x18] sm:$0xff] }
  0x52   :  { %v12732_v17 = vld [vmem:[#allocation2] sm:$0xff]  ;;  %v12817_v45 = vpack.c.bf16 %v180_v44, %v179_v43  ;;  %v12823_v50 = vpack.c.bf16 %v182_v49, %v181_v48  ;;  %v184_v51 = vld [vmem:[#allocation9 + $0x20] sm:$0xff]  ;;  %v12829_v54 = vld [vmem:[#allocation2 + $0x8] sm:$0xff] }
  0x53   :  { %v185_v52 = vld [vmem:[#allocation9 + $0x28] sm:$0xff]  ;;  %v186_v55 = vld [vmem:[#allocation9 + $0x30] sm:$0xff]  ;;  %v187_v56 = vld [vmem:[#allocation9 + $0x38] sm:$0xff] }
  0x54   :  { %11742 = vmatpush3.bf16.msra.mxu0 %v12717_v14  ;;  %v12827_v53 = vpack.c.bf16 %v185_v52, %v184_v51  ;;  %v165_v57 = vld [vmem:[#allocation8] sm:$0xff]  ;;  %v12834_v58 = vpack.c.bf16 %v187_v56, %v186_v55  ;;  %v166_v59 = vld [vmem:[#allocation8 + $0x8] sm:$0xff]  ;;  %v167_v63 = vld [vmem:[#allocation8 + $0x10] sm:$0xff] }
  0x55   :  { %11743 = vmatprep.subr.bf16.mxu0 %v12524_v0  ;;  %v175_v60 = vld [vmem:[#allocation8 + $0x40] sm:$0xff]  ;;  %v12839_v61 = vpack.c.bf16 %v166_v59, %v165_v57  ;;  %v176_v62 = vld [vmem:[#allocation8 + $0x48] sm:$0xff]  ;;  %v168_v2 = vld [vmem:[#allocation8 + $0x18] sm:$0xff] }
  0x56   :  { %v12842_v3 = vpack.c.bf16 %v168_v2, %v167_v63  ;;  %v12845_v4 = vpack.c.bf16 %v176_v62, %v175_v60  ;;  %v177_v5 = vld [vmem:[#allocation8 + $0x50] sm:$0xff]  ;;  %v178_v6 = vld [vmem:[#allocation8 + $0x58] sm:$0xff]  ;;  %v129_v13 = vld [vmem:[%s14180_s7] sm:$0x1] }
  0x57   :  { %10633 = vmatmul.mubr.msk.f32.vlgmr.msra.gmra.mrb[2].mxu0 %vm240_vm4, %v12732_v17  ;;  %v12853_v7 = vpack.c.bf16 %v178_v6, %v177_v5  ;;  %v130_v15 = vld [vmem:[%s14181_s8] sm:$0x1]  ;;  %v9902_v26 = vld [vmem:[%s14180_s7 + $0x1] sm:$0x1]  ;;  %v12888_v60 = vld [vmem:[%s14181_s8 + $0x2] ss:$0 sm:$0xff] }
  0x58   :  { %11745 = vmatpush3.bf16.msra.mxu0 %v12734_v18  ;;  %10653 = vmatprep.mubr.msk.f32.mxu0 %vm12525_vm0, %v12526_v1  ;;  %v131_v16 = vadd.f32 %v130_v15, %v129_v13  ;;  %v12895_v2 = vld [vmem:[%s14180_s7 + $0x2] ss:$0 sm:$0xff] }
  0x59   :  { %11746 = vmatprep.subr.bf16.mxu0 %v12524_v0 }
  0x5c   :  { %11748 = vmatpush3.bf16.msra.mxu0 %v12742_v21 }
  0x5d   :  { %11749 = vmatprep.subr.bf16.mxu0 %v12524_v0 }
  0x5f   :  { %10654 = vmatmul.mubr.msk.f32.vlgmr.msra.gmra.mrb[4].mxu0 %vm240_vm4, %v12732_v17 }
  0x60   :  { %10674 = vmatprep.mubr.msk.f32.mxu0 %vm12525_vm0, %v12526_v1  ;;  %11751 = vmatpush3.bf16.msra.mxu0 %v12750_v25 }
  0x61   :  { %11752 = vmatprep.subr.bf16.mxu0 %v12524_v0 }
  0x64   :  { %11754 = vmatpush3.bf16.msra.mxu0 %v12753_v27 }
  0x65   :  { %11761 = vmatprep.subr.bf16.mxu0 %v12524_v0 }
  0x67   :  { %10675 = vmatmul.mubr.msk.f32.vlgmr.msra.gmra.mrb[6].mxu0 %vm240_vm4, %v12732_v17 }
  0x68   :  { %10696 = vmatprep.mubr.msk.f32.mxu0 %vm12525_vm0, %v12526_v1  ;;  %11763 = vmatpush3.bf16.msra.mxu0 %v12839_v61 }
  0x69   :  { %11764 = vmatprep.subr.bf16.mxu0 %v12524_v0 }
  0x6c   :  { %11766 = vmatpush3.bf16.msra.mxu0 %v12842_v3 }
  0x6d   :  { %11773 = vmatprep.subr.bf16.mxu0 %v12524_v0 }
 0x120   :  { %v402_v37 = vpop.f32.mrb[0].mxu1 }
 0x121   :  { %v10618_v38 = vpop.f32.mrb[1].mxu1 }
 0x122   :  { %v323_v29 = vpop.f32.mrb[0].mxu0 }
 0x123   :  { %v324_v30 = vadd.f32 %v9915_v28, %v323_v29  ;;  %v10613_v31 = vpop.f32.mrb[1].mxu0  ;;  %v9903_v28 = vld [vmem:[%s14181_s8 + $0x1] sm:$0x1] }
 0x124   :  { %v142_v38 = vadd.f32 %v9903_v28, %v9902_v26 }
 0x125   :  { %328 = vst.msk [vmem:[#allocation3] sm:$0xff] %vm327_vm5, %v324_v30 }
 0x12a   :  { %v12813_v39 = vpop.f32.mrb[2].mxu0 }
 0x12b   :  { %v10634_v40 = vpop.f32.mrb[3].mxu0 }
 0x12c   :  { %v329_v33 = vld [vmem:[#allocation3] sm:$0xff] }
 0x12d   :  { %10622 = vmatmul.mubr.msk.f32.vlgmr.msra.gmra.mrb[2].mxu1 %vm327_vm5, %v329_v33 }
 0x12e   :  { %10636 = vmatpush3.msra.mxu1 %v12769_v32  ;;  %10637 = vmatprep.mubr.msk.f32.mxu1 %vm12525_vm0, %v12526_v1 }
 0x12f   :  { %10640 = vmatprep.subr.mxu1 %v12526_v1 }
 0x131   :  { %10638 = vmatmul.mubr.msk.f32.vlgmr.msra.gmra.mrb[4].mxu1 %vm332_vm2, %v12706_v10 }
 0x132   :  { %10641 = vmatpush3.msk.msra.mxu1 %vm409_vm3, %v12779_v34  ;;  %10642 = vmatprep.mubr.msk.f32.mxu1 %vm12525_vm0, %v12526_v1  ;;  %v12815_v41 = vpop.f32.mrb[4].mxu0 }
 0x133   :  { %10656 = vmatprep.subr.mxu1 %v12526_v1  ;;  %v10655_v42 = vpop.f32.mrb[5].mxu0 }
 0x135   :  { %10643 = vmatmul.mubr.msk.f32.vlgmr.msra.gmra.mrb[6].mxu1 %vm327_vm5, %v329_v33 }
 0x136   :  { %10657 = vmatpush3.msra.mxu1 %v12791_v35  ;;  %10658 = vmatprep.mubr.msk.f32.mxu1 %vm12525_vm0, %v12526_v1 }
 0x137   :  { %10661 = vmatprep.subr.mxu1 %v12526_v1 }
 0x139   :  { %10659 = vmatmul.mubr.msk.f32.vlgmr.msra.gmra.mrb[8].mxu1 %vm332_vm2, %v12706_v10  ;;  %v133_v10 = vlaneseq }
 0x13a   :  { %10662 = vmatpush3.msk.msra.mxu1 %vm409_vm3, %v12801_v36  ;;  %10663 = vmatprep.mubr.msk.f32.mxu1 %vm12525_vm0, %v12526_v1  ;;  %v12819_v46 = vpop.f32.mrb[6].mxu0 }
 0x13b   :  { %11755 = vmatprep.subr.bf16.mxu1 %v12524_v0  ;;  %v10676_v47 = vpop.f32.mrb[7].mxu0  ;;  %v134_v12 = vshrl.u32 %v133_v10, 7 }
 0x13d   :  { %10664 = vmatmul.mubr.msk.f32.vlgmr.msra.gmra.mrb[10].mxu1 %vm327_vm5, %v329_v33  ;;  %v12867_v19 = vsub.s32 0, %v134_v12 }
 0x13e   :  { %10685 = vmatprep.mubr.msk.f32.mxu1 %vm12525_vm0, %v12526_v1  ;;  %11757 = vmatpush3.bf16.msra.mxu1 %v12817_v45 }
 0x13f   :  { %11758 = vmatprep.subr.bf16.mxu1 %v12524_v0  ;;  %v12870_v24 = vrot.slane %v131_v16, %v12867_v19  ;;  %v12881_v44 = vrot.slane %v142_v38, %v12867_v19  ;;  %v170_v16 = vld [vmem:[#allocation8 + $0x20] sm:$0xff] }
 0x142   :  { %11760 = vmatpush3.bf16.msra.mxu1 %v12823_v50 }
 0x143   :  { %11767 = vmatprep.subr.bf16.mxu1 %v12524_v0 }
 0x145   :  { %10686 = vmatmul.mubr.msk.f32.vlgmr.msra.gmra.mrb[12].mxu1 %vm240_vm4, %v12829_v54 }
 0x146   :  { %11769 = vmatpush3.bf16.msra.mxu1 %v12827_v53  ;;  %10707 = vmatprep.mubr.msk.f32.mxu1 %vm12525_vm0, %v12526_v1 }
 0x147   :  { %11770 = vmatprep.subr.bf16.mxu1 %v12524_v0 }
 0x14a   :  { %11772 = vmatpush3.bf16.msra.mxu1 %v12834_v58 }
 0x14b   :  { %11779 = vmatprep.subr.bf16.mxu1 %v12524_v0 }
 0x14d   :  { %10708 = vmatmul.mubr.msk.f32.vlgmr.msra.gmra.mrb[14].mxu1 %vm240_vm4, %v12829_v54 }
 0x14e   :  { %11781 = vmatpush3.bf16.msra.mxu1 %v12845_v4  ;;  %10729 = vmatprep.mubr.msk.f32.mxu1 %vm12525_vm0, %v12526_v1 }
 0x14f   :  { %11782 = vmatprep.subr.bf16.mxu1 %v12524_v0 }
 0x152   :  { %11784 = vmatpush3.bf16.msra.mxu1 %v12853_v7 }
 0x153   :  { %11791 = vmatprep.subr.bf16.mxu1 %v12524_v0 }
 0x200   :  { %v479_v20 = vpop.f32.mrb[2].mxu1 }
 0x201   :  { %v480_v22 = vadd.f32 %v479_v20, %v402_v37  ;;  %v10623_v23 = vpop.f32.mrb[3].mxu1  ;;  %v171_v20 = vld [vmem:[#allocation8 + $0x28] sm:$0xff] }
 0x202   :  { %v12899_v26 = vpack.c.bf16 %v171_v20, %v170_v16 }
 0x203   :  { %v556_v29 = vadd.f32 %v12813_v39, %v480_v22 }
 0x204   :  { %v630_v30 = vpop.f32.mrb[4].mxu1 }
 0x205   :  { %v557_v31 = vadd.f32 %v556_v29, %v12870_v24  ;;  %v10639_v33 = vpop.f32.mrb[5].mxu1  ;;  %v172_v29 = vld [vmem:[#allocation8 + $0x30] sm:$0xff] }
 0x206   :  { %v190_v33 = vld [vmem:[#allocation9 + $0x48] sm:$0xff] }
 0x207   :  { %v9921_v37 = vmul.f32 -1.442695, %v557_v31 }
 0x208   :  { %v703_v40 = vpop.f32.mrb[6].mxu1 }
 0x209   :  { %12226 = vpow2.f32 %v9921_v37  ;;  %v704_v42 = vadd.f32 %v703_v40, %v630_v30  ;;  %v10644_v43 = vpop.f32.mrb[7].mxu1  ;;  %v173_v30 = vld [vmem:[#allocation8 + $0x38] sm:$0xff]  ;;  %v191_v37 = vld [vmem:[#allocation9 + $0x50] sm:$0xff] }
 0x20a   :  { %v12905_v31 = vpack.c.bf16 %v173_v30, %v172_v29  ;;  %v192_v40 = vld [vmem:[#allocation9 + $0x58] sm:$0xff]  ;;  %v12930_v43 = vld [vmem:[#allocation4 + $0x8] sm:$0xff] }
 0x20b   :  { %v777_v47 = vadd.f32 %v12815_v41, %v704_v42  ;;  %v996_v41 = vadd.f32 %v12888_v60, %v12819_v46  ;;  %v12918_v42 = vpack.c.bf16 %v192_v40, %v191_v37 }
 0x20c   :  { %v851_v48 = vpop.f32.mrb[8].mxu1 }
 0x20d   :  { %v778_v49 = vadd.f32 %v777_v47, %v12881_v44  ;;  %v10660_v51 = vpop.f32.mrb[9].mxu1 }
 0x20f   :  { %v9926_v39 = vmul.f32 -1.442695, %v778_v49 }
 0x210   :  { %v924_v52 = vpop.f32.mrb[10].mxu1 }
 0x211   :  { %12228 = vpow2.f32 %v9926_v39  ;;  %v925_v55 = vadd.f32 %v924_v52, %v851_v48  ;;  %v10665_v56 = vpop.f32.mrb[11].mxu1  ;;  %v229_v52 = vld [vmem:[%s14186_s13] sm:$0xff] }
 0x213   :  { %v12227_v57 = vpop.eup %12226  ;;  %v928_v6 = vadd.f32 %v12895_v2, %v925_v55  ;;  %v230_v55 = vld [vmem:[%s14186_s13 + $0x8] sm:$0xff] }
 0x214   :  { %v561_v59 = vadd.f32 1.0, %v12227_v57  ;;  %v12973_v56 = vpack.c.bf16 %v230_v55, %v229_v52  ;;  %v231_v57 = vld [vmem:[%s14186_s13 + $0x10] sm:$0xff] }
 0x216   :  { %12230 = vrcp.f32 %v561_v59  ;;  %v232_v59 = vld [vmem:[%s14186_s13 + $0x18] sm:$0xff] }
 0x218   :  { %v1078_v48 = vpop.f32.mrb[12].mxu1 }
 0x219   :  { %v10687_v49 = vpop.f32.mrb[13].mxu1 }
 0x21b   :  { %v12229_v62 = vpop.eup %12228 }
 0x21c   :  { %v782_v63 = vadd.f32 1.0, %v12229_v62  ;;  %v12983_v62 = vpack.c.bf16 %v232_v59, %v231_v57 }
 0x21e   :  { %12232 = vrcp.f32 %v782_v63  ;;  %v193_v63 = vld [vmem:[%s14184_s11] sm:$0x1] }
 0x220   :  { %v12231_v5 = vpop.eup %12230  ;;  %v1228_v51 = vpop.f32.mrb[14].mxu1 }
 0x221   :  { %v999_v10 = vmul.f32 %v12231_v5, %v996_v41  ;;  %v10709_v39 = vpop.f32.mrb[15].mxu1  ;;  %v194_v41 = vld [vmem:[%s14185_s12] sm:$0x1] }
 0x222   :  { %v195_v5 = vadd.f32 %v194_v41, %v193_v63  ;;  %v13018_v41 = vld [vmem:[%s14184_s11 + $0x2] ss:$0 sm:$0xff] }
 0x223   :  { %v1000_v12 = vadd.f32 %v999_v10, %v928_v6 }
 0x224   :  { %v12994_v6 = vrot.slane %v195_v5, %v12867_v19 }
 0x225   :  { %12234 = vtanh.f32 %v1000_v12 }
 0x228   :  { %v12233_v13 = vpop.eup %12232 }
 0x229   :  { %v1002_v15 = vsub.f32 1.0, %v12233_v13  ;;  %v1004_v46 = vmul.f32 %v12233_v13, %v12732_v17  ;;  %v189_v17 = vld [vmem:[#allocation9 + $0x40] sm:$0xff]  ;;  %v9908_v13 = vld [vmem:[%s14184_s11 + $0x1] sm:$0x1] }
 0x22a   :  { %v12913_v38 = vpack.c.bf16 %v190_v33, %v189_v17 }
 0x22f   :  { %v12235_v22 = vpop.eup %12234 }
 0x230   :  { %v1003_v23 = vmul.f32 %v12235_v22, %v1002_v15  ;;  %v9909_v15 = vld [vmem:[%s14185_s12 + $0x1] sm:$0x1] }
 0x232   :  { %v1005_v28 = vadd.f32 %v1004_v46, %v1003_v23  ;;  %v206_v46 = vadd.f32 %v9909_v15, %v9908_v13 }
 0x234   :  { %1006 = vst.msk [vmem:[#allocation2] sm:$0xff] %vm240_vm4, %v1005_v28  ;;  %10697 = vmatmul.mubr.msk.f32.vlgmr.msra.gmra.mrb[8].mxu0 %vm240_vm4, %v1005_v28  ;;  %10730 = vmatmul.mubr.msk.f32.vlgmr.msra.gmra.mrb[16].mxu1 %vm240_vm4, %v1005_v28  ;;  %v13004_v29 = vrot.slane %v206_v46, %v12867_v19  ;;  %v13012_v19 = vld [vmem:[%s14185_s12 + $0x2] ss:$0 sm:$0xff] }
 0x235   :  { %11775 = vmatpush3.bf16.msra.mxu0 %v12899_v26  ;;  %10718 = vmatprep.mubr.msk.f32.mxu0 %vm12525_vm0, %v12526_v1 }
 0x236   :  { %11776 = vmatprep.subr.bf16.mxu0 %v12524_v0  ;;  %10751 = vmatprep.mubr.msk.f32.mxu1 %vm12525_vm0, %v12526_v1 }
 0x237   :  { %11793 = vmatpush3.bf16.msra.mxu1 %v12973_v56 }
 0x238   :  { %11794 = vmatprep.subr.bf16.mxu1 %v12524_v0 }
 0x239   :  { %11778 = vmatpush3.bf16.msra.mxu0 %v12905_v31 }
 0x23a   :  { %11785 = vmatprep.subr.bf16.mxu0 %v12524_v0 }
 0x23b   :  { %v12941_v47 = vld [vmem:[#allocation2] sm:$0xff]  ;;  %11796 = vmatpush3.bf16.msra.mxu1 %v12983_v62 }
 0x23c   :  { %10719 = vmatmul.mubr.msk.f32.vlgmr.msra.gmra.mrb[10].mxu0 %vm240_vm4, %v1005_v28  ;;  %10759 = vmatprep.subr.mxu1 %v12526_v1 }
 0x23d   :  { %11787 = vmatpush3.bf16.msra.mxu0 %v12913_v38  ;;  %10740 = vmatprep.mubr.msk.f32.mxu0 %vm12525_vm0, %v12526_v1 }
 0x23e   :  { %11788 = vmatprep.subr.bf16.mxu0 %v12524_v0 }
 0x241   :  { %11790 = vmatpush3.bf16.msra.mxu0 %v12918_v42 }
 0x242   :  { %10754 = vmatprep.subr.mxu0 %v12526_v1 }
 0x244   :  { %10741 = vmatmul.mubr.msk.f32.vlgmr.msra.gmra.mrb[12].mxu0 %vm240_vm4, %v12829_v54 }
 0x245   :  { %10755 = vmatpush3.msra.mxu0 %v12702_v8  ;;  %10756 = vmatprep.mubr.msk.f32.mxu0 %vm12525_vm0, %v12526_v1 }
 0x246   :  { %11797 = vmatprep.subr.bf16.mxu0 %v12524_v0 }
 0x248   :  { %10757 = vmatmul.mubr.msk.f32.vlgmr.msra.gmra.mrb[14].mxu0 %vm332_vm2, %v12930_v43 }
 0x249   :  { %11799 = vmatpush3.bf16.msra.mxu0 %v12704_v9  ;;  %10772 = vmatprep.mubr.msk.f32.mxu0 %vm12525_vm0, %v12526_v1 }
 0x24a   :  { %11800 = vmatprep.subr.bf16.mxu0 %v12524_v0 }
 0x24d   :  { %11802 = vmatpush3.bf16.msra.mxu0 %v12717_v14 }
 0x24e   :  { %11803 = vmatprep.subr.bf16.mxu0 %v12524_v0 }
 0x250   :  { %10773 = vmatmul.mubr.msk.f32.vlgmr.msra.gmra.mrb[16].mxu0 %vm240_vm4, %v12941_v47 }
 0x251   :  { %11805 = vmatpush3.bf16.msra.mxu0 %v12734_v18  ;;  %10793 = vmatprep.mubr.msk.f32.mxu0 %vm12525_vm0, %v12526_v1 }
 0x252   :  { %11806 = vmatprep.subr.bf16.mxu0 %v12524_v0 }
 0x255   :  { %11808 = vmatpush3.bf16.msra.mxu0 %v12742_v21 }
 0x256   :  { %11809 = vmatprep.subr.bf16.mxu0 %v12524_v0 }
 0x258   :  { %10794 = vmatmul.mubr.msk.f32.vlgmr.msra.gmra.mrb[18].mxu0 %vm240_vm4, %v12941_v47 }
 0x259   :  { %11811 = vmatpush3.bf16.msra.mxu0 %v12750_v25  ;;  %10814 = vmatprep.mubr.msk.f32.mxu0 %vm12525_vm0, %v12526_v1 }
 0x25a   :  { %11812 = vmatprep.subr.bf16.mxu0 %v12524_v0 }
 0x25d   :  { %11814 = vmatpush3.bf16.msra.mxu0 %v12753_v27 }
 0x25e   :  { %11821 = vmatprep.subr.bf16.mxu0 %v12524_v0 }
 0x260   :  { %10815 = vmatmul.mubr.msk.f32.vlgmr.msra.gmra.mrb[20].mxu0 %vm240_vm4, %v12941_v47 }
 0x261   :  { %11823 = vmatpush3.bf16.msra.mxu0 %v12839_v61  ;;  %10836 = vmatprep.mubr.msk.f32.mxu0 %vm12525_vm0, %v12526_v1 }
 0x262   :  { %11824 = vmatprep.subr.bf16.mxu0 %v12524_v0 }
 0x265   :  { %11826 = vmatpush3.bf16.msra.mxu0 %v12842_v3 }
 0x266   :  { %11833 = vmatprep.subr.bf16.mxu0 %v12524_v0 }
 0x307   :  { %v1151_v10 = vpop.f32.mrb[8].mxu0  ;;  %v1375_v12 = vpop.f32.mrb[16].mxu1 }
 0x308   :  { %v1152_v16 = vadd.f32 %v1151_v10, %v1078_v48  ;;  %v10698_v20 = vpop.f32.mrb[9].mxu0  ;;  %v10731_v22 = vpop.f32.mrb[17].mxu1  ;;  %v1376_v15 = vadd.f32 %v13018_v41, %v1375_v12  ;;  %v13038_v12 = vld [vmem:[%s14187_s14] ss:$0 sm:$0xff] }
 0x30a   :  { %v1155_v23 = vadd.f32 %v1152_v16, %v12994_v6 }
 0x30c   :  { %v9933_v28 = vmul.f32 -1.442695, %v1155_v23 }
 0x30e   :  { %12236 = vpow2.f32 %v9933_v28 }
 0x30f   :  { %v1298_v30 = vpop.f32.mrb[10].mxu0 }
 0x310   :  { %v1299_v17 = vadd.f32 %v1298_v30, %v1228_v51  ;;  %v10720_v33 = vpop.f32.mrb[11].mxu0 }
 0x312   :  { %v1302_v37 = vadd.f32 %v1299_v17, %v13004_v29 }
 0x314   :  { %v9936_v40 = vmul.f32 -1.442695, %v1302_v37 }
 0x316   :  { %12238 = vpow2.f32 %v9936_v40 }
 0x317   :  { %v1445_v49 = vpop.f32.mrb[12].mxu0 }
 0x318   :  { %v12237_v39 = vpop.eup %12236  ;;  %v10742_v48 = vpop.f32.mrb[13].mxu0  ;;  %v1446_v63 = vadd.f32 %v13012_v19, %v1445_v49 }
 0x319   :  { %v1159_v52 = vadd.f32 1.0, %v12237_v39 }
 0x31b   :  { %12240 = vrcp.f32 %v1159_v52  ;;  %v13007_v55 = vpop.f32.mrb[14].mxu0 }
 0x31c   :  { %v10758_v57 = vpop.f32.mrb[15].mxu0 }
 0x320   :  { %v12239_v59 = vpop.eup %12238 }
 0x321   :  { %v1306_v51 = vadd.f32 1.0, %v12239_v59 }
 0x323   :  { %v13020_v5 = vpop.f32.mrb[16].mxu0  ;;  %12242 = vrcp.f32 %v1306_v51 }
 0x324   :  { %v10774_v10 = vpop.f32.mrb[17].mxu0 }
 0x325   :  { %v12241_v13 = vpop.eup %12240 }
 0x326   :  { %v1449_v16 = vmul.f32 %v12241_v13, %v1446_v63 }
 0x328   :  { %v1450_v20 = vadd.f32 %v1449_v16, %v1376_v15 }
 0x32a   :  { %12244 = vtanh.f32 %v1450_v20 }
 0x32b   :  { %v13023_v22 = vpop.f32.mrb[18].mxu0 }
 0x32c   :  { %v10795_v23 = vpop.f32.mrb[19].mxu0 }
 0x32d   :  { %v12243_v46 = vpop.eup %12242 }
 0x32e   :  { %v1452_v30 = vsub.f32 1.0, %v12243_v46  ;;  %v1454_v40 = vmul.f32 %v12243_v46, %v12829_v54 }
 0x333   :  { %v13025_v28 = vpop.f32.mrb[20].mxu0 }
 0x334   :  { %v12245_v17 = vpop.eup %12244  ;;  %v10816_v33 = vpop.f32.mrb[21].mxu0 }
 0x335   :  { %v1453_v37 = vmul.f32 %v12245_v17, %v1452_v30 }
 0x337   :  { %v1455_v49 = vadd.f32 %v1454_v40, %v1453_v37 }
 0x339   :  { %1456 = vst.msk [vmem:[#allocation2 + $0x8] sm:$0xff] %vm240_vm4, %v1455_v49  ;;  %10752 = vmatmul.mubr.msk.f32.vlgmr.msra.gmra.mrb[18].mxu1 %vm240_vm4, %v1455_v49 }
 0x33a   :  { %10760 = vmatpush3.msk.msra.mxu1 %vm409_vm3, %v12712_v11  ;;  %10761 = vmatprep.mubr.msk.f32.mxu1 %vm12525_vm0, %v12526_v1 }
 0x33b   :  { %10775 = vmatprep.subr.mxu1 %v12526_v1 }
 0x40c   :  { %v1526_v39 = vpop.f32.mrb[18].mxu1 }
 0x40d   :  { %v1527_v54 = vadd.f32 %v13038_v12, %v1526_v39  ;;  %v10753_v48 = vpop.f32.mrb[19].mxu1 }
 0x40f   :  { %12246 = vtanh.f32 %v1527_v54 }
 0x419   :  { %v12247_v52 = vpop.eup %12246 }
 0x41a   :  { %1532 = vst.msk [vmem:[%s14188_s15] sm:$0xff] %vm327_vm5, %v12247_v52  ;;  %1531 = vst.msk [vmem:[#allocation3] sm:$0xff] %vm327_vm5, %v12247_v52 }
 0x421   :  { %v1533_v57 = vld [vmem:[#allocation3] sm:$0xff] }
 0x422   :  { %10762 = vmatmul.mubr.msk.f32.vlgmr.msra.gmra.mrb[20].mxu1 %vm327_vm5, %v1533_v57 }
 0x423   :  { %10776 = vmatpush3.msra.mxu1 %v12769_v32  ;;  %10777 = vmatprep.mubr.msk.f32.mxu1 %vm12525_vm0, %v12526_v1 }
 0x424   :  { %10780 = vmatprep.subr.mxu1 %v12526_v1 }
 0x426   :  { %10778 = vmatmul.mubr.msk.f32.vlgmr.msra.gmra.mrb[22].mxu1 %vm332_vm2, %v12930_v43 }
 0x427   :  { %10781 = vmatpush3.msk.msra.mxu1 %vm409_vm3, %v12779_v34  ;;  %10782 = vmatprep.mubr.msk.f32.mxu1 %vm12525_vm0, %v12526_v1 }
 0x428   :  { %10796 = vmatprep.subr.mxu1 %v12526_v1 }
 0x42a   :  { %10783 = vmatmul.mubr.msk.f32.vlgmr.msra.gmra.mrb[24].mxu1 %vm327_vm5, %v1533_v57 }
 0x42b   :  { %10797 = vmatpush3.msra.mxu1 %v12791_v35  ;;  %10798 = vmatprep.mubr.msk.f32.mxu1 %vm12525_vm0, %v12526_v1 }
 0x42c   :  { %10801 = vmatprep.subr.mxu1 %v12526_v1 }
 0x42e   :  { %10799 = vmatmul.mubr.msk.f32.vlgmr.msra.gmra.mrb[26].mxu1 %vm332_vm2, %v12930_v43  ;;  %v13077_v43 = vld [vmem:[#allocation2 + $0x8] sm:$0xff] }
 0x42f   :  { %10802 = vmatpush3.msk.msra.mxu1 %vm409_vm3, %v12801_v36  ;;  %10803 = vmatprep.mubr.msk.f32.mxu1 %vm12525_vm0, %v12526_v1 }
 0x430   :  { %11815 = vmatprep.subr.bf16.mxu1 %v12524_v0 }
 0x432   :  { %10804 = vmatmul.mubr.msk.f32.vlgmr.msra.gmra.mrb[28].mxu1 %vm327_vm5, %v1533_v57 }
 0x433   :  { %11817 = vmatpush3.bf16.msra.mxu1 %v12817_v45  ;;  %10825 = vmatprep.mubr.msk.f32.mxu1 %vm12525_vm0, %v12526_v1 }
 0x434   :  { %11818 = vmatprep.subr.bf16.mxu1 %v12524_v0 }
 0x437   :  { %11820 = vmatpush3.bf16.msra.mxu1 %v12823_v50 }
 0x438   :  { %11827 = vmatprep.subr.bf16.mxu1 %v12524_v0 }
 0x43a   :  { %10826 = vmatmul.mubr.msk.f32.vlgmr.msra.gmra.mrb[30].mxu1 %vm240_vm4, %v13077_v43 }
 0x43b   :  { %11829 = vmatpush3.bf16.msra.mxu1 %v12827_v53  ;;  %10847 = vmatprep.mubr.msk.f32.mxu1 %vm12525_vm0, %v12526_v1 }
 0x43c   :  { %11830 = vmatprep.subr.bf16.mxu1 %v12524_v0 }
 0x43f   :  { %11832 = vmatpush3.bf16.msra.mxu1 %v12834_v58 }
 0x440   :  { %11839 = vmatprep.subr.bf16.mxu1 %v12524_v0 }
 0x442   :  { %10848 = vmatmul.mubr.msk.f32.vlgmr.msra.gmra.mrb[32].mxu1 %vm240_vm4, %v13077_v43 }
 0x443   :  { %11841 = vmatpush3.bf16.msra.mxu1 %v12845_v4  ;;  %10869 = vmatprep.mubr.msk.f32.mxu1 %vm12525_vm0, %v12526_v1 }
 0x444   :  { %11842 = vmatprep.subr.bf16.mxu1 %v12524_v0 }
 0x447   :  { %11844 = vmatpush3.bf16.msra.mxu1 %v12853_v7 }
 0x448   :  { %11851 = vmatprep.subr.bf16.mxu1 %v12524_v0 }
 0x4f5   :  { %v1679_v59 = vpop.f32.mrb[20].mxu1 }
 0x4f6   :  { %v1680_v51 = vadd.f32 %v1679_v59, %v13007_v55  ;;  %v10763_v63 = vpop.f32.mrb[21].mxu1 }
 0x4f8   :  { %v1756_v10 = vadd.f32 %v13020_v5, %v1680_v51 }
 0x4f9   :  { %v1830_v13 = vpop.f32.mrb[22].mxu1 }
 0x4fa   :  { %v1757_v15 = vadd.f32 %v1756_v10, %v12870_v24  ;;  %v10779_v16 = vpop.f32.mrb[23].mxu1 }
 0x4fc   :  { %v9944_v20 = vmul.f32 -1.442695, %v1757_v15 }
 0x4fd   :  { %v1900_v23 = vpop.f32.mrb[24].mxu1 }
 0x4fe   :  { %12248 = vpow2.f32 %v9944_v20  ;;  %v1901_v46 = vadd.f32 %v1900_v23, %v1830_v13  ;;  %v10784_v30 = vpop.f32.mrb[25].mxu1 }
 0x500   :  { %v1974_v17 = vadd.f32 %v13023_v22, %v1901_v46  ;;  %v2190_v22 = vadd.f32 %v12888_v60, %v13025_v28 }
 0x501   :  { %v2048_v33 = vpop.f32.mrb[26].mxu1 }
 0x502   :  { %v1975_v37 = vadd.f32 %v1974_v17, %v12881_v44  ;;  %v10800_v40 = vpop.f32.mrb[27].mxu1 }
 0x504   :  { %v9949_v49 = vmul.f32 -1.442695, %v1975_v37 }
 0x505   :  { %v2118_v55 = vpop.f32.mrb[28].mxu1 }
 0x506   :  { %12250 = vpow2.f32 %v9949_v49  ;;  %v2119_v39 = vadd.f32 %v2118_v55, %v2048_v33  ;;  %v10805_v5 = vpop.f32.mrb[29].mxu1 }
 0x508   :  { %v12249_v54 = vpop.eup %12248  ;;  %v2122_v13 = vadd.f32 %v12895_v2, %v2119_v39 }
 0x509   :  { %v1761_v48 = vadd.f32 1.0, %v12249_v54 }
 0x50b   :  { %12252 = vrcp.f32 %v1761_v48 }
 0x50d   :  { %v13100_v52 = vpop.f32.mrb[30].mxu1 }
 0x50e   :  { %v10827_v57 = vpop.f32.mrb[31].mxu1 }
 0x510   :  { %v12251_v59 = vpop.eup %12250 }
 0x511   :  { %v1979_v51 = vadd.f32 1.0, %v12251_v59 }
 0x513   :  { %12254 = vrcp.f32 %v1979_v51 }
 0x515   :  { %v12253_v63 = vpop.eup %12252  ;;  %v13104_v10 = vpop.f32.mrb[32].mxu1 }
 0x516   :  { %v2193_v15 = vmul.f32 %v12253_v63, %v2190_v22  ;;  %v10849_v16 = vpop.f32.mrb[33].mxu1 }
 0x518   :  { %v2194_v20 = vadd.f32 %v2193_v15, %v2122_v13 }
 0x51a   :  { %12256 = vtanh.f32 %v2194_v20 }
 0x51d   :  { %v12255_v23 = vpop.eup %12254 }
 0x51e   :  { %v2196_v46 = vsub.f32 1.0, %v12255_v23  ;;  %v2198_v33 = vmul.f32 %v12255_v23, %v12941_v47  ;;  %v13135_v47 = vld [vmem:[#allocation4 + $0x10] sm:$0xff] }
 0x524   :  { %v12257_v30 = vpop.eup %12256 }
 0x525   :  { %v2197_v17 = vmul.f32 %v12257_v30, %v2196_v46 }
 0x527   :  { %v2199_v37 = vadd.f32 %v2198_v33, %v2197_v17 }
 0x529   :  { %2200 = vst.msk [vmem:[#allocation2] sm:$0xff] %vm240_vm4, %v2199_v37  ;;  %10837 = vmatmul.mubr.msk.f32.vlgmr.msra.gmra.mrb[22].mxu0 %vm240_vm4, %v2199_v37  ;;  %10870 = vmatmul.mubr.msk.f32.vlgmr.msra.gmra.mrb[34].mxu1 %vm240_vm4, %v2199_v37 }
 0x52a   :  { %11835 = vmatpush3.bf16.msra.mxu0 %v12899_v26  ;;  %10858 = vmatprep.mubr.msk.f32.mxu0 %vm12525_vm0, %v12526_v1 }
 0x52b   :  { %11836 = vmatprep.subr.bf16.mxu0 %v12524_v0  ;;  %11853 = vmatpush3.bf16.msra.mxu1 %v12973_v56 }
 0x52c   :  { %11854 = vmatprep.subr.bf16.mxu1 %v12524_v0  ;;  %10891 = vmatprep.mubr.msk.f32.mxu1 %vm12525_vm0, %v12526_v1 }
 0x52e   :  { %11838 = vmatpush3.bf16.msra.mxu0 %v12905_v31 }
 0x52f   :  { %11845 = vmatprep.subr.bf16.mxu0 %v12524_v0  ;;  %11856 = vmatpush3.bf16.msra.mxu1 %v12983_v62 }
 0x530   :  { %10899 = vmatprep.subr.mxu1 %v12526_v1 }
 0x531   :  { %10859 = vmatmul.mubr.msk.f32.vlgmr.msra.gmra.mrb[24].mxu0 %vm240_vm4, %v2199_v37 }
 0x532   :  { %11847 = vmatpush3.bf16.msra.mxu0 %v12913_v38  ;;  %10880 = vmatprep.mubr.msk.f32.mxu0 %vm12525_vm0, %v12526_v1 }
 0x533   :  { %11848 = vmatprep.subr.bf16.mxu0 %v12524_v0 }
 0x536   :  { %11850 = vmatpush3.bf16.msra.mxu0 %v12918_v42 }
 0x537   :  { %10894 = vmatprep.subr.mxu0 %v12526_v1 }
 0x539   :  { %10881 = vmatmul.mubr.msk.f32.vlgmr.msra.gmra.mrb[26].mxu0 %vm240_vm4, %v13077_v43 }
 0x53a   :  { %10895 = vmatpush3.msra.mxu0 %v12702_v8  ;;  %10896 = vmatprep.mubr.msk.f32.mxu0 %vm12525_vm0, %v12526_v1  ;;  %v13146_v8 = vld [vmem:[#allocation2] sm:$0xff] }
 0x53b   :  { %11857 = vmatprep.subr.bf16.mxu0 %v12524_v0 }
 0x53d   :  { %10897 = vmatmul.mubr.msk.f32.vlgmr.msra.gmra.mrb[28].mxu0 %vm332_vm2, %v13135_v47 }
 0x53e   :  { %11859 = vmatpush3.bf16.msra.mxu0 %v12704_v9  ;;  %10912 = vmatprep.mubr.msk.f32.mxu0 %vm12525_vm0, %v12526_v1 }
 0x53f   :  { %11860 = vmatprep.subr.bf16.mxu0 %v12524_v0 }
 0x542   :  { %11862 = vmatpush3.bf16.msra.mxu0 %v12717_v14 }
 0x543   :  { %11863 = vmatprep.subr.bf16.mxu0 %v12524_v0 }
 0x545   :  { %10913 = vmatmul.mubr.msk.f32.vlgmr.msra.gmra.mrb[30].mxu0 %vm240_vm4, %v13146_v8 }
 0x546   :  { %11865 = vmatpush3.bf16.msra.mxu0 %v12734_v18  ;;  %10933 = vmatprep.mubr.msk.f32.mxu0 %vm12525_vm0, %v12526_v1 }
 0x547   :  { %11866 = vmatprep.subr.bf16.mxu0 %v12524_v0 }
 0x54a   :  { %11868 = vmatpush3.bf16.msra.mxu0 %v12742_v21 }
 0x54b   :  { %11869 = vmatprep.subr.bf16.mxu0 %v12524_v0 }
 0x54d   :  { %10934 = vmatmul.mubr.msk.f32.vlgmr.msra.gmra.mrb[32].mxu0 %vm240_vm4, %v13146_v8 }
 0x54e   :  { %11871 = vmatpush3.bf16.msra.mxu0 %v12750_v25  ;;  %10954 = vmatprep.mubr.msk.f32.mxu0 %vm12525_vm0, %v12526_v1 }
 0x54f   :  { %11872 = vmatprep.subr.bf16.mxu0 %v12524_v0 }
 0x552   :  { %11874 = vmatpush3.bf16.msra.mxu0 %v12753_v27 }
 0x553   :  { %11881 = vmatprep.subr.bf16.mxu0 %v12524_v0 }
 0x555   :  { %10955 = vmatmul.mubr.msk.f32.vlgmr.msra.gmra.mrb[34].mxu0 %vm240_vm4, %v13146_v8 }
 0x556   :  { %11883 = vmatpush3.bf16.msra.mxu0 %v12839_v61  ;;  %10976 = vmatprep.mubr.msk.f32.mxu0 %vm12525_vm0, %v12526_v1 }
 0x557   :  { %11884 = vmatprep.subr.bf16.mxu0 %v12524_v0 }
 0x55a   :  { %11886 = vmatpush3.bf16.msra.mxu0 %v12842_v3 }
 0x55b   :  { %11893 = vmatprep.subr.bf16.mxu0 %v12524_v0 }
 0x5fc   :  { %v2344_v28 = vpop.f32.mrb[22].mxu0  ;;  %v2568_v40 = vpop.f32.mrb[34].mxu1 }
 0x5fd   :  { %v2345_v49 = vadd.f32 %v2344_v28, %v13100_v52  ;;  %v10838_v55 = vpop.f32.mrb[23].mxu0  ;;  %v10871_v39 = vpop.f32.mrb[35].mxu1  ;;  %v2569_v37 = vadd.f32 %v13018_v41, %v2568_v40 }
 0x5ff   :  { %v2348_v5 = vadd.f32 %v2345_v49, %v12994_v6 }
 0x601   :  { %v9956_v54 = vmul.f32 -1.442695, %v2348_v5 }
 0x603   :  { %12258 = vpow2.f32 %v9956_v54 }
 0x604   :  { %v2491_v48 = vpop.f32.mrb[24].mxu0 }
 0x605   :  { %v2492_v57 = vadd.f32 %v2491_v48, %v13104_v10  ;;  %v10860_v59 = vpop.f32.mrb[25].mxu0 }
 0x607   :  { %v2495_v51 = vadd.f32 %v2492_v57, %v13004_v29 }
 0x609   :  { %v9959_v22 = vmul.f32 -1.442695, %v2495_v51 }
 0x60b   :  { %12260 = vpow2.f32 %v9959_v22 }
 0x60c   :  { %v2638_v63 = vpop.f32.mrb[26].mxu0 }
 0x60d   :  { %v12259_v13 = vpop.eup %12258  ;;  %v10882_v15 = vpop.f32.mrb[27].mxu0  ;;  %v2639_v17 = vadd.f32 %v13012_v19, %v2638_v63 }
 0x60e   :  { %v2352_v16 = vadd.f32 1.0, %v12259_v13 }
 0x610   :  { %12262 = vrcp.f32 %v2352_v16  ;;  %v13176_v52 = vpop.f32.mrb[28].mxu0 }
 0x611   :  { %v10898_v20 = vpop.f32.mrb[29].mxu0 }
 0x615   :  { %v12261_v23 = vpop.eup %12260 }
 0x616   :  { %v2499_v46 = vadd.f32 1.0, %v12261_v23 }
 0x618   :  { %v13178_v30 = vpop.f32.mrb[30].mxu0  ;;  %12264 = vrcp.f32 %v2499_v46 }
 0x619   :  { %v10914_v10 = vpop.f32.mrb[31].mxu0 }
 0x61a   :  { %v12263_v33 = vpop.eup %12262 }
 0x61b   :  { %v2642_v28 = vmul.f32 %v12263_v33, %v2639_v17 }
 0x61d   :  { %v2643_v49 = vadd.f32 %v2642_v28, %v2569_v37 }
 0x61f   :  { %12266 = vtanh.f32 %v2643_v49 }
 0x620   :  { %v13182_v55 = vpop.f32.mrb[32].mxu0 }
 0x621   :  { %v10935_v39 = vpop.f32.mrb[33].mxu0 }
 0x622   :  { %v12265_v5 = vpop.eup %12264 }
 0x623   :  { %v2645_v48 = vsub.f32 1.0, %v12265_v5  ;;  %v2647_v22 = vmul.f32 %v12265_v5, %v13077_v43 }
 0x628   :  { %v13184_v54 = vpop.f32.mrb[34].mxu0 }
 0x629   :  { %v12267_v57 = vpop.eup %12266  ;;  %v10956_v59 = vpop.f32.mrb[35].mxu0 }
 0x62a   :  { %v2646_v51 = vmul.f32 %v12267_v57, %v2645_v48 }
 0x62c   :  { %v2648_v63 = vadd.f32 %v2647_v22, %v2646_v51 }
 0x62e   :  { %2649 = vst.msk [vmem:[#allocation2 + $0x8] sm:$0xff] %vm240_vm4, %v2648_v63  ;;  %10892 = vmatmul.mubr.msk.f32.vlgmr.msra.gmra.mrb[36].mxu1 %vm240_vm4, %v2648_v63 }
 0x62f   :  { %10900 = vmatpush3.msk.msra.mxu1 %vm409_vm3, %v12712_v11  ;;  %10901 = vmatprep.mubr.msk.f32.mxu1 %vm12525_vm0, %v12526_v1 }
 0x630   :  { %10915 = vmatprep.subr.mxu1 %v12526_v1 }
 0x635   :  { %v13231_v11 = vld [vmem:[#allocation2 + $0x8] sm:$0xff] }
 0x701   :  { %v2719_v40 = vpop.f32.mrb[36].mxu1 }
 0x702   :  { %v2720_v13 = vadd.f32 %v13038_v12, %v2719_v40  ;;  %v10893_v15 = vpop.f32.mrb[37].mxu1 }
 0x704   :  { %12268 = vtanh.f32 %v2720_v13 }
 0x70e   :  { %v12269_v16 = vpop.eup %12268 }
 0x70f   :  { %9963 = vst.msk [vmem:[%s14188_s15 + $0x8] sm:$0xff] %vm327_vm5, %v12269_v16  ;;  %2724 = vst.msk [vmem:[#allocation3] sm:$0xff] %vm327_vm5, %v12269_v16 }
 0x716   :  { %v2727_v43 = vld [vmem:[#allocation3] sm:$0xff] }
 0x717   :  { %10902 = vmatmul.mubr.msk.f32.vlgmr.msra.gmra.mrb[38].mxu1 %vm327_vm5, %v2727_v43 }
 0x718   :  { %10916 = vmatpush3.msra.mxu1 %v12769_v32  ;;  %10917 = vmatprep.mubr.msk.f32.mxu1 %vm12525_vm0, %v12526_v1 }
 0x719   :  { %10920 = vmatprep.subr.mxu1 %v12526_v1 }
 0x71b   :  { %10918 = vmatmul.mubr.msk.f32.vlgmr.msra.gmra.mrb[40].mxu1 %vm332_vm2, %v13135_v47 }
 0x71c   :  { %10921 = vmatpush3.msk.msra.mxu1 %vm409_vm3, %v12779_v34  ;;  %10922 = vmatprep.mubr.msk.f32.mxu1 %vm12525_vm0, %v12526_v1 }
 0x71d   :  { %10936 = vmatprep.subr.mxu1 %v12526_v1 }
 0x71f   :  { %10923 = vmatmul.mubr.msk.f32.vlgmr.msra.gmra.mrb[42].mxu1 %vm327_vm5, %v2727_v43 }
 0x720   :  { %10937 = vmatpush3.msra.mxu1 %v12791_v35  ;;  %10938 = vmatprep.mubr.msk.f32.mxu1 %vm12525_vm0, %v12526_v1 }
 0x721   :  { %10941 = vmatprep.subr.mxu1 %v12526_v1 }
 0x723   :  { %10939 = vmatmul.mubr.msk.f32.vlgmr.msra.gmra.mrb[44].mxu1 %vm332_vm2, %v13135_v47 }
 0x724   :  { %10942 = vmatpush3.msk.msra.mxu1 %vm409_vm3, %v12801_v36  ;;  %10943 = vmatprep.mubr.msk.f32.mxu1 %vm12525_vm0, %v12526_v1 }
 0x725   :  { %11875 = vmatprep.subr.bf16.mxu1 %v12524_v0 }
 0x727   :  { %10944 = vmatmul.mubr.msk.f32.vlgmr.msra.gmra.mrb[46].mxu1 %vm327_vm5, %v2727_v43 }
 0x728   :  { %11877 = vmatpush3.bf16.msra.mxu1 %v12817_v45  ;;  %10965 = vmatprep.mubr.msk.f32.mxu1 %vm12525_vm0, %v12526_v1 }
 0x729   :  { %11878 = vmatprep.subr.bf16.mxu1 %v12524_v0 }
 0x72c   :  { %11880 = vmatpush3.bf16.msra.mxu1 %v12823_v50 }
 0x72d   :  { %11887 = vmatprep.subr.bf16.mxu1 %v12524_v0 }
 0x72f   :  { %10966 = vmatmul.mubr.msk.f32.vlgmr.msra.gmra.mrb[48].mxu1 %vm240_vm4, %v13231_v11 }
 0x730   :  { %11889 = vmatpush3.bf16.msra.mxu1 %v12827_v53  ;;  %10987 = vmatprep.mubr.msk.f32.mxu1 %vm12525_vm0, %v12526_v1 }
 0x731   :  { %11890 = vmatprep.subr.bf16.mxu1 %v12524_v0 }
 0x734   :  { %11892 = vmatpush3.bf16.msra.mxu1 %v12834_v58 }
 0x735   :  { %11899 = vmatprep.subr.bf16.mxu1 %v12524_v0 }
 0x737   :  { %10988 = vmatmul.mubr.msk.f32.vlgmr.msra.gmra.mrb[50].mxu1 %vm240_vm4, %v13231_v11 }
 0x738   :  { %11901 = vmatpush3.bf16.msra.mxu1 %v12845_v4  ;;  %11009 = vmatprep.mubr.msk.f32.mxu1 %vm12525_vm0, %v12526_v1 }
 0x739   :  { %11902 = vmatprep.subr.bf16.mxu1 %v12524_v0 }
 0x73c   :  { %11904 = vmatpush3.bf16.msra.mxu1 %v12853_v7 }
 0x73d   :  { %11911 = vmatprep.subr.bf16.mxu1 %v12524_v0 }
 0x7ea   :  { %v2873_v32 = vpop.f32.mrb[38].mxu1 }
 0x7eb   :  { %v2874_v34 = vadd.f32 %v2873_v32, %v13176_v52  ;;  %v10903_v35 = vpop.f32.mrb[39].mxu1 }
 0x7ed   :  { %v2950_v36 = vadd.f32 %v13178_v30, %v2874_v34 }
 0x7ee   :  { %v3024_v47 = vpop.f32.mrb[40].mxu1 }
 0x7ef   :  { %v2951_v20 = vadd.f32 %v2950_v36, %v12870_v24  ;;  %v10919_v23 = vpop.f32.mrb[41].mxu1 }
 0x7f1   :  { %v9968_v46 = vmul.f32 -1.442695, %v2951_v20 }
 0x7f2   :  { %v3094_v17 = vpop.f32.mrb[42].mxu1 }
 0x7f3   :  { %12270 = vpow2.f32 %v9968_v46  ;;  %v3095_v10 = vadd.f32 %v3094_v17, %v3024_v47  ;;  %v10924_v33 = vpop.f32.mrb[43].mxu1 }
 0x7f5   :  { %v3168_v37 = vadd.f32 %v13182_v55, %v3095_v10  ;;  %v3384_v55 = vadd.f32 %v12888_v60, %v13184_v54  ;;  %v13289_v60 = vld [vmem:[%s14178_s5] sm:$0xff] }
 0x7f6   :  { %v3242_v28 = vpop.f32.mrb[44].mxu1 }
 0x7f7   :  { %v3169_v49 = vadd.f32 %v3168_v37, %v12881_v44  ;;  %v10940_v39 = vpop.f32.mrb[45].mxu1 }
 0x7f9   :  { %v9973_v5 = vmul.f32 -1.442695, %v3169_v49 }
 0x7fa   :  { %v3312_v52 = vpop.f32.mrb[46].mxu1 }
 0x7fb   :  { %12272 = vpow2.f32 %v9973_v5  ;;  %v3313_v48 = vadd.f32 %v3312_v52, %v3242_v28  ;;  %v10945_v30 = vpop.f32.mrb[47].mxu1 }
 0x7fd   :  { %v12271_v57 = vpop.eup %12270  ;;  %v3316_v16 = vadd.f32 %v12895_v2, %v3313_v48  ;;  %v13294_v2 = vld [vmem:[#allocation4 + $0x18] sm:$0xff] }
 0x7fe   :  { %v2955_v59 = vadd.f32 1.0, %v12271_v57 }
 0x800   :  { %12274 = vrcp.f32 %v2955_v59 }
 0x802   :  { %v13254_v51 = vpop.f32.mrb[48].mxu1 }
 0x803   :  { %v10967_v22 = vpop.f32.mrb[49].mxu1 }
 0x805   :  { %v12273_v63 = vpop.eup %12272 }
 0x806   :  { %v3173_v40 = vadd.f32 1.0, %v12273_v63 }
 0x808   :  { %12276 = vrcp.f32 %v3173_v40 }
 0x80a   :  { %v12275_v13 = vpop.eup %12274  ;;  %v13258_v15 = vpop.f32.mrb[50].mxu1 }
 0x80b   :  { %v3387_v43 = vmul.f32 %v12275_v13, %v3384_v55  ;;  %v10989_v32 = vpop.f32.mrb[51].mxu1 }
 0x80d   :  { %v3388_v34 = vadd.f32 %v3387_v43, %v3316_v16 }
 0x80f   :  { %12278 = vtanh.f32 %v3388_v34 }
 0x812   :  { %v12277_v35 = vpop.eup %12276 }
 0x813   :  { %v3390_v36 = vsub.f32 1.0, %v12277_v35  ;;  %v3392_v23 = vmul.f32 %v12277_v35, %v13146_v8 }
 0x819   :  { %v12279_v47 = vpop.eup %12278 }
 0x81a   :  { %v3391_v20 = vmul.f32 %v12279_v47, %v3390_v36 }
 0x81c   :  { %v3393_v46 = vadd.f32 %v3392_v23, %v3391_v20 }
 0x81e   :  { %3394 = vst.msk [vmem:[#allocation2] sm:$0xff] %vm240_vm4, %v3393_v46  ;;  %10977 = vmatmul.mubr.msk.f32.vlgmr.msra.gmra.mrb[36].mxu0 %vm240_vm4, %v3393_v46  ;;  %11010 = vmatmul.mubr.msk.f32.vlgmr.msra.gmra.mrb[52].mxu1 %vm240_vm4, %v3393_v46 }
 0x81f   :  { %11895 = vmatpush3.bf16.msra.mxu0 %v12899_v26  ;;  %10998 = vmatprep.mubr.msk.f32.mxu0 %vm12525_vm0, %v12526_v1 }
 0x820   :  { %11896 = vmatprep.subr.bf16.mxu0 %v12524_v0  ;;  %11913 = vmatpush3.bf16.msra.mxu1 %v12973_v56 }
 0x821   :  { %11914 = vmatprep.subr.bf16.mxu1 %v12524_v0  ;;  %11031 = vmatprep.mubr.msk.f32.mxu1 %vm12525_vm0, %v12526_v1 }
 0x823   :  { %11898 = vmatpush3.bf16.msra.mxu0 %v12905_v31 }
 0x824   :  { %11905 = vmatprep.subr.bf16.mxu0 %v12524_v0  ;;  %11916 = vmatpush3.bf16.msra.mxu1 %v12983_v62 }
 0x825   :  { %11039 = vmatprep.subr.mxu1 %v12526_v1  ;;  %v13305_v8 = vld [vmem:[#allocation2] sm:$0xff] }
 0x826   :  { %10999 = vmatmul.mubr.msk.f32.vlgmr.msra.gmra.mrb[38].mxu0 %vm240_vm4, %v3393_v46 }
 0x827   :  { %11907 = vmatpush3.bf16.msra.mxu0 %v12913_v38  ;;  %11020 = vmatprep.mubr.msk.f32.mxu0 %vm12525_vm0, %v12526_v1 }
 0x828   :  { %11908 = vmatprep.subr.bf16.mxu0 %v12524_v0 }
 0x82b   :  { %11910 = vmatpush3.bf16.msra.mxu0 %v12918_v42 }
 0x82c   :  { %11034 = vmatprep.subr.mxu0 %v12526_v1 }
 0x82e   :  { %11021 = vmatmul.mubr.msk.f32.vlgmr.msra.gmra.mrb[40].mxu0 %vm240_vm4, %v13231_v11 }
 0x82f   :  { %11035 = vmatpush3.msra.mxu0 %v13289_v60  ;;  %11036 = vmatprep.mubr.msk.f32.mxu0 %vm12525_vm0, %v12526_v1 }
 0x830   :  { %11917 = vmatprep.subr.bf16.mxu0 %v12524_v0 }
 0x832   :  { %11037 = vmatmul.mubr.msk.f32.vlgmr.msra.gmra.mrb[42].mxu0 %vm332_vm2, %v13294_v2 }
 0x833   :  { %11919 = vmatpush3.bf16.msra.mxu0 %v12704_v9  ;;  %11052 = vmatprep.mubr.msk.f32.mxu0 %vm12525_vm0, %v12526_v1 }
 0x834   :  { %11920 = vmatprep.subr.bf16.mxu0 %v12524_v0 }
 0x837   :  { %11922 = vmatpush3.bf16.msra.mxu0 %v12717_v14 }
 0x838   :  { %11923 = vmatprep.subr.bf16.mxu0 %v12524_v0 }
 0x83a   :  { %11053 = vmatmul.mubr.msk.f32.vlgmr.msra.gmra.mrb[44].mxu0 %vm240_vm4, %v13305_v8 }
 0x83b   :  { %11925 = vmatpush3.bf16.msra.mxu0 %v12734_v18  ;;  %11073 = vmatprep.mubr.msk.f32.mxu0 %vm12525_vm0, %v12526_v1 }
 0x83c   :  { %11926 = vmatprep.subr.bf16.mxu0 %v12524_v0 }
 0x83f   :  { %11928 = vmatpush3.bf16.msra.mxu0 %v12742_v21 }
 0x840   :  { %11929 = vmatprep.subr.bf16.mxu0 %v12524_v0 }
 0x842   :  { %11074 = vmatmul.mubr.msk.f32.vlgmr.msra.gmra.mrb[46].mxu0 %vm240_vm4, %v13305_v8 }
 0x843   :  { %11931 = vmatpush3.bf16.msra.mxu0 %v12750_v25  ;;  %11094 = vmatprep.mubr.msk.f32.mxu0 %vm12525_vm0, %v12526_v1 }
 0x844   :  { %11932 = vmatprep.subr.bf16.mxu0 %v12524_v0 }
 0x847   :  { %11934 = vmatpush3.bf16.msra.mxu0 %v12753_v27 }
 0x848   :  { %11941 = vmatprep.subr.bf16.mxu0 %v12524_v0 }
 0x84a   :  { %11095 = vmatmul.mubr.msk.f32.vlgmr.msra.gmra.mrb[48].mxu0 %vm240_vm4, %v13305_v8 }
 0x84b   :  { %11943 = vmatpush3.bf16.msra.mxu0 %v12839_v61  ;;  %11116 = vmatprep.mubr.msk.f32.mxu0 %vm12525_vm0, %v12526_v1 }
 0x84c   :  { %11944 = vmatprep.subr.bf16.mxu0 %v12524_v0 }
 0x84f   :  { %11946 = vmatpush3.bf16.msra.mxu0 %v12842_v3 }
 0x850   :  { %11953 = vmatprep.subr.bf16.mxu0 %v12524_v0 }
 0x8f1   :  { %v3538_v54 = vpop.f32.mrb[36].mxu0  ;;  %v3762_v17 = vpop.f32.mrb[52].mxu1 }
 0x8f2   :  { %v3539_v10 = vadd.f32 %v3538_v54, %v13254_v51  ;;  %v10978_v33 = vpop.f32.mrb[37].mxu0  ;;  %v11011_v37 = vpop.f32.mrb[53].mxu1  ;;  %v3763_v34 = vadd.f32 %v13018_v41, %v3762_v17  ;;  %v13351_v41 = vld [vmem:[%s14177_s4] sm:$0xf] }
 0x8f4   :  { %v3542_v28 = vadd.f32 %v3539_v10, %v12994_v6 }
 0x8f6   :  { %v9980_v49 = vmul.f32 -1.442695, %v3542_v28 }
 0x8f8   :  { %12280 = vpow2.f32 %v9980_v49 }
 0x8f9   :  { %v3685_v39 = vpop.f32.mrb[38].mxu0 }
 0x8fa   :  { %v3686_v5 = vadd.f32 %v3685_v39, %v13258_v15  ;;  %v11000_v52 = vpop.f32.mrb[39].mxu0 }
 0x8fb   :  { %v13368_v52 = vld [vmem:[%s14178_s5 + $0x8] sm:$0xff] }
 0x8fc   :  { %v3689_v48 = vadd.f32 %v3686_v5, %v13004_v29 }
 0x8fe   :  { %v9983_v30 = vmul.f32 -1.442695, %v3689_v48  ;;  %v13390_v48 = vld [vmem:[%s14178_s5 + $0x10] sm:$0xff] }
 0x900   :  { %12282 = vpow2.f32 %v9983_v30  ;;  %v13401_v30 = vld [vmem:[%s14177_s4 + $0x8] sm:$0xf] }
 0x901   :  { %v3832_v57 = vpop.f32.mrb[40].mxu0 }
 0x902   :  { %v12281_v59 = vpop.eup %12280  ;;  %v11022_v22 = vpop.f32.mrb[41].mxu0  ;;  %v3833_v43 = vadd.f32 %v13012_v19, %v3832_v57 }
 0x903   :  { %v3546_v63 = vadd.f32 1.0, %v12281_v59 }
 0x905   :  { %12284 = vrcp.f32 %v3546_v63  ;;  %v13335_v51 = vpop.f32.mrb[42].mxu0 }
 0x906   :  { %v11038_v40 = vpop.f32.mrb[43].mxu0 }
 0x90a   :  { %v12283_v55 = vpop.eup %12282 }
 0x90b   :  { %v3693_v13 = vadd.f32 1.0, %v12283_v55 }
 0x90d   :  { %v13337_v16 = vpop.f32.mrb[44].mxu0  ;;  %12286 = vrcp.f32 %v3693_v13 }
 0x90e   :  { %v11054_v15 = vpop.f32.mrb[45].mxu0 }
 0x90f   :  { %v12285_v32 = vpop.eup %12284 }
 0x910   :  { %v3836_v35 = vmul.f32 %v12285_v32, %v3833_v43 }
 0x912   :  { %v3837_v36 = vadd.f32 %v3836_v35, %v3763_v34 }
 0x914   :  { %12288 = vtanh.f32 %v3837_v36 }
 0x915   :  { %v13341_v47 = vpop.f32.mrb[46].mxu0 }
 0x916   :  { %v11075_v20 = vpop.f32.mrb[47].mxu0 }
 0x917   :  { %v12287_v23 = vpop.eup %12286 }
 0x918   :  { %v3839_v54 = vsub.f32 1.0, %v12287_v23  ;;  %v3841_v19 = vmul.f32 %v12287_v23, %v13231_v11 }
 0x91d   :  { %v13343_v46 = vpop.f32.mrb[48].mxu0 }
 0x91e   :  { %v12289_v10 = vpop.eup %12288  ;;  %v11096_v33 = vpop.f32.mrb[49].mxu0 }
 0x91f   :  { %v3840_v37 = vmul.f32 %v12289_v10, %v3839_v54 }
 0x921   :  { %v3842_v28 = vadd.f32 %v3841_v19, %v3840_v37 }
 0x923   :  { %3843 = vst.msk [vmem:[#allocation2 + $0x8] sm:$0xff] %vm240_vm4, %v3842_v28  ;;  %11032 = vmatmul.mubr.msk.f32.vlgmr.msra.gmra.mrb[54].mxu1 %vm240_vm4, %v3842_v28 }
 0x924   :  { %11040 = vmatpush3.msk.msra.mxu1 %vm409_vm3, %v13351_v41  ;;  %11041 = vmatprep.mubr.msk.f32.mxu1 %vm12525_vm0, %v12526_v1 }
 0x925   :  { %11055 = vmatprep.subr.mxu1 %v12526_v1 }
 0x9f6   :  { %v3913_v17 = vpop.f32.mrb[54].mxu1 }
 0x9f7   :  { %v3914_v11 = vadd.f32 %v13038_v12, %v3913_v17  ;;  %v11033_v49 = vpop.f32.mrb[55].mxu1  ;;  %v13379_v12 = vld [vmem:[%s14177_s4 + $0x4] sm:$0xf] }
 0x9f9   :  { %12290 = vtanh.f32 %v3914_v11 }
 0xa03   :  { %v12291_v39 = vpop.eup %12290 }
 0xa04   :  { %9987 = vst.msk [vmem:[%s14188_s15 + $0x10] sm:$0xff] %vm327_vm5, %v12291_v39  ;;  %3918 = vst.msk [vmem:[#allocation3] sm:$0xff] %vm327_vm5, %v12291_v39 }
 0xa0b   :  { %v3921_v5 = vld [vmem:[#allocation3] sm:$0xff] }
 0xa0c   :  { %11042 = vmatmul.mubr.msk.f32.vlgmr.msra.gmra.mrb[56].mxu1 %vm327_vm5, %v3921_v5 }
 0xa0d   :  { %11056 = vmatpush3.msra.mxu1 %v13368_v52  ;;  %11057 = vmatprep.mubr.msk.f32.mxu1 %vm12525_vm0, %v12526_v1 }
 0xa0e   :  { %11060 = vmatprep.subr.mxu1 %v12526_v1 }
 0xa10   :  { %11058 = vmatmul.mubr.msk.f32.vlgmr.msra.gmra.mrb[58].mxu1 %vm332_vm2, %v13294_v2 }
 0xa11   :  { %11061 = vmatpush3.msk.msra.mxu1 %vm409_vm3, %v13379_v12  ;;  %11062 = vmatprep.mubr.msk.f32.mxu1 %vm12525_vm0, %v12526_v1 }
 0xa12   :  { %11076 = vmatprep.subr.mxu1 %v12526_v1 }
 0xa14   :  { %11063 = vmatmul.mubr.msk.f32.vlgmr.msra.gmra.mrb[60].mxu1 %vm327_vm5, %v3921_v5 }
 0xa15   :  { %11077 = vmatpush3.msra.mxu1 %v13390_v48  ;;  %11078 = vmatprep.mubr.msk.f32.mxu1 %vm12525_vm0, %v12526_v1 }
 0xa16   :  { %11081 = vmatprep.subr.mxu1 %v12526_v1 }
 0xa18   :  { %11079 = vmatmul.mubr.msk.f32.vlgmr.msra.gmra.mrb[62].mxu1 %vm332_vm2, %v13294_v2  ;;  %v13415_v2 = vld [vmem:[#allocation2 + $0x8] sm:$0xff] }
 0xa19   :  { %11082 = vmatpush3.msk.msra.mxu1 %vm409_vm3, %v13401_v30  ;;  %11083 = vmatprep.mubr.msk.f32.mxu1 %vm12525_vm0, %v12526_v1 }
 0xa1a   :  { %11935 = vmatprep.subr.bf16.mxu1 %v12524_v0 }
 0xa1c   :  { %11084 = vmatmul.mubr.msk.f32.vlgmr.msra.gmra.mrb[64].mxu1 %vm327_vm5, %v3921_v5 }
 0xa1d   :  { %11937 = vmatpush3.bf16.msra.mxu1 %v12817_v45  ;;  %11105 = vmatprep.mubr.msk.f32.mxu1 %vm12525_vm0, %v12526_v1 }
 0xa1e   :  { %11938 = vmatprep.subr.bf16.mxu1 %v12524_v0 }
 0xa21   :  { %11940 = vmatpush3.bf16.msra.mxu1 %v12823_v50 }
 0xa22   :  { %11947 = vmatprep.subr.bf16.mxu1 %v12524_v0 }
 0xa24   :  { %11106 = vmatmul.mubr.msk.f32.vlgmr.msra.gmra.mrb[66].mxu1 %vm240_vm4, %v13415_v2 }
 0xa25   :  { %11949 = vmatpush3.bf16.msra.mxu1 %v12827_v53  ;;  %11127 = vmatprep.mubr.msk.f32.mxu1 %vm12525_vm0, %v12526_v1 }
 0xa26   :  { %11950 = vmatprep.subr.bf16.mxu1 %v12524_v0 }
 0xa29   :  { %11952 = vmatpush3.bf16.msra.mxu1 %v12834_v58 }
 0xa2a   :  { %11959 = vmatprep.subr.bf16.mxu1 %v12524_v0 }
 0xa2c   :  { %11128 = vmatmul.mubr.msk.f32.vlgmr.msra.gmra.mrb[68].mxu1 %vm240_vm4, %v13415_v2 }
 0xa2d   :  { %11961 = vmatpush3.bf16.msra.mxu1 %v12845_v4  ;;  %11149 = vmatprep.mubr.msk.f32.mxu1 %vm12525_vm0, %v12526_v1 }
 0xa2e   :  { %11962 = vmatprep.subr.bf16.mxu1 %v12524_v0 }
 0xa31   :  { %11964 = vmatpush3.bf16.msra.mxu1 %v12853_v7 }
 0xa32   :  { %11971 = vmatprep.subr.bf16.mxu1 %v12524_v0 }
 0xadf   :  { %v4067_v57 = vpop.f32.mrb[56].mxu1 }
 0xae0   :  { %v4068_v59 = vadd.f32 %v4067_v57, %v13335_v51  ;;  %v11043_v22 = vpop.f32.mrb[57].mxu1  ;;  %v13452_v57 = vld [vmem:[%s14180_s7 + $0x2] ss:$0 sm:$0xff] }
 0xae2   :  { %v4144_v63 = vadd.f32 %v13337_v16, %v4068_v59 }
 0xae3   :  { %v4218_v40 = vpop.f32.mrb[58].mxu1 }
 0xae4   :  { %v4145_v55 = vadd.f32 %v4144_v63, %v12870_v24  ;;  %v11059_v13 = vpop.f32.mrb[59].mxu1 }
 0xae6   :  { %v9992_v43 = vmul.f32 -1.442695, %v4145_v55 }
 0xae7   :  { %v4288_v15 = vpop.f32.mrb[60].mxu1 }
 0xae8   :  { %12292 = vpow2.f32 %v9992_v43  ;;  %v4289_v32 = vadd.f32 %v4288_v15, %v4218_v40  ;;  %v11064_v34 = vpop.f32.mrb[61].mxu1 }
 0xaea   :  { %v4362_v35 = vadd.f32 %v13341_v47, %v4289_v32  ;;  %v13443_v47 = vld [vmem:[%s14181_s8 + $0x2] ss:$0 sm:$0xff] }
 0xaeb   :  { %v4436_v36 = vpop.f32.mrb[62].mxu1  ;;  %v4578_v49 = vadd.f32 %v13443_v47, %v13343_v46 }
 0xaec   :  { %v4363_v20 = vadd.f32 %v4362_v35, %v12881_v44  ;;  %v11080_v23 = vpop.f32.mrb[63].mxu1 }
 0xaee   :  { %v9997_v54 = vmul.f32 -1.442695, %v4363_v20 }
 0xaef   :  { %v4506_v51 = vpop.f32.mrb[64].mxu1 }
 0xaf0   :  { %12294 = vpow2.f32 %v9997_v54  ;;  %v4507_v10 = vadd.f32 %v4506_v51, %v4436_v36  ;;  %v11085_v16 = vpop.f32.mrb[65].mxu1 }
 0xaf2   :  { %v12293_v33 = vpop.eup %12292  ;;  %v4510_v59 = vadd.f32 %v13452_v57, %v4507_v10 }
 0xaf3   :  { %v4149_v37 = vadd.f32 1.0, %v12293_v33 }
 0xaf5   :  { %12296 = vrcp.f32 %v4149_v37 }
 0xaf7   :  { %v13438_v19 = vpop.f32.mrb[66].mxu1 }
 0xaf8   :  { %v11107_v28 = vpop.f32.mrb[67].mxu1 }
 0xafa   :  { %v12295_v17 = vpop.eup %12294 }
 0xafb   :  { %v4367_v11 = vadd.f32 1.0, %v12295_v17 }
 0xafd   :  { %12298 = vrcp.f32 %v4367_v11 }
 0xaff   :  { %v12297_v39 = vpop.eup %12296  ;;  %v13447_v5 = vpop.f32.mrb[68].mxu1 }
 0xb00   :  { %v4581_v22 = vmul.f32 %v12297_v39, %v4578_v49  ;;  %v11129_v63 = vpop.f32.mrb[69].mxu1 }
 0xb02   :  { %v4582_v40 = vadd.f32 %v4581_v22, %v4510_v59 }
 0xb04   :  { %12300 = vtanh.f32 %v4582_v40 }
 0xb07   :  { %v12299_v55 = vpop.eup %12298 }
 0xb08   :  { %v4584_v13 = vsub.f32 1.0, %v12299_v55  ;;  %v4586_v46 = vmul.f32 %v12299_v55, %v13305_v8  ;;  %v13483_v8 = vld [vmem:[#allocation4 + $0x20] sm:$0xff] }
 0xb0e   :  { %v12301_v43 = vpop.eup %12300 }
 0xb0f   :  { %v4585_v15 = vmul.f32 %v12301_v43, %v4584_v13 }
 0xb11   :  { %v4587_v32 = vadd.f32 %v4586_v46, %v4585_v15  ;;  %v13537_v46 = vld [vmem:[%s14184_s11 + $0x2] ss:$0 sm:$0xff] }
 0xb13   :  { %4588 = vst.msk [vmem:[#allocation2] sm:$0xff] %vm240_vm4, %v4587_v32  ;;  %11117 = vmatmul.mubr.msk.f32.vlgmr.msra.gmra.mrb[50].mxu0 %vm240_vm4, %v4587_v32  ;;  %11150 = vmatmul.mubr.msk.f32.vlgmr.msra.gmra.mrb[70].mxu1 %vm240_vm4, %v4587_v32 }
 0xb14   :  { %11955 = vmatpush3.bf16.msra.mxu0 %v12899_v26  ;;  %11138 = vmatprep.mubr.msk.f32.mxu0 %vm12525_vm0, %v12526_v1 }
 0xb15   :  { %11956 = vmatprep.subr.bf16.mxu0 %v12524_v0  ;;  %11973 = vmatpush3.bf16.msra.mxu1 %v12973_v56 }
 0xb16   :  { %11974 = vmatprep.subr.bf16.mxu1 %v12524_v0  ;;  %11171 = vmatprep.mubr.msk.f32.mxu1 %vm12525_vm0, %v12526_v1 }
 0xb18   :  { %11958 = vmatpush3.bf16.msra.mxu0 %v12905_v31 }
 0xb19   :  { %11965 = vmatprep.subr.bf16.mxu0 %v12524_v0  ;;  %11976 = vmatpush3.bf16.msra.mxu1 %v12983_v62 }
 0xb1a   :  { %11179 = vmatprep.subr.mxu1 %v12526_v1  ;;  %v13494_v34 = vld [vmem:[#allocation2] sm:$0xff] }
 0xb1b   :  { %11139 = vmatmul.mubr.msk.f32.vlgmr.msra.gmra.mrb[52].mxu0 %vm240_vm4, %v4587_v32 }
 0xb1c   :  { %11967 = vmatpush3.bf16.msra.mxu0 %v12913_v38  ;;  %11160 = vmatprep.mubr.msk.f32.mxu0 %vm12525_vm0, %v12526_v1 }
 0xb1d   :  { %11968 = vmatprep.subr.bf16.mxu0 %v12524_v0 }
 0xb20   :  { %11970 = vmatpush3.bf16.msra.mxu0 %v12918_v42 }
 0xb21   :  { %11174 = vmatprep.subr.mxu0 %v12526_v1 }
 0xb23   :  { %11161 = vmatmul.mubr.msk.f32.vlgmr.msra.gmra.mrb[54].mxu0 %vm240_vm4, %v13415_v2 }
 0xb24   :  { %11175 = vmatpush3.msra.mxu0 %v13289_v60  ;;  %11176 = vmatprep.mubr.msk.f32.mxu0 %vm12525_vm0, %v12526_v1 }
 0xb25   :  { %11977 = vmatprep.subr.bf16.mxu0 %v12524_v0 }
 0xb27   :  { %11177 = vmatmul.mubr.msk.f32.vlgmr.msra.gmra.mrb[56].mxu0 %vm332_vm2, %v13483_v8 }
 0xb28   :  { %11979 = vmatpush3.bf16.msra.mxu0 %v12704_v9  ;;  %11192 = vmatprep.mubr.msk.f32.mxu0 %vm12525_vm0, %v12526_v1 }
 0xb29   :  { %11980 = vmatprep.subr.bf16.mxu0 %v12524_v0 }
 0xb2c   :  { %11982 = vmatpush3.bf16.msra.mxu0 %v12717_v14 }
 0xb2d   :  { %11983 = vmatprep.subr.bf16.mxu0 %v12524_v0 }
 0xb2f   :  { %11193 = vmatmul.mubr.msk.f32.vlgmr.msra.gmra.mrb[58].mxu0 %vm240_vm4, %v13494_v34 }
 0xb30   :  { %11985 = vmatpush3.bf16.msra.mxu0 %v12734_v18  ;;  %11213 = vmatprep.mubr.msk.f32.mxu0 %vm12525_vm0, %v12526_v1 }
 0xb31   :  { %11986 = vmatprep.subr.bf16.mxu0 %v12524_v0 }
 0xb34   :  { %11988 = vmatpush3.bf16.msra.mxu0 %v12742_v21 }
 0xb35   :  { %11989 = vmatprep.subr.bf16.mxu0 %v12524_v0 }
 0xb37   :  { %11214 = vmatmul.mubr.msk.f32.vlgmr.msra.gmra.mrb[60].mxu0 %vm240_vm4, %v13494_v34 }
 0xb38   :  { %11991 = vmatpush3.bf16.msra.mxu0 %v12750_v25  ;;  %11234 = vmatprep.mubr.msk.f32.mxu0 %vm12525_vm0, %v12526_v1 }
 0xb39   :  { %11992 = vmatprep.subr.bf16.mxu0 %v12524_v0 }
 0xb3c   :  { %11994 = vmatpush3.bf16.msra.mxu0 %v12753_v27 }
 0xb3d   :  { %12001 = vmatprep.subr.bf16.mxu0 %v12524_v0 }
 0xb3f   :  { %11235 = vmatmul.mubr.msk.f32.vlgmr.msra.gmra.mrb[62].mxu0 %vm240_vm4, %v13494_v34 }
 0xb40   :  { %12003 = vmatpush3.bf16.msra.mxu0 %v12839_v61  ;;  %11256 = vmatprep.mubr.msk.f32.mxu0 %vm12525_vm0, %v12526_v1 }
 0xb41   :  { %12004 = vmatprep.subr.bf16.mxu0 %v12524_v0 }
 0xb44   :  { %12006 = vmatpush3.bf16.msra.mxu0 %v12842_v3 }
 0xb45   :  { %12013 = vmatprep.subr.bf16.mxu0 %v12524_v0 }
 0xbe6   :  { %v4732_v35 = vpop.f32.mrb[50].mxu0  ;;  %v4956_v36 = vpop.f32.mrb[70].mxu1 }
 0xbe7   :  { %v4733_v20 = vadd.f32 %v4732_v35, %v13438_v19  ;;  %v11118_v23 = vpop.f32.mrb[51].mxu0  ;;  %v11151_v54 = vpop.f32.mrb[71].mxu1  ;;  %v4957_v32 = vadd.f32 %v13537_v46, %v4956_v36 }
 0xbe9   :  { %v4736_v51 = vadd.f32 %v4733_v20, %v12994_v6 }
 0xbeb   :  { %v10004_v10 = vmul.f32 -1.442695, %v4736_v51 }
 0xbed   :  { %12302 = vpow2.f32 %v10004_v10 }
 0xbee   :  { %v4879_v16 = vpop.f32.mrb[52].mxu0 }
 0xbef   :  { %v4880_v33 = vadd.f32 %v4879_v16, %v13447_v5  ;;  %v11140_v37 = vpop.f32.mrb[53].mxu0  ;;  %v13531_v5 = vld [vmem:[%s14185_s12 + $0x2] ss:$0 sm:$0xff] }
 0xbf1   :  { %v4883_v28 = vadd.f32 %v4880_v33, %v13004_v29 }
 0xbf3   :  { %v10007_v17 = vmul.f32 -1.442695, %v4883_v28 }
 0xbf5   :  { %12304 = vpow2.f32 %v10007_v17 }
 0xbf6   :  { %v5026_v11 = vpop.f32.mrb[54].mxu0 }
 0xbf7   :  { %v12303_v49 = vpop.eup %12302  ;;  %v11162_v39 = vpop.f32.mrb[55].mxu0  ;;  %v5027_v13 = vadd.f32 %v13531_v5, %v5026_v11 }
 0xbf8   :  { %v4740_v59 = vadd.f32 1.0, %v12303_v49  ;;  %v13555_v49 = vld [vmem:[%s14187_s14] ss:$0 sm:$0xff] }
 0xbfa   :  { %12306 = vrcp.f32 %v4740_v59  ;;  %v13524_v19 = vpop.f32.mrb[56].mxu0 }
 0xbfb   :  { %v11178_v22 = vpop.f32.mrb[57].mxu0 }
 0xbff   :  { %v12305_v63 = vpop.eup %12304 }
 0xc00   :  { %v4887_v40 = vadd.f32 1.0, %v12305_v63 }
 0xc02   :  { %v13526_v55 = vpop.f32.mrb[58].mxu0  ;;  %12308 = vrcp.f32 %v4887_v40 }
 0xc03   :  { %v11194_v43 = vpop.f32.mrb[59].mxu0 }
 0xc04   :  { %v12307_v15 = vpop.eup %12306 }
 0xc05   :  { %v5030_v35 = vmul.f32 %v12307_v15, %v5027_v13 }
 0xc07   :  { %v5031_v20 = vadd.f32 %v5030_v35, %v4957_v32 }
 0xc09   :  { %12310 = vtanh.f32 %v5031_v20 }
 0xc0a   :  { %v13540_v23 = vpop.f32.mrb[60].mxu0 }
 0xc0b   :  { %v11215_v54 = vpop.f32.mrb[61].mxu0 }
 0xc0c   :  { %v12309_v51 = vpop.eup %12308 }
 0xc0d   :  { %v5033_v16 = vsub.f32 1.0, %v12309_v51  ;;  %v5035_v17 = vmul.f32 %v12309_v51, %v13415_v2 }
 0xc12   :  { %v13542_v10 = vpop.f32.mrb[62].mxu0 }
 0xc13   :  { %v12311_v33 = vpop.eup %12310  ;;  %v11236_v37 = vpop.f32.mrb[63].mxu0 }
 0xc14   :  { %v5034_v28 = vmul.f32 %v12311_v33, %v5033_v16 }
 0xc16   :  { %v5036_v11 = vadd.f32 %v5035_v17, %v5034_v28 }
 0xc18   :  { %5037 = vst.msk [vmem:[#allocation2 + $0x8] sm:$0xff] %vm240_vm4, %v5036_v11  ;;  %11172 = vmatmul.mubr.msk.f32.vlgmr.msra.gmra.mrb[72].mxu1 %vm240_vm4, %v5036_v11 }
 0xc19   :  { %11180 = vmatpush3.msk.msra.mxu1 %vm409_vm3, %v13351_v41  ;;  %11181 = vmatprep.mubr.msk.f32.mxu1 %vm12525_vm0, %v12526_v1 }
 0xc1a   :  { %11195 = vmatprep.subr.mxu1 %v12526_v1 }
 0xceb   :  { %v5107_v36 = vpop.f32.mrb[72].mxu1 }
 0xcec   :  { %v5108_v2 = vadd.f32 %v13555_v49, %v5107_v36  ;;  %v11173_v39 = vpop.f32.mrb[73].mxu1 }
 0xcee   :  { %12312 = vtanh.f32 %v5108_v2 }
 0xcf8   :  { %v12313_v59 = vpop.eup %12312 }
 0xcf9   :  { %10011 = vst.msk [vmem:[%s14188_s15 + $0x18] sm:$0xff] %vm327_vm5, %v12313_v59  ;;  %5112 = vst.msk [vmem:[#allocation3] sm:$0xff] %vm327_vm5, %v12313_v59 }
 0xd00   :  { %v5115_v22 = vld [vmem:[#allocation3] sm:$0xff] }
 0xd01   :  { %11182 = vmatmul.mubr.msk.f32.vlgmr.msra.gmra.mrb[74].mxu1 %vm327_vm5, %v5115_v22 }
 0xd02   :  { %11196 = vmatpush3.msra.mxu1 %v13368_v52  ;;  %11197 = vmatprep.mubr.msk.f32.mxu1 %vm12525_vm0, %v12526_v1 }
 0xd03   :  { %11200 = vmatprep.subr.mxu1 %v12526_v1 }
 0xd05   :  { %11198 = vmatmul.mubr.msk.f32.vlgmr.msra.gmra.mrb[76].mxu1 %vm332_vm2, %v13483_v8 }
 0xd06   :  { %11201 = vmatpush3.msk.msra.mxu1 %vm409_vm3, %v13379_v12  ;;  %11202 = vmatprep.mubr.msk.f32.mxu1 %vm12525_vm0, %v12526_v1 }
 0xd07   :  { %11216 = vmatprep.subr.mxu1 %v12526_v1 }
 0xd09   :  { %11203 = vmatmul.mubr.msk.f32.vlgmr.msra.gmra.mrb[78].mxu1 %vm327_vm5, %v5115_v22 }
 0xd0a   :  { %11217 = vmatpush3.msra.mxu1 %v13390_v48  ;;  %11218 = vmatprep.mubr.msk.f32.mxu1 %vm12525_vm0, %v12526_v1 }
 0xd0b   :  { %11221 = vmatprep.subr.mxu1 %v12526_v1 }
 0xd0d   :  { %11219 = vmatmul.mubr.msk.f32.vlgmr.msra.gmra.mrb[80].mxu1 %vm332_vm2, %v13483_v8  ;;  %v13594_v8 = vld [vmem:[#allocation2 + $0x8] sm:$0xff] }
 0xd0e   :  { %11222 = vmatpush3.msk.msra.mxu1 %vm409_vm3, %v13401_v30  ;;  %11223 = vmatprep.mubr.msk.f32.mxu1 %vm12525_vm0, %v12526_v1 }
 0xd0f   :  { %11995 = vmatprep.subr.bf16.mxu1 %v12524_v0 }
 0xd11   :  { %11224 = vmatmul.mubr.msk.f32.vlgmr.msra.gmra.mrb[82].mxu1 %vm327_vm5, %v5115_v22 }
 0xd12   :  { %11997 = vmatpush3.bf16.msra.mxu1 %v12817_v45  ;;  %11245 = vmatprep.mubr.msk.f32.mxu1 %vm12525_vm0, %v12526_v1 }
 0xd13   :  { %11998 = vmatprep.subr.bf16.mxu1 %v12524_v0 }
 0xd16   :  { %12000 = vmatpush3.bf16.msra.mxu1 %v12823_v50 }
 0xd17   :  { %12007 = vmatprep.subr.bf16.mxu1 %v12524_v0 }
 0xd19   :  { %11246 = vmatmul.mubr.msk.f32.vlgmr.msra.gmra.mrb[84].mxu1 %vm240_vm4, %v13594_v8 }
 0xd1a   :  { %12009 = vmatpush3.bf16.msra.mxu1 %v12827_v53  ;;  %11267 = vmatprep.mubr.msk.f32.mxu1 %vm12525_vm0, %v12526_v1 }
 0xd1b   :  { %12010 = vmatprep.subr.bf16.mxu1 %v12524_v0 }
 0xd1e   :  { %12012 = vmatpush3.bf16.msra.mxu1 %v12834_v58 }
 0xd1f   :  { %12019 = vmatprep.subr.bf16.mxu1 %v12524_v0 }
 0xd21   :  { %11268 = vmatmul.mubr.msk.f32.vlgmr.msra.gmra.mrb[86].mxu1 %vm240_vm4, %v13594_v8 }
 0xd22   :  { %12021 = vmatpush3.bf16.msra.mxu1 %v12845_v4  ;;  %11289 = vmatprep.mubr.msk.f32.mxu1 %vm12525_vm0, %v12526_v1 }
 0xd23   :  { %12022 = vmatprep.subr.bf16.mxu1 %v12524_v0 }
 0xd26   :  { %12024 = vmatpush3.bf16.msra.mxu1 %v12853_v7 }
 0xd27   :  { %12031 = vmatprep.subr.bf16.mxu1 %v12524_v0 }
 0xdd4   :  { %v5261_v63 = vpop.f32.mrb[74].mxu1 }
 0xdd5   :  { %v5262_v40 = vadd.f32 %v5261_v63, %v13524_v19  ;;  %v11183_v13 = vpop.f32.mrb[75].mxu1 }
 0xdd7   :  { %v5338_v43 = vadd.f32 %v13526_v55, %v5262_v40 }
 0xdd8   :  { %v5412_v15 = vpop.f32.mrb[76].mxu1 }
 0xdd9   :  { %v5339_v32 = vadd.f32 %v5338_v43, %v12870_v24  ;;  %v11199_v35 = vpop.f32.mrb[77].mxu1 }
 0xddb   :  { %v10016_v20 = vmul.f32 -1.442695, %v5339_v32 }
 0xddc   :  { %v5482_v54 = vpop.f32.mrb[78].mxu1 }
 0xddd   :  { %12314 = vpow2.f32 %v10016_v20  ;;  %v5483_v51 = vadd.f32 %v5482_v54, %v5412_v15  ;;  %v11204_v16 = vpop.f32.mrb[79].mxu1 }
 0xddf   :  { %v5556_v33 = vadd.f32 %v13540_v23, %v5483_v51  ;;  %v5772_v23 = vadd.f32 %v13443_v47, %v13542_v10 }
 0xde0   :  { %v5630_v37 = vpop.f32.mrb[80].mxu1 }
 0xde1   :  { %v5557_v28 = vadd.f32 %v5556_v33, %v12881_v44  ;;  %v11220_v17 = vpop.f32.mrb[81].mxu1 }
 0xde3   :  { %v10021_v11 = vmul.f32 -1.442695, %v5557_v28 }
 0xde4   :  { %v5700_v19 = vpop.f32.mrb[82].mxu1 }
 0xde5   :  { %12316 = vpow2.f32 %v10021_v11  ;;  %v5701_v36 = vadd.f32 %v5700_v19, %v5630_v37  ;;  %v11225_v55 = vpop.f32.mrb[83].mxu1 }
 0xde7   :  { %v12315_v2 = vpop.eup %12314  ;;  %v5704_v15 = vadd.f32 %v13452_v57, %v5701_v36 }
 0xde8   :  { %v5343_v39 = vadd.f32 1.0, %v12315_v2 }
 0xdea   :  { %12318 = vrcp.f32 %v5343_v39 }
 0xdec   :  { %v13617_v59 = vpop.f32.mrb[84].mxu1 }
 0xded   :  { %v11247_v22 = vpop.f32.mrb[85].mxu1 }
 0xdef   :  { %v12317_v63 = vpop.eup %12316 }
 0xdf0   :  { %v5561_v40 = vadd.f32 1.0, %v12317_v63 }
 0xdf2   :  { %12320 = vrcp.f32 %v5561_v40 }
 0xdf4   :  { %v12319_v13 = vpop.eup %12318  ;;  %v13621_v43 = vpop.f32.mrb[86].mxu1 }
 0xdf5   :  { %v5775_v32 = vmul.f32 %v12319_v13, %v5772_v23  ;;  %v11269_v35 = vpop.f32.mrb[87].mxu1 }
 0xdf7   :  { %v5776_v20 = vadd.f32 %v5775_v32, %v5704_v15 }
 0xdf9   :  { %12322 = vtanh.f32 %v5776_v20 }
 0xdfc   :  { %v12321_v54 = vpop.eup %12320 }
 0xdfd   :  { %v5778_v51 = vsub.f32 1.0, %v12321_v54  ;;  %v5780_v37 = vmul.f32 %v12321_v54, %v13494_v34  ;;  %v13652_v34 = vld [vmem:[#allocation4 + $0x28] sm:$0xff] }
 0xe03   :  { %v12323_v16 = vpop.eup %12322 }
 0xe04   :  { %v5779_v33 = vmul.f32 %v12323_v16, %v5778_v51 }
 0xe06   :  { %v5781_v28 = vadd.f32 %v5780_v37, %v5779_v33 }
 0xe08   :  { %5782 = vst.msk [vmem:[#allocation2] sm:$0xff] %vm240_vm4, %v5781_v28  ;;  %11257 = vmatmul.mubr.msk.f32.vlgmr.msra.gmra.mrb[64].mxu0 %vm240_vm4, %v5781_v28  ;;  %11290 = vmatmul.mubr.msk.f32.vlgmr.msra.gmra.mrb[88].mxu1 %vm240_vm4, %v5781_v28 }
 0xe09   :  { %12015 = vmatpush3.bf16.msra.mxu0 %v12899_v26  ;;  %11278 = vmatprep.mubr.msk.f32.mxu0 %vm12525_vm0, %v12526_v1 }
 0xe0a   :  { %12016 = vmatprep.subr.bf16.mxu0 %v12524_v0  ;;  %12033 = vmatpush3.bf16.msra.mxu1 %v12973_v56 }
 0xe0b   :  { %12034 = vmatprep.subr.bf16.mxu1 %v12524_v0  ;;  %11311 = vmatprep.mubr.msk.f32.mxu1 %vm12525_vm0, %v12526_v1 }
 0xe0d   :  { %12018 = vmatpush3.bf16.msra.mxu0 %v12905_v31 }
 0xe0e   :  { %12025 = vmatprep.subr.bf16.mxu0 %v12524_v0  ;;  %12036 = vmatpush3.bf16.msra.mxu1 %v12983_v62 }
 0xe0f   :  { %11319 = vmatprep.subr.mxu1 %v12526_v1 }
 0xe10   :  { %11279 = vmatmul.mubr.msk.f32.vlgmr.msra.gmra.mrb[66].mxu0 %vm240_vm4, %v5781_v28 }
 0xe11   :  { %12027 = vmatpush3.bf16.msra.mxu0 %v12913_v38  ;;  %11300 = vmatprep.mubr.msk.f32.mxu0 %vm12525_vm0, %v12526_v1 }
 0xe12   :  { %12028 = vmatprep.subr.bf16.mxu0 %v12524_v0 }
 0xe15   :  { %12030 = vmatpush3.bf16.msra.mxu0 %v12918_v42 }
 0xe16   :  { %11314 = vmatprep.subr.mxu0 %v12526_v1 }
 0xe18   :  { %11301 = vmatmul.mubr.msk.f32.vlgmr.msra.gmra.mrb[68].mxu0 %vm240_vm4, %v13594_v8 }
 0xe19   :  { %11315 = vmatpush3.msra.mxu0 %v13289_v60  ;;  %11316 = vmatprep.mubr.msk.f32.mxu0 %vm12525_vm0, %v12526_v1  ;;  %v13663_v60 = vld [vmem:[#allocation2] sm:$0xff] }
 0xe1a   :  { %12037 = vmatprep.subr.bf16.mxu0 %v12524_v0 }
 0xe1c   :  { %11317 = vmatmul.mubr.msk.f32.vlgmr.msra.gmra.mrb[70].mxu0 %vm332_vm2, %v13652_v34 }
 0xe1d   :  { %12039 = vmatpush3.bf16.msra.mxu0 %v12704_v9  ;;  %11332 = vmatprep.mubr.msk.f32.mxu0 %vm12525_vm0, %v12526_v1 }
 0xe1e   :  { %12040 = vmatprep.subr.bf16.mxu0 %v12524_v0 }
 0xe21   :  { %12042 = vmatpush3.bf16.msra.mxu0 %v12717_v14 }
 0xe22   :  { %12043 = vmatprep.subr.bf16.mxu0 %v12524_v0 }
 0xe24   :  { %11333 = vmatmul.mubr.msk.f32.vlgmr.msra.gmra.mrb[72].mxu0 %vm240_vm4, %v13663_v60 }
 0xe25   :  { %12045 = vmatpush3.bf16.msra.mxu0 %v12734_v18  ;;  %11353 = vmatprep.mubr.msk.f32.mxu0 %vm12525_vm0, %v12526_v1 }
 0xe26   :  { %12046 = vmatprep.subr.bf16.mxu0 %v12524_v0 }
 0xe29   :  { %12048 = vmatpush3.bf16.msra.mxu0 %v12742_v21 }
 0xe2a   :  { %12049 = vmatprep.subr.bf16.mxu0 %v12524_v0 }
 0xe2c   :  { %11354 = vmatmul.mubr.msk.f32.vlgmr.msra.gmra.mrb[74].mxu0 %vm240_vm4, %v13663_v60 }
 0xe2d   :  { %12051 = vmatpush3.bf16.msra.mxu0 %v12750_v25  ;;  %11374 = vmatprep.mubr.msk.f32.mxu0 %vm12525_vm0, %v12526_v1 }
 0xe2e   :  { %12052 = vmatprep.subr.bf16.mxu0 %v12524_v0 }
 0xe31   :  { %12054 = vmatpush3.bf16.msra.mxu0 %v12753_v27 }
 0xe32   :  { %12061 = vmatprep.subr.bf16.mxu0 %v12524_v0 }
 0xe34   :  { %11375 = vmatmul.mubr.msk.f32.vlgmr.msra.gmra.mrb[76].mxu0 %vm240_vm4, %v13663_v60 }
 0xe35   :  { %12063 = vmatpush3.bf16.msra.mxu0 %v12839_v61  ;;  %11396 = vmatprep.mubr.msk.f32.mxu0 %vm12525_vm0, %v12526_v1 }
 0xe36   :  { %12064 = vmatprep.subr.bf16.mxu0 %v12524_v0 }
 0xe39   :  { %12066 = vmatpush3.bf16.msra.mxu0 %v12842_v3 }
 0xe3a   :  { %12073 = vmatprep.subr.bf16.mxu0 %v12524_v0 }
 0xedb   :  { %v5926_v10 = vpop.f32.mrb[64].mxu0  ;;  %v6150_v17 = vpop.f32.mrb[88].mxu1 }
 0xedc   :  { %v5927_v11 = vadd.f32 %v5926_v10, %v13617_v59  ;;  %v11258_v19 = vpop.f32.mrb[65].mxu0  ;;  %v11291_v36 = vpop.f32.mrb[89].mxu1  ;;  %v6151_v28 = vadd.f32 %v13537_v46, %v6150_v17 }
 0xede   :  { %v5930_v55 = vadd.f32 %v5927_v11, %v12994_v6 }
 0xee0   :  { %v10028_v2 = vmul.f32 -1.442695, %v5930_v55 }
 0xee2   :  { %12324 = vpow2.f32 %v10028_v2 }
 0xee3   :  { %v6073_v39 = vpop.f32.mrb[66].mxu0 }
 0xee4   :  { %v6074_v22 = vadd.f32 %v6073_v39, %v13621_v43  ;;  %v11280_v63 = vpop.f32.mrb[67].mxu0 }
 0xee6   :  { %v6077_v40 = vadd.f32 %v6074_v22, %v13004_v29 }
 0xee8   :  { %v10031_v23 = vmul.f32 -1.442695, %v6077_v40 }
 0xeea   :  { %12326 = vpow2.f32 %v10031_v23 }
 0xeeb   :  { %v6220_v13 = vpop.f32.mrb[68].mxu0 }
 0xeec   :  { %v12325_v15 = vpop.eup %12324  ;;  %v11302_v32 = vpop.f32.mrb[69].mxu0  ;;  %v6221_v33 = vadd.f32 %v13531_v5, %v6220_v13 }
 0xeed   :  { %v5934_v35 = vadd.f32 1.0, %v12325_v15 }
 0xeef   :  { %12328 = vrcp.f32 %v5934_v35  ;;  %v13693_v59 = vpop.f32.mrb[70].mxu0 }
 0xef0   :  { %v11318_v20 = vpop.f32.mrb[71].mxu0 }
 0xef4   :  { %v12327_v54 = vpop.eup %12326 }
 0xef5   :  { %v6081_v51 = vadd.f32 1.0, %v12327_v54 }
 0xef7   :  { %v13695_v16 = vpop.f32.mrb[72].mxu0  ;;  %12330 = vrcp.f32 %v6081_v51 }
 0xef8   :  { %v11334_v43 = vpop.f32.mrb[73].mxu0 }
 0xef9   :  { %v12329_v37 = vpop.eup %12328 }
 0xefa   :  { %v6224_v10 = vmul.f32 %v12329_v37, %v6221_v33 }
 0xefc   :  { %v6225_v11 = vadd.f32 %v6224_v10, %v6151_v28 }
 0xefe   :  { %12332 = vtanh.f32 %v6225_v11 }
 0xeff   :  { %v13699_v19 = vpop.f32.mrb[74].mxu0 }
 0xf00   :  { %v11355_v36 = vpop.f32.mrb[75].mxu0 }
 0xf01   :  { %v12331_v55 = vpop.eup %12330 }
 0xf02   :  { %v6227_v39 = vsub.f32 1.0, %v12331_v55  ;;  %v6229_v23 = vmul.f32 %v12331_v55, %v13594_v8 }
 0xf07   :  { %v13701_v2 = vpop.f32.mrb[76].mxu0 }
 0xf08   :  { %v12333_v22 = vpop.eup %12332  ;;  %v11376_v63 = vpop.f32.mrb[77].mxu0 }
 0xf09   :  { %v6228_v40 = vmul.f32 %v12333_v22, %v6227_v39 }
 0xf0b   :  { %v6230_v13 = vadd.f32 %v6229_v23, %v6228_v40 }
 0xf0d   :  { %6231 = vst.msk [vmem:[#allocation2 + $0x8] sm:$0xff] %vm240_vm4, %v6230_v13  ;;  %11312 = vmatmul.mubr.msk.f32.vlgmr.msra.gmra.mrb[90].mxu1 %vm240_vm4, %v6230_v13 }
 0xf0e   :  { %11320 = vmatpush3.msk.msra.mxu1 %vm409_vm3, %v13351_v41  ;;  %11321 = vmatprep.mubr.msk.f32.mxu1 %vm12525_vm0, %v12526_v1 }
 0xf0f   :  { %11335 = vmatprep.subr.mxu1 %v12526_v1 }
 0xf14   :  { %v13748_v41 = vld [vmem:[#allocation2 + $0x8] sm:$0xff] }
 0xfe0   :  { %v6301_v17 = vpop.f32.mrb[90].mxu1 }
 0xfe1   :  { %v6302_v15 = vadd.f32 %v13555_v49, %v6301_v17  ;;  %v11313_v32 = vpop.f32.mrb[91].mxu1 }
 0xfe3   :  { %12334 = vtanh.f32 %v6302_v15 }
 0xfed   :  { %v12335_v35 = vpop.eup %12334 }
 0xfee   :  { %10035 = vst.msk [vmem:[%s14188_s15 + $0x20] sm:$0xff] %vm327_vm5, %v12335_v35  ;;  %6306 = vst.msk [vmem:[#allocation3] sm:$0xff] %vm327_vm5, %v12335_v35 }
 0xff5   :  { %v6309_v8 = vld [vmem:[#allocation3] sm:$0xff] }
 0xff6   :  { %11322 = vmatmul.mubr.msk.f32.vlgmr.msra.gmra.mrb[92].mxu1 %vm327_vm5, %v6309_v8 }
 0xff7   :  { %11336 = vmatpush3.msra.mxu1 %v13368_v52  ;;  %11337 = vmatprep.mubr.msk.f32.mxu1 %vm12525_vm0, %v12526_v1 }
 0xff8   :  { %11340 = vmatprep.subr.mxu1 %v12526_v1 }
 0xffa   :  { %11338 = vmatmul.mubr.msk.f32.vlgmr.msra.gmra.mrb[94].mxu1 %vm332_vm2, %v13652_v34 }
 0xffb   :  { %11341 = vmatpush3.msk.msra.mxu1 %vm409_vm3, %v13379_v12  ;;  %11342 = vmatprep.mubr.msk.f32.mxu1 %vm12525_vm0, %v12526_v1 }
 0xffc   :  { %11356 = vmatprep.subr.mxu1 %v12526_v1 }
 0xffe   :  { %11343 = vmatmul.mubr.msk.f32.vlgmr.msra.gmra.mrb[96].mxu1 %vm327_vm5, %v6309_v8 }
 0xfff   :  { %11357 = vmatpush3.msra.mxu1 %v13390_v48  ;;  %11358 = vmatprep.mubr.msk.f32.mxu1 %vm12525_vm0, %v12526_v1 }
0x1000   :  { %11361 = vmatprep.subr.mxu1 %v12526_v1 }
0x1002   :  { %11359 = vmatmul.mubr.msk.f32.vlgmr.msra.gmra.mrb[98].mxu1 %vm332_vm2, %v13652_v34 }
0x1003   :  { %11362 = vmatpush3.msk.msra.mxu1 %vm409_vm3, %v13401_v30  ;;  %11363 = vmatprep.mubr.msk.f32.mxu1 %vm12525_vm0, %v12526_v1 }
0x1004   :  { %12055 = vmatprep.subr.bf16.mxu1 %v12524_v0 }
0x1006   :  { %11364 = vmatmul.mubr.msk.f32.vlgmr.msra.gmra.mrb[100].mxu1 %vm327_vm5, %v6309_v8 }
0x1007   :  { %12057 = vmatpush3.bf16.msra.mxu1 %v12817_v45  ;;  %11385 = vmatprep.mubr.msk.f32.mxu1 %vm12525_vm0, %v12526_v1 }
0x1008   :  { %12058 = vmatprep.subr.bf16.mxu1 %v12524_v0 }
0x100b   :  { %12060 = vmatpush3.bf16.msra.mxu1 %v12823_v50 }
0x100c   :  { %12067 = vmatprep.subr.bf16.mxu1 %v12524_v0 }
0x100e   :  { %11386 = vmatmul.mubr.msk.f32.vlgmr.msra.gmra.mrb[102].mxu1 %vm240_vm4, %v13748_v41 }
0x100f   :  { %12069 = vmatpush3.bf16.msra.mxu1 %v12827_v53  ;;  %11407 = vmatprep.mubr.msk.f32.mxu1 %vm12525_vm0, %v12526_v1 }
0x1010   :  { %12070 = vmatprep.subr.bf16.mxu1 %v12524_v0 }
0x1013   :  { %12072 = vmatpush3.bf16.msra.mxu1 %v12834_v58 }
0x1014   :  { %12079 = vmatprep.subr.bf16.mxu1 %v12524_v0 }
0x1016   :  { %11408 = vmatmul.mubr.msk.f32.vlgmr.msra.gmra.mrb[104].mxu1 %vm240_vm4, %v13748_v41 }
0x1017   :  { %12081 = vmatpush3.bf16.msra.mxu1 %v12845_v4  ;;  %11429 = vmatprep.mubr.msk.f32.mxu1 %vm12525_vm0, %v12526_v1 }
0x1018   :  { %12082 = vmatprep.subr.bf16.mxu1 %v12524_v0 }
0x101b   :  { %12084 = vmatpush3.bf16.msra.mxu1 %v12853_v7 }
0x101c   :  { %12091 = vmatprep.subr.bf16.mxu1 %v12524_v0 }
0x10c9   :  { %v6455_v52 = vpop.f32.mrb[92].mxu1 }
0x10ca   :  { %v6456_v12 = vadd.f32 %v6455_v52, %v13693_v59  ;;  %v11323_v48 = vpop.f32.mrb[93].mxu1 }
0x10cc   :  { %v6532_v30 = vadd.f32 %v13695_v16, %v6456_v12 }
0x10cd   :  { %v6606_v34 = vpop.f32.mrb[94].mxu1 }
0x10ce   :  { %v6533_v20 = vadd.f32 %v6532_v30, %v12870_v24  ;;  %v11339_v54 = vpop.f32.mrb[95].mxu1 }
0x10d0   :  { %v10040_v51 = vmul.f32 -1.442695, %v6533_v20 }
0x10d1   :  { %v6676_v33 = vpop.f32.mrb[96].mxu1 }
0x10d2   :  { %12336 = vpow2.f32 %v10040_v51  ;;  %v6677_v43 = vadd.f32 %v6676_v33, %v6606_v34  ;;  %v11344_v37 = vpop.f32.mrb[97].mxu1 }
0x10d4   :  { %v6750_v28 = vadd.f32 %v13699_v19, %v6677_v43  ;;  %v6966_v19 = vadd.f32 %v13443_v47, %v13701_v2  ;;  %v13806_v47 = vld [vmem:[%s14178_s5] sm:$0xff] }
0x10d5   :  { %v6824_v10 = vpop.f32.mrb[98].mxu1 }
0x10d6   :  { %v6751_v11 = vadd.f32 %v6750_v28, %v12881_v44  ;;  %v11360_v36 = vpop.f32.mrb[99].mxu1 }
0x10d8   :  { %v10045_v55 = vmul.f32 -1.442695, %v6751_v11 }
0x10d9   :  { %v6894_v59 = vpop.f32.mrb[100].mxu1 }
0x10da   :  { %12338 = vpow2.f32 %v10045_v55  ;;  %v6895_v39 = vadd.f32 %v6894_v59, %v6824_v10  ;;  %v11365_v16 = vpop.f32.mrb[101].mxu1 }
0x10dc   :  { %v12337_v22 = vpop.eup %12336  ;;  %v6898_v35 = vadd.f32 %v13452_v57, %v6895_v39  ;;  %v13811_v57 = vld [vmem:[#allocation4 + $0x30] sm:$0xff] }
0x10dd   :  { %v6537_v63 = vadd.f32 1.0, %v12337_v22 }
0x10df   :  { %12340 = vrcp.f32 %v6537_v63 }
0x10e1   :  { %v13771_v40 = vpop.f32.mrb[102].mxu1 }
0x10e2   :  { %v11387_v23 = vpop.f32.mrb[103].mxu1 }
0x10e4   :  { %v12339_v13 = vpop.eup %12338 }
0x10e5   :  { %v6755_v17 = vadd.f32 1.0, %v12339_v13 }
0x10e7   :  { %12342 = vrcp.f32 %v6755_v17 }
0x10e9   :  { %v12341_v15 = vpop.eup %12340  ;;  %v13775_v32 = vpop.f32.mrb[104].mxu1 }
0x10ea   :  { %v6969_v8 = vmul.f32 %v12341_v15, %v6966_v19  ;;  %v11409_v52 = vpop.f32.mrb[105].mxu1 }
0x10ec   :  { %v6970_v12 = vadd.f32 %v6969_v8, %v6898_v35 }
0x10ee   :  { %12344 = vtanh.f32 %v6970_v12 }
0x10f1   :  { %v12343_v48 = vpop.eup %12342 }
0x10f2   :  { %v6972_v30 = vsub.f32 1.0, %v12343_v48  ;;  %v6974_v54 = vmul.f32 %v12343_v48, %v13663_v60 }
0x10f8   :  { %v12345_v34 = vpop.eup %12344 }
0x10f9   :  { %v6973_v20 = vmul.f32 %v12345_v34, %v6972_v30 }
0x10fb   :  { %v6975_v51 = vadd.f32 %v6974_v54, %v6973_v20 }
0x10fd   :  { %6976 = vst.msk [vmem:[#allocation2] sm:$0xff] %vm240_vm4, %v6975_v51  ;;  %11397 = vmatmul.mubr.msk.f32.vlgmr.msra.gmra.mrb[78].mxu0 %vm240_vm4, %v6975_v51  ;;  %11430 = vmatmul.mubr.msk.f32.vlgmr.msra.gmra.mrb[106].mxu1 %vm240_vm4, %v6975_v51 }
0x10fe   :  { %12075 = vmatpush3.bf16.msra.mxu0 %v12899_v26  ;;  %11418 = vmatprep.mubr.msk.f32.mxu0 %vm12525_vm0, %v12526_v1 }
0x10ff   :  { %12076 = vmatprep.subr.bf16.mxu0 %v12524_v0  ;;  %12093 = vmatpush3.bf16.msra.mxu1 %v12973_v56 }
0x1100   :  { %12094 = vmatprep.subr.bf16.mxu1 %v12524_v0  ;;  %11451 = vmatprep.mubr.msk.f32.mxu1 %vm12525_vm0, %v12526_v1 }
0x1102   :  { %12078 = vmatpush3.bf16.msra.mxu0 %v12905_v31 }
0x1103   :  { %12085 = vmatprep.subr.bf16.mxu0 %v12524_v0  ;;  %12096 = vmatpush3.bf16.msra.mxu1 %v12983_v62 }
0x1104   :  { %11459 = vmatprep.subr.mxu1 %v12526_v1  ;;  %v13822_v60 = vld [vmem:[#allocation2] sm:$0xff] }
0x1105   :  { %11419 = vmatmul.mubr.msk.f32.vlgmr.msra.gmra.mrb[80].mxu0 %vm240_vm4, %v6975_v51 }
0x1106   :  { %12087 = vmatpush3.bf16.msra.mxu0 %v12913_v38  ;;  %11440 = vmatprep.mubr.msk.f32.mxu0 %vm12525_vm0, %v12526_v1 }
0x1107   :  { %12088 = vmatprep.subr.bf16.mxu0 %v12524_v0 }
0x110a   :  { %12090 = vmatpush3.bf16.msra.mxu0 %v12918_v42 }
0x110b   :  { %11454 = vmatprep.subr.mxu0 %v12526_v1 }
0x110d   :  { %11441 = vmatmul.mubr.msk.f32.vlgmr.msra.gmra.mrb[82].mxu0 %vm240_vm4, %v13748_v41 }
0x110e   :  { %11455 = vmatpush3.msra.mxu0 %v13806_v47  ;;  %11456 = vmatprep.mubr.msk.f32.mxu0 %vm12525_vm0, %v12526_v1 }
0x110f   :  { %12097 = vmatprep.subr.bf16.mxu0 %v12524_v0 }
0x1111   :  { %11457 = vmatmul.mubr.msk.f32.vlgmr.msra.gmra.mrb[84].mxu0 %vm332_vm2, %v13811_v57 }
0x1112   :  { %12099 = vmatpush3.bf16.msra.mxu0 %v12704_v9  ;;  %11472 = vmatprep.mubr.msk.f32.mxu0 %vm12525_vm0, %v12526_v1 }
0x1113   :  { %12100 = vmatprep.subr.bf16.mxu0 %v12524_v0 }
0x1116   :  { %12102 = vmatpush3.bf16.msra.mxu0 %v12717_v14 }
0x1117   :  { %12103 = vmatprep.subr.bf16.mxu0 %v12524_v0 }
0x1119   :  { %11473 = vmatmul.mubr.msk.f32.vlgmr.msra.gmra.mrb[86].mxu0 %vm240_vm4, %v13822_v60 }
0x111a   :  { %12105 = vmatpush3.bf16.msra.mxu0 %v12734_v18  ;;  %11493 = vmatprep.mubr.msk.f32.mxu0 %vm12525_vm0, %v12526_v1 }
0x111b   :  { %12106 = vmatprep.subr.bf16.mxu0 %v12524_v0 }
0x111e   :  { %12108 = vmatpush3.bf16.msra.mxu0 %v12742_v21 }
0x111f   :  { %12109 = vmatprep.subr.bf16.mxu0 %v12524_v0 }
0x1121   :  { %11494 = vmatmul.mubr.msk.f32.vlgmr.msra.gmra.mrb[88].mxu0 %vm240_vm4, %v13822_v60 }
0x1122   :  { %12111 = vmatpush3.bf16.msra.mxu0 %v12750_v25  ;;  %11514 = vmatprep.mubr.msk.f32.mxu0 %vm12525_vm0, %v12526_v1 }
0x1123   :  { %12112 = vmatprep.subr.bf16.mxu0 %v12524_v0 }
0x1126   :  { %12114 = vmatpush3.bf16.msra.mxu0 %v12753_v27 }
0x1127   :  { %12121 = vmatprep.subr.bf16.mxu0 %v12524_v0 }
0x1129   :  { %11515 = vmatmul.mubr.msk.f32.vlgmr.msra.gmra.mrb[90].mxu0 %vm240_vm4, %v13822_v60 }
0x112a   :  { %12123 = vmatpush3.bf16.msra.mxu0 %v12839_v61  ;;  %11536 = vmatprep.mubr.msk.f32.mxu0 %vm12525_vm0, %v12526_v1 }
0x112b   :  { %12124 = vmatprep.subr.bf16.mxu0 %v12524_v0 }
0x112e   :  { %12126 = vmatpush3.bf16.msra.mxu0 %v12842_v3 }
0x112f   :  { %12133 = vmatprep.subr.bf16.mxu0 %v12524_v0 }
0x11d0   :  { %v7120_v2 = vpop.f32.mrb[78].mxu0  ;;  %v7344_v33 = vpop.f32.mrb[106].mxu1 }
0x11d1   :  { %v7121_v43 = vadd.f32 %v7120_v2, %v13771_v40  ;;  %v11398_v37 = vpop.f32.mrb[79].mxu0  ;;  %v11431_v28 = vpop.f32.mrb[107].mxu1  ;;  %v7345_v12 = vadd.f32 %v13537_v46, %v7344_v33  ;;  %v13868_v46 = vld [vmem:[%s14177_s4] sm:$0xf] }
0x11d3   :  { %v7124_v10 = vadd.f32 %v7121_v43, %v12994_v6 }
0x11d5   :  { %v10052_v11 = vmul.f32 -1.442695, %v7124_v10 }
0x11d7   :  { %12346 = vpow2.f32 %v10052_v11 }
0x11d8   :  { %v7267_v36 = vpop.f32.mrb[80].mxu0 }
0x11d9   :  { %v7268_v55 = vadd.f32 %v7267_v36, %v13775_v32  ;;  %v11420_v59 = vpop.f32.mrb[81].mxu0 }
0x11da   :  { %v13885_v59 = vld [vmem:[%s14178_s5 + $0x8] sm:$0xff] }
0x11db   :  { %v7271_v39 = vadd.f32 %v7268_v55, %v13004_v29 }
0x11dd   :  { %v10055_v16 = vmul.f32 -1.442695, %v7271_v39  ;;  %v13907_v39 = vld [vmem:[%s14178_s5 + $0x10] sm:$0xff] }
0x11df   :  { %12348 = vpow2.f32 %v10055_v16  ;;  %v13918_v16 = vld [vmem:[%s14177_s4 + $0x8] sm:$0xf] }
0x11e0   :  { %v7414_v22 = vpop.f32.mrb[82].mxu0 }
0x11e1   :  { %v12347_v63 = vpop.eup %12346  ;;  %v11442_v23 = vpop.f32.mrb[83].mxu0  ;;  %v7415_v8 = vadd.f32 %v13531_v5, %v7414_v22 }
0x11e2   :  { %v7128_v13 = vadd.f32 1.0, %v12347_v63 }
0x11e4   :  { %12350 = vrcp.f32 %v7128_v13  ;;  %v13852_v40 = vpop.f32.mrb[84].mxu0 }
0x11e5   :  { %v11458_v17 = vpop.f32.mrb[85].mxu0 }
0x11e9   :  { %v12349_v19 = vpop.eup %12348 }
0x11ea   :  { %v7275_v15 = vadd.f32 1.0, %v12349_v19 }
0x11ec   :  { %v13854_v35 = vpop.f32.mrb[86].mxu0  ;;  %12352 = vrcp.f32 %v7275_v15 }
0x11ed   :  { %v11474_v32 = vpop.f32.mrb[87].mxu0 }
0x11ee   :  { %v12351_v52 = vpop.eup %12350 }
0x11ef   :  { %v7418_v48 = vmul.f32 %v12351_v52, %v7415_v8 }
0x11f1   :  { %v7419_v30 = vadd.f32 %v7418_v48, %v7345_v12 }
0x11f3   :  { %12354 = vtanh.f32 %v7419_v30 }
0x11f4   :  { %v13858_v34 = vpop.f32.mrb[88].mxu0 }
0x11f5   :  { %v11495_v20 = vpop.f32.mrb[89].mxu0 }
0x11f6   :  { %v12353_v54 = vpop.eup %12352 }
0x11f7   :  { %v7421_v2 = vsub.f32 1.0, %v12353_v54  ;;  %v7423_v5 = vmul.f32 %v12353_v54, %v13748_v41 }
0x11fc   :  { %v13860_v51 = vpop.f32.mrb[90].mxu0 }
0x11fd   :  { %v12355_v43 = vpop.eup %12354  ;;  %v11516_v37 = vpop.f32.mrb[91].mxu0 }
0x11fe   :  { %v7422_v28 = vmul.f32 %v12355_v43, %v7421_v2 }
0x1200   :  { %v7424_v10 = vadd.f32 %v7423_v5, %v7422_v28 }
0x1202   :  { %7425 = vst.msk [vmem:[#allocation2 + $0x8] sm:$0xff] %vm240_vm4, %v7424_v10  ;;  %11452 = vmatmul.mubr.msk.f32.vlgmr.msra.gmra.mrb[108].mxu1 %vm240_vm4, %v7424_v10 }
0x1203   :  { %11460 = vmatpush3.msk.msra.mxu1 %vm409_vm3, %v13868_v46  ;;  %11461 = vmatprep.mubr.msk.f32.mxu1 %vm12525_vm0, %v12526_v1 }
0x1204   :  { %11475 = vmatprep.subr.mxu1 %v12526_v1 }
0x12d5   :  { %v7495_v33 = vpop.f32.mrb[108].mxu1 }
0x12d6   :  { %v7496_v41 = vadd.f32 %v13555_v49, %v7495_v33  ;;  %v11453_v11 = vpop.f32.mrb[109].mxu1  ;;  %v13896_v49 = vld [vmem:[%s14177_s4 + $0x4] sm:$0xf] }
0x12d8   :  { %12356 = vtanh.f32 %v7496_v41 }
0x12e2   :  { %v12357_v36 = vpop.eup %12356 }
0x12e3   :  { %10059 = vst.msk [vmem:[%s14188_s15 + $0x28] sm:$0xff] %vm327_vm5, %v12357_v36  ;;  %7500 = vst.msk [vmem:[#allocation3] sm:$0xff] %vm327_vm5, %v12357_v36 }
0x12ea   :  { %v7503_v55 = vld [vmem:[#allocation3] sm:$0xff] }
0x12eb   :  { %11462 = vmatmul.mubr.msk.f32.vlgmr.msra.gmra.mrb[110].mxu1 %vm327_vm5, %v7503_v55 }
0x12ec   :  { %11476 = vmatpush3.msra.mxu1 %v13885_v59  ;;  %11477 = vmatprep.mubr.msk.f32.mxu1 %vm12525_vm0, %v12526_v1 }
0x12ed   :  { %11480 = vmatprep.subr.mxu1 %v12526_v1 }
0x12ef   :  { %11478 = vmatmul.mubr.msk.f32.vlgmr.msra.gmra.mrb[112].mxu1 %vm332_vm2, %v13811_v57 }
0x12f0   :  { %11481 = vmatpush3.msk.msra.mxu1 %vm409_vm3, %v13896_v49  ;;  %11482 = vmatprep.mubr.msk.f32.mxu1 %vm12525_vm0, %v12526_v1 }
0x12f1   :  { %11496 = vmatprep.subr.mxu1 %v12526_v1 }
0x12f3   :  { %11483 = vmatmul.mubr.msk.f32.vlgmr.msra.gmra.mrb[114].mxu1 %vm327_vm5, %v7503_v55 }
0x12f4   :  { %11497 = vmatpush3.msra.mxu1 %v13907_v39  ;;  %11498 = vmatprep.mubr.msk.f32.mxu1 %vm12525_vm0, %v12526_v1 }
0x12f5   :  { %11501 = vmatprep.subr.mxu1 %v12526_v1 }
0x12f7   :  { %11499 = vmatmul.mubr.msk.f32.vlgmr.msra.gmra.mrb[116].mxu1 %vm332_vm2, %v13811_v57  ;;  %v13932_v57 = vld [vmem:[#allocation2 + $0x8] sm:$0xff] }
0x12f8   :  { %11502 = vmatpush3.msk.msra.mxu1 %vm409_vm3, %v13918_v16  ;;  %11503 = vmatprep.mubr.msk.f32.mxu1 %vm12525_vm0, %v12526_v1 }
0x12f9   :  { %12115 = vmatprep.subr.bf16.mxu1 %v12524_v0 }
0x12fb   :  { %11504 = vmatmul.mubr.msk.f32.vlgmr.msra.gmra.mrb[118].mxu1 %vm327_vm5, %v7503_v55 }
0x12fc   :  { %12117 = vmatpush3.bf16.msra.mxu1 %v12817_v45  ;;  %11525 = vmatprep.mubr.msk.f32.mxu1 %vm12525_vm0, %v12526_v1 }
0x12fd   :  { %12118 = vmatprep.subr.bf16.mxu1 %v12524_v0 }
0x1300   :  { %12120 = vmatpush3.bf16.msra.mxu1 %v12823_v50 }
0x1301   :  { %12127 = vmatprep.subr.bf16.mxu1 %v12524_v0 }
0x1303   :  { %11526 = vmatmul.mubr.msk.f32.vlgmr.msra.gmra.mrb[120].mxu1 %vm240_vm4, %v13932_v57 }
0x1304   :  { %12129 = vmatpush3.bf16.msra.mxu1 %v12827_v53  ;;  %11547 = vmatprep.mubr.msk.f32.mxu1 %vm12525_vm0, %v12526_v1 }
0x1305   :  { %12130 = vmatprep.subr.bf16.mxu1 %v12524_v0 }
0x1308   :  { %12132 = vmatpush3.bf16.msra.mxu1 %v12834_v58 }
0x1309   :  { %12139 = vmatprep.subr.bf16.mxu1 %v12524_v0 }
0x130b   :  { %11548 = vmatmul.mubr.msk.f32.vlgmr.msra.gmra.mrb[122].mxu1 %vm240_vm4, %v13932_v57 }
0x130c   :  { %12141 = vmatpush3.bf16.msra.mxu1 %v12845_v4  ;;  %11569 = vmatprep.mubr.msk.f32.mxu1 %vm12525_vm0, %v12526_v1 }
0x130d   :  { %12142 = vmatprep.subr.bf16.mxu1 %v12524_v0 }
0x1310   :  { %12144 = vmatpush3.bf16.msra.mxu1 %v12853_v7 }
0x1311   :  { %12151 = vmatprep.subr.bf16.mxu1 %v12524_v0 }
0x13be   :  { %v7649_v22 = vpop.f32.mrb[110].mxu1 }
0x13bf   :  { %v7650_v63 = vadd.f32 %v7649_v22, %v13852_v40  ;;  %v11463_v23 = vpop.f32.mrb[111].mxu1  ;;  %v13969_v22 = vld [vmem:[%s14180_s7 + $0x2] ss:$0 sm:$0xff] }
0x13c1   :  { %v7726_v13 = vadd.f32 %v13854_v35, %v7650_v63 }
0x13c2   :  { %v7800_v17 = vpop.f32.mrb[112].mxu1 }
0x13c3   :  { %v7727_v19 = vadd.f32 %v7726_v13, %v12870_v24  ;;  %v11479_v15 = vpop.f32.mrb[113].mxu1 }
0x13c5   :  { %v10064_v8 = vmul.f32 -1.442695, %v7727_v19 }
0x13c6   :  { %v7870_v32 = vpop.f32.mrb[114].mxu1 }
0x13c7   :  { %12358 = vpow2.f32 %v10064_v8  ;;  %v7871_v52 = vadd.f32 %v7870_v32, %v7800_v17  ;;  %v11484_v12 = vpop.f32.mrb[115].mxu1 }
0x13c9   :  { %v7944_v48 = vadd.f32 %v13858_v34, %v7871_v52  ;;  %v13960_v34 = vld [vmem:[%s14181_s8 + $0x2] ss:$0 sm:$0xff] }
0x13ca   :  { %v8018_v30 = vpop.f32.mrb[116].mxu1  ;;  %v8160_v11 = vadd.f32 %v13960_v34, %v13860_v51 }
0x13cb   :  { %v7945_v20 = vadd.f32 %v7944_v48, %v12881_v44  ;;  %v11500_v54 = vpop.f32.mrb[117].mxu1 }
0x13cd   :  { %v10069_v2 = vmul.f32 -1.442695, %v7945_v20 }
0x13ce   :  { %v8088_v40 = vpop.f32.mrb[118].mxu1 }
0x13cf   :  { %12360 = vpow2.f32 %v10069_v2  ;;  %v8089_v43 = vadd.f32 %v8088_v40, %v8018_v30  ;;  %v11505_v35 = vpop.f32.mrb[119].mxu1 }
0x13d1   :  { %v12359_v37 = vpop.eup %12358  ;;  %v8092_v63 = vadd.f32 %v13969_v22, %v8089_v43 }
0x13d2   :  { %v7731_v28 = vadd.f32 1.0, %v12359_v37 }
0x13d4   :  { %12362 = vrcp.f32 %v7731_v28 }
0x13d6   :  { %v13955_v5 = vpop.f32.mrb[120].mxu1 }
0x13d7   :  { %v11527_v10 = vpop.f32.mrb[121].mxu1 }
0x13d9   :  { %v12361_v33 = vpop.eup %12360 }
0x13da   :  { %v7949_v41 = vadd.f32 1.0, %v12361_v33  ;;  %v14048_v33 = vld [vmem:[%s14185_s12 + $0x2] ss:$0 sm:$0xff] }
0x13dc   :  { %12364 = vrcp.f32 %v7949_v41 }
0x13de   :  { %v12363_v36 = vpop.eup %12362  ;;  %v13964_v55 = vpop.f32.mrb[122].mxu1 }
0x13df   :  { %v8163_v23 = vmul.f32 %v12363_v36, %v8160_v11  ;;  %v11549_v13 = vpop.f32.mrb[123].mxu1 }
0x13e1   :  { %v8164_v17 = vadd.f32 %v8163_v23, %v8092_v63 }
0x13e3   :  { %12366 = vtanh.f32 %v8164_v17 }
0x13e6   :  { %v12365_v19 = vpop.eup %12364 }
0x13e7   :  { %v8166_v15 = vsub.f32 1.0, %v12365_v19  ;;  %v8168_v51 = vmul.f32 %v12365_v19, %v13822_v60  ;;  %v14000_v60 = vld [vmem:[#allocation4 + $0x38] sm:$0xff] }
0x13ed   :  { %v12367_v8 = vpop.eup %12366 }
0x13ee   :  { %v8167_v32 = vmul.f32 %v12367_v8, %v8166_v15 }
0x13f0   :  { %v8169_v52 = vadd.f32 %v8168_v51, %v8167_v32 }
0x13f2   :  { %8170 = vst.msk [vmem:[#allocation2] sm:$0xff] %vm240_vm4, %v8169_v52  ;;  %11537 = vmatmul.mubr.msk.f32.vlgmr.msra.gmra.mrb[92].mxu0 %vm240_vm4, %v8169_v52  ;;  %11570 = vmatmul.mubr.msk.f32.vlgmr.msra.gmra.mrb[124].mxu1 %vm240_vm4, %v8169_v52 }
0x13f3   :  { %12135 = vmatpush3.bf16.msra.mxu0 %v12899_v26  ;;  %11558 = vmatprep.mubr.msk.f32.mxu0 %vm12525_vm0, %v12526_v1 }
0x13f4   :  { %12136 = vmatprep.subr.bf16.mxu0 %v12524_v0  ;;  %12153 = vmatpush3.bf16.msra.mxu1 %v12973_v56 }
0x13f5   :  { %12154 = vmatprep.subr.bf16.mxu1 %v12524_v0  ;;  %11591 = vmatprep.mubr.msk.f32.mxu1 %vm12525_vm0, %v12526_v1 }
0x13f7   :  { %12138 = vmatpush3.bf16.msra.mxu0 %v12905_v31 }
0x13f8   :  { %12145 = vmatprep.subr.bf16.mxu0 %v12524_v0  ;;  %12156 = vmatpush3.bf16.msra.mxu1 %v12983_v62 }
0x13f9   :  { %11599 = vmatprep.subr.mxu1 %v12526_v1 }
0x13fa   :  { %11559 = vmatmul.mubr.msk.f32.vlgmr.msra.gmra.mrb[94].mxu0 %vm240_vm4, %v8169_v52 }
0x13fb   :  { %12147 = vmatpush3.bf16.msra.mxu0 %v12913_v38  ;;  %11580 = vmatprep.mubr.msk.f32.mxu0 %vm12525_vm0, %v12526_v1 }
0x13fc   :  { %12148 = vmatprep.subr.bf16.mxu0 %v12524_v0 }
0x13ff   :  { %12150 = vmatpush3.bf16.msra.mxu0 %v12918_v42 }
0x1400   :  { %11594 = vmatprep.subr.mxu0 %v12526_v1 }
0x1402   :  { %11581 = vmatmul.mubr.msk.f32.vlgmr.msra.gmra.mrb[96].mxu0 %vm240_vm4, %v13932_v57 }
0x1403   :  { %11595 = vmatpush3.msra.mxu0 %v13806_v47  ;;  %11596 = vmatprep.mubr.msk.f32.mxu0 %vm12525_vm0, %v12526_v1  ;;  %v14011_v47 = vld [vmem:[#allocation2] sm:$0xff] }
0x1404   :  { %12157 = vmatprep.subr.bf16.mxu0 %v12524_v0 }
0x1406   :  { %11597 = vmatmul.mubr.msk.f32.vlgmr.msra.gmra.mrb[98].mxu0 %vm332_vm2, %v14000_v60 }
0x1407   :  { %12159 = vmatpush3.bf16.msra.mxu0 %v12704_v9  ;;  %11612 = vmatprep.mubr.msk.f32.mxu0 %vm12525_vm0, %v12526_v1 }
0x1408   :  { %12160 = vmatprep.subr.bf16.mxu0 %v12524_v0 }
0x140b   :  { %12162 = vmatpush3.bf16.msra.mxu0 %v12717_v14 }
0x140c   :  { %12163 = vmatprep.subr.bf16.mxu0 %v12524_v0 }
0x140e   :  { %11613 = vmatmul.mubr.msk.f32.vlgmr.msra.gmra.mrb[100].mxu0 %vm240_vm4, %v14011_v47 }
0x140f   :  { %12165 = vmatpush3.bf16.msra.mxu0 %v12734_v18  ;;  %11633 = vmatprep.mubr.msk.f32.mxu0 %vm12525_vm0, %v12526_v1 }
0x1410   :  { %12166 = vmatprep.subr.bf16.mxu0 %v12524_v0 }
0x1413   :  { %12168 = vmatpush3.bf16.msra.mxu0 %v12742_v21 }
0x1414   :  { %12169 = vmatprep.subr.bf16.mxu0 %v12524_v0 }
0x1416   :  { %11634 = vmatmul.mubr.msk.f32.vlgmr.msra.gmra.mrb[102].mxu0 %vm240_vm4, %v14011_v47 }
0x1417   :  { %12171 = vmatpush3.bf16.msra.mxu0 %v12750_v25  ;;  %11654 = vmatprep.mubr.msk.f32.mxu0 %vm12525_vm0, %v12526_v1 }
0x1418   :  { %12172 = vmatprep.subr.bf16.mxu0 %v12524_v0 }
0x141b   :  { %12174 = vmatpush3.bf16.msra.mxu0 %v12753_v27 }
0x141c   :  { %12181 = vmatprep.subr.bf16.mxu0 %v12524_v0 }
0x141e   :  { %11655 = vmatmul.mubr.msk.f32.vlgmr.msra.gmra.mrb[104].mxu0 %vm240_vm4, %v14011_v47 }
0x141f   :  { %12183 = vmatpush3.bf16.msra.mxu0 %v12839_v61  ;;  %11676 = vmatprep.mubr.msk.f32.mxu0 %vm12525_vm0, %v12526_v1 }
0x1420   :  { %12184 = vmatprep.subr.bf16.mxu0 %v12524_v0 }
0x1423   :  { %12186 = vmatpush3.bf16.msra.mxu0 %v12842_v3 }
0x1424   :  { %12193 = vmatprep.subr.bf16.mxu0 %v12524_v0 }
0x14c5   :  { %v8314_v9 = vpop.f32.mrb[92].mxu0  ;;  %v8538_v14 = vpop.f32.mrb[124].mxu1 }
0x14c6   :  { %v8315_v18 = vadd.f32 %v8314_v9, %v13955_v5  ;;  %v11538_v21 = vpop.f32.mrb[93].mxu0  ;;  %v11571_v25 = vpop.f32.mrb[125].mxu1 }
0x14c7   :  { %v14072_v25 = vld [vmem:[%s14187_s14] ss:$0 sm:$0xff] }
0x14c8   :  { %v8318_v27 = vadd.f32 %v8315_v18, %v12994_v6 }
0x14ca   :  { %v10076_v12 = vmul.f32 -1.442695, %v8318_v27 }
0x14cc   :  { %12368 = vpow2.f32 %v10076_v12 }
0x14cd   :  { %v8461_v61 = vpop.f32.mrb[94].mxu0 }
0x14ce   :  { %v8462_v48 = vadd.f32 %v8461_v61, %v13964_v55  ;;  %v11560_v30 = vpop.f32.mrb[95].mxu0  ;;  %v14054_v55 = vld [vmem:[%s14184_s11 + $0x2] ss:$0 sm:$0xff] }
0x14cf   :  { %v8539_v63 = vadd.f32 %v14054_v55, %v8538_v14 }
0x14d0   :  { %v8465_v20 = vadd.f32 %v8462_v48, %v13004_v29 }
0x14d2   :  { %v10079_v54 = vmul.f32 -1.442695, %v8465_v20 }
0x14d4   :  { %12370 = vpow2.f32 %v10079_v54 }
0x14d5   :  { %v8608_v3 = vpop.f32.mrb[96].mxu0 }
0x14d6   :  { %v12369_v2 = vpop.eup %12368  ;;  %v11582_v40 = vpop.f32.mrb[97].mxu0  ;;  %v8609_v41 = vadd.f32 %v14048_v33, %v8608_v3 }
0x14d7   :  { %v8322_v43 = vadd.f32 1.0, %v12369_v2 }
0x14d9   :  { %12372 = vrcp.f32 %v8322_v43  ;;  %v14041_v35 = vpop.f32.mrb[98].mxu0 }
0x14da   :  { %v11598_v37 = vpop.f32.mrb[99].mxu0 }
0x14de   :  { %v12371_v28 = vpop.eup %12370 }
0x14df   :  { %v8469_v5 = vadd.f32 1.0, %v12371_v28 }
0x14e1   :  { %v14043_v10 = vpop.f32.mrb[100].mxu0  ;;  %12374 = vrcp.f32 %v8469_v5 }
0x14e2   :  { %v11614_v11 = vpop.f32.mrb[101].mxu0 }
0x14e3   :  { %v12373_v36 = vpop.eup %12372 }
0x14e4   :  { %v8612_v23 = vmul.f32 %v12373_v36, %v8609_v41 }
0x14e6   :  { %v8613_v13 = vadd.f32 %v8612_v23, %v8539_v63 }
0x14e8   :  { %12376 = vtanh.f32 %v8613_v13 }
0x14e9   :  { %v14057_v17 = vpop.f32.mrb[102].mxu0 }
0x14ea   :  { %v11635_v19 = vpop.f32.mrb[103].mxu0 }
0x14eb   :  { %v12375_v15 = vpop.eup %12374 }
0x14ec   :  { %v8615_v32 = vsub.f32 1.0, %v12375_v15  ;;  %v8617_v18 = vmul.f32 %v12375_v15, %v13932_v57 }
0x14f1   :  { %v14059_v8 = vpop.f32.mrb[104].mxu0 }
0x14f2   :  { %v12377_v51 = vpop.eup %12376  ;;  %v11656_v52 = vpop.f32.mrb[105].mxu0  ;;  %v9354_v41 = vadd.f32 %v13960_v34, %v14059_v8 }
0x14f3   :  { %v8616_v9 = vmul.f32 %v12377_v51, %v8615_v32 }
0x14f5   :  { %v8618_v21 = vadd.f32 %v8617_v18, %v8616_v9 }
0x14f7   :  { %8619 = vst.msk [vmem:[#allocation2 + $0x8] sm:$0xff] %vm240_vm4, %v8618_v21  ;;  %11592 = vmatmul.mubr.msk.f32.vlgmr.msra.gmra.mrb[126].mxu1 %vm240_vm4, %v8618_v21 }
0x14f8   :  { %11600 = vmatpush3.msk.msra.mxu1 %vm409_vm3, %v13868_v46  ;;  %11601 = vmatprep.mubr.msk.f32.mxu1 %vm12525_vm0, %v12526_v1 }
0x14f9   :  { %11615 = vmatprep.subr.mxu1 %v12526_v1 }
0x15ca   :  { %v8689_v14 = vpop.f32.mrb[126].mxu1 }
0x15cb   :  { %v8690_v57 = vadd.f32 %v14072_v25, %v8689_v14  ;;  %v11593_v27 = vpop.f32.mrb[127].mxu1 }
0x15cd   :  { %12378 = vtanh.f32 %v8690_v57 }
0x15d7   :  { %v12379_v12 = vpop.eup %12378 }
0x15d8   :  { %10083 = vst.msk [vmem:[%s14188_s15 + $0x30] sm:$0xff] %vm327_vm5, %v12379_v12  ;;  %8694 = vst.msk [vmem:[#allocation3] sm:$0xff] %vm327_vm5, %v12379_v12 }
0x15df   :  { %v8697_v46 = vld [vmem:[#allocation3] sm:$0xff] }
0x15e0   :  { %11602 = vmatmul.mubr.msk.f32.vlgmr.msra.gmra.mrb[128].mxu1 %vm327_vm5, %v8697_v46 }
0x15e1   :  { %11616 = vmatpush3.msra.mxu1 %v13885_v59  ;;  %11617 = vmatprep.mubr.msk.f32.mxu1 %vm12525_vm0, %v12526_v1  ;;  %v14111_v59 = vld [vmem:[#allocation2 + $0x8] sm:$0xff] }
0x15e2   :  { %11620 = vmatprep.subr.mxu1 %v12526_v1 }
0x15e4   :  { %11618 = vmatmul.mubr.msk.f32.vlgmr.msra.gmra.mrb[130].mxu1 %vm332_vm2, %v14000_v60 }
0x15e5   :  { %11621 = vmatpush3.msk.msra.mxu1 %vm409_vm3, %v13896_v49  ;;  %11622 = vmatprep.mubr.msk.f32.mxu1 %vm12525_vm0, %v12526_v1 }
0x15e6   :  { %11636 = vmatprep.subr.mxu1 %v12526_v1 }
0x15e8   :  { %11623 = vmatmul.mubr.msk.f32.vlgmr.msra.gmra.mrb[132].mxu1 %vm327_vm5, %v8697_v46 }
0x15e9   :  { %11637 = vmatpush3.msra.mxu1 %v13907_v39  ;;  %11638 = vmatprep.mubr.msk.f32.mxu1 %vm12525_vm0, %v12526_v1 }
0x15ea   :  { %11641 = vmatprep.subr.mxu1 %v12526_v1 }
0x15ec   :  { %11639 = vmatmul.mubr.msk.f32.vlgmr.msra.gmra.mrb[134].mxu1 %vm332_vm2, %v14000_v60 }
0x15ed   :  { %11642 = vmatpush3.msk.msra.mxu1 %vm409_vm3, %v13918_v16  ;;  %11643 = vmatprep.mubr.msk.f32.mxu1 %vm12525_vm0, %v12526_v1 }
0x15ee   :  { %12175 = vmatprep.subr.bf16.mxu1 %v12524_v0 }
0x15f0   :  { %11644 = vmatmul.mubr.msk.f32.vlgmr.msra.gmra.mrb[136].mxu1 %vm327_vm5, %v8697_v46 }
0x15f1   :  { %12177 = vmatpush3.bf16.msra.mxu1 %v12817_v45  ;;  %11665 = vmatprep.mubr.msk.f32.mxu1 %vm12525_vm0, %v12526_v1 }
0x15f2   :  { %12178 = vmatprep.subr.bf16.mxu1 %v12524_v0 }
0x15f5   :  { %12180 = vmatpush3.bf16.msra.mxu1 %v12823_v50 }
0x15f6   :  { %12187 = vmatprep.subr.bf16.mxu1 %v12524_v0 }
0x15f8   :  { %11666 = vmatmul.mubr.msk.f32.vlgmr.msra.gmra.mrb[138].mxu1 %vm240_vm4, %v14111_v59 }
0x15f9   :  { %12189 = vmatpush3.bf16.msra.mxu1 %v12827_v53  ;;  %11687 = vmatprep.mubr.msk.f32.mxu1 %vm12525_vm0, %v12526_v1 }
0x15fa   :  { %12190 = vmatprep.subr.bf16.mxu1 %v12524_v0 }
0x15fd   :  { %12192 = vmatpush3.bf16.msra.mxu1 %v12834_v58 }
0x15fe   :  { %12199 = vmatprep.subr.bf16.mxu1 %v12524_v0 }
0x1600   :  { %11688 = vmatmul.mubr.msk.f32.vlgmr.msra.gmra.mrb[140].mxu1 %vm240_vm4, %v14111_v59 }
0x1601   :  { %12201 = vmatpush3.bf16.msra.mxu1 %v12845_v4  ;;  %11709 = vmatprep.mubr.msk.f32.mxu1 %vm12525_vm0, %v12526_v1 }
0x1602   :  { %12202 = vmatprep.subr.bf16.mxu1 %v12524_v0 }
0x1605   :  { %12204 = vmatpush3.bf16.msra.mxu1 %v12853_v7 }
0x1606   :  { %12211 = vmatprep.subr.bf16.mxu1 %v12524_v0 }
0x16b3   :  { %v8843_v45 = vpop.f32.mrb[128].mxu1 }
0x16b4   :  { %v8844_v50 = vadd.f32 %v8843_v45, %v14041_v35  ;;  %v11603_v53 = vpop.f32.mrb[129].mxu1 }
0x16b6   :  { %v8920_v58 = vadd.f32 %v14043_v10, %v8844_v50 }
0x16b7   :  { %v8994_v49 = vpop.f32.mrb[130].mxu1 }
0x16b8   :  { %v8921_v39 = vadd.f32 %v8920_v58, %v12870_v24  ;;  %v11619_v16 = vpop.f32.mrb[131].mxu1 }
0x16ba   :  { %v10088_v4 = vmul.f32 -1.442695, %v8921_v39 }
0x16bb   :  { %v9064_v60 = vpop.f32.mrb[132].mxu1 }
0x16bc   :  { %12380 = vpow2.f32 %v10088_v4  ;;  %v9065_v61 = vadd.f32 %v9064_v60, %v8994_v49  ;;  %v11624_v48 = vpop.f32.mrb[133].mxu1 }
0x16be   :  { %v9138_v30 = vadd.f32 %v14057_v17, %v9065_v61 }
0x16bf   :  { %v9212_v7 = vpop.f32.mrb[134].mxu1 }
0x16c0   :  { %v9139_v20 = vadd.f32 %v9138_v30, %v12881_v44  ;;  %v11640_v54 = vpop.f32.mrb[135].mxu1 }
0x16c2   :  { %v10093_v3 = vmul.f32 -1.442695, %v9139_v20 }
0x16c3   :  { %v9282_v2 = vpop.f32.mrb[136].mxu1 }
0x16c4   :  { %12382 = vpow2.f32 %v10093_v3  ;;  %v9283_v40 = vadd.f32 %v9282_v2, %v9212_v7  ;;  %v11645_v43 = vpop.f32.mrb[137].mxu1 }
0x16c6   :  { %v12381_v35 = vpop.eup %12380  ;;  %v9286_v44 = vadd.f32 %v13969_v22, %v9283_v40 }
0x16c7   :  { %v8925_v37 = vadd.f32 1.0, %v12381_v35 }
0x16c9   :  { %12384 = vrcp.f32 %v8925_v37 }
0x16cb   :  { %v9435_v24 = vpop.f32.mrb[138].mxu1 }
0x16cc   :  { %v11667_v28 = vpop.f32.mrb[139].mxu1 }
0x16ce   :  { %v12383_v5 = vpop.eup %12382 }
0x16cf   :  { %v9143_v10 = vadd.f32 1.0, %v12383_v5 }
0x16d1   :  { %12386 = vrcp.f32 %v9143_v10 }
0x16d3   :  { %v12385_v11 = vpop.eup %12384  ;;  %v9585_v36 = vpop.f32.mrb[140].mxu1 }
0x16d4   :  { %v9357_v63 = vmul.f32 %v12385_v11, %v9354_v41  ;;  %v11689_v23 = vpop.f32.mrb[141].mxu1 }
0x16d6   :  { %v9358_v13 = vadd.f32 %v9357_v63, %v9286_v44 }
0x16d8   :  { %12388 = vtanh.f32 %v9358_v13 }
0x16db   :  { %v12387_v17 = vpop.eup %12386 }
0x16dc   :  { %v9360_v19 = vsub.f32 1.0, %v12387_v17  ;;  %v9362_v51 = vmul.f32 %v12387_v17, %v14011_v47 }
0x16e2   :  { %v12389_v15 = vpop.eup %12388 }
0x16e3   :  { %v9361_v32 = vmul.f32 %v12389_v15, %v9360_v19 }
0x16e5   :  { %v9363_v52 = vadd.f32 %v9362_v51, %v9361_v32 }
0x16e7   :  { %9364 = vst.msk [vmem:[#allocation2] sm:$0xff] %vm240_vm4, %v9363_v52  ;;  %11677 = vmatmul.mubr.msk.f32.vlgmr.msra.gmra.mrb[106].mxu0 %vm240_vm4, %v9363_v52  ;;  %11710 = vmatmul.mubr.msk.f32.vlgmr.msra.gmra.mrb[142].mxu1 %vm240_vm4, %v9363_v52 }
0x16e8   :  { %12195 = vmatpush3.bf16.msra.mxu0 %v12899_v26  ;;  %11698 = vmatprep.mubr.msk.f32.mxu0 %vm12525_vm0, %v12526_v1 }
0x16e9   :  { %12196 = vmatprep.subr.bf16.mxu0 %v12524_v0  ;;  %12213 = vmatpush3.bf16.msra.mxu1 %v12973_v56 }
0x16ea   :  { %12214 = vmatprep.subr.bf16.mxu1 %v12524_v0  ;;  %11731 = vmatprep.mubr.msk.f32.mxu1 %vm12525_vm0, %v12526_v1 }
0x16ec   :  { %12198 = vmatpush3.bf16.msra.mxu0 %v12905_v31 }
0x16ed   :  { %12205 = vmatprep.subr.bf16.mxu0 %v12524_v0  ;;  %12216 = vmatpush3.bf16.msra.mxu1 %v12983_v62 }
0x16ef   :  { %11699 = vmatmul.mubr.msk.f32.vlgmr.msra.gmra.mrb[108].mxu0 %vm240_vm4, %v9363_v52 }
0x16f0   :  { %12207 = vmatpush3.bf16.msra.mxu0 %v12913_v38  ;;  %11720 = vmatprep.mubr.msk.f32.mxu0 %vm12525_vm0, %v12526_v1 }
0x16f1   :  { %12208 = vmatprep.subr.bf16.mxu0 %v12524_v0 }
0x16f4   :  { %12210 = vmatpush3.bf16.msra.mxu0 %v12918_v42 }
0x16f7   :  { %11721 = vmatmul.mubr.msk.f32.vlgmr.msra.gmra.mrb[110].mxu0 %vm240_vm4, %v14111_v59 }
0x17ba   :  { %v9508_v26 = vpop.f32.mrb[106].mxu0  ;;  %v9732_v31 = vpop.f32.mrb[142].mxu1 }
0x17bb   :  { %v9509_v56 = vadd.f32 %v9508_v26, %v9435_v24  ;;  %v11678_v34 = vpop.f32.mrb[107].mxu0  ;;  %v11711_v22 = vpop.f32.mrb[143].mxu1 }
0x17bd   :  { %v9512_v62 = vadd.f32 %v9509_v56, %v12994_v6  ;;  %v9733_v6 = vadd.f32 %v14054_v55, %v9732_v31 }
0x17bf   :  { %v10100_v47 = vmul.f32 -1.442695, %v9512_v62 }
0x17c1   :  { %12390 = vpow2.f32 %v10100_v47 }
0x17c2   :  { %v9655_v38 = vpop.f32.mrb[108].mxu0 }
0x17c3   :  { %v9656_v8 = vadd.f32 %v9655_v38, %v9585_v36  ;;  %v11700_v9 = vpop.f32.mrb[109].mxu0 }
0x17c5   :  { %v9659_v1 = vadd.f32 %v9656_v8, %v13004_v29 }
0x17c7   :  { %v10103_v0 = vmul.f32 -1.442695, %v9659_v1 }
0x17c9   :  { %12392 = vpow2.f32 %v10103_v0 }
0x17ca   :  { %v9802_v42 = vpop.f32.mrb[110].mxu0 }
0x17cb   :  { %v12391_v18 = vpop.eup %12390  ;;  %v11722_v21 = vpop.f32.mrb[111].mxu0  ;;  %v9803_v12 = vadd.f32 %v14048_v33, %v9802_v42 }
0x17cc   :  { %v9516_v14 = vadd.f32 1.0, %v12391_v18 }
0x17ce   :  { %12394 = vrcp.f32 %v9516_v14 }
0x17d3   :  { %v12393_v57 = vpop.eup %12392 }
0x17d4   :  { %v9663_v27 = vadd.f32 1.0, %v12393_v57 }
0x17d6   :  { %12396 = vrcp.f32 %v9663_v27 }
0x17d8   :  { %v12395_v46 = vpop.eup %12394 }
0x17d9   :  { %v9806_v45 = vmul.f32 %v12395_v46, %v9803_v12 }
0x17db   :  { %v9807_v50 = vadd.f32 %v9806_v45, %v9733_v6 }
0x17dd   :  { %12398 = vtanh.f32 %v9807_v50 }
0x17e0   :  { %v12397_v53 = vpop.eup %12396 }
0x17e1   :  { %v9809_v29 = vsub.f32 1.0, %v12397_v53  ;;  %v9811_v39 = vmul.f32 %v12397_v53, %v14111_v59 }
0x17e7   :  { %v12399_v58 = vpop.eup %12398 }
0x17e8   :  { %v9810_v49 = vmul.f32 %v12399_v58, %v9809_v29 }
0x17ea   :  { %v9812_v16 = vadd.f32 %v9811_v39, %v9810_v49 }
0x17ec   :  { %9813 = vst.msk [vmem:[#allocation2 + $0x8] sm:$0xff] %vm240_vm4, %v9812_v16  ;;  %11732 = vmatmul.mubr.msk.f32.vlgmr.msra.gmra.mrb[144].mxu1 %vm240_vm4, %v9812_v16 }
0x18bf   :  { %v9883_v4 = vpop.f32.mrb[144].mxu1 }
0x18c0   :  { %v9884_v33 = vadd.f32 %v14072_v25, %v9883_v4  ;;  %v11733_v60 = vpop.f32.mrb[145].mxu1 }
0x18c2   :  { %12400 = vtanh.f32 %v9884_v33 }
0x18cc   :  { %v12401_v55 = vpop.eup %12400 }
0x18cd   :  { %9888 = vst.msk [vmem:[#allocation3] sm:$0xff] %vm327_vm5, %v12401_v55  ;;  %10107 = vst.msk [vmem:[%s14188_s15 + $0x38] sm:$0xff] %vm327_vm5, %v12401_v55 }
0x18ce   :  { %9895 = vsyncpa [#allocation5], 1 }
0x18cf   :  { %9896 = vsyncpa [#allocation7], 1 }
0x18d0   :  { %9897 = vsyncpa [#allocation10], 1 }

</bundles_post_ra>
